<compile_context>
chip_gen: v6e
topology: v6e:2x2x1
jax: 0.10.0
libtpu: 0.0.40
codegen_flags: <defaults>
</compile_context>

<pallas_src>
import functools

import jax
import jax.numpy as jnp
import numpy as np
from jax.experimental import pallas as pl
from jax.experimental.pallas import tpu as pltpu

FEATDIM = 512
C_IN = 3
C0 = 32            # logical block width (edgenext_x_small stage-0 width)
EXP = 4            # MLP expansion
H1 = EXP * C0      # pw1 hidden width (= 128, lane-dense)
CP = 128           # channels zero-padded to a full lane width
KP = 128           # patch features (4*4*3 = 48) zero-padded to a lane width
PATCH = 4          # stem patch size (edgenext stem = 4x4 stride-4 conv)
EPS = 1e-6


# ----------------------------------------------------------------------------
# Fused Pallas kernel
# ----------------------------------------------------------------------------
def _fused_kernel(patches_ref, dwmask_ref, pool_ref,
                  stem_w_ref, stem_b_ref, dw_w_ref, dw_b_ref,
                  ln1_g_ref, ln1_b_ref, pw1_w_ref, pw1_b_ref,
                  pw2_w_ref, pw2_b_ref, ln2_g_ref, ln2_b_ref,
                  head_w_ref, head_b_ref,
                  o_ref, dw_scr, *, Bt, P, Wp, halo):
    """stem matmul -> dw3x3 (halo scratch + offset loads + hoisted masks)
    -> LN -> pw1+GELU -> pw2+residual -> per-image GAP -> LN -> Linear(512)."""
    M = Bt * P
    inv_c = 1.0 / C0
    pad_corr = (CP - C0) * inv_c

    # --- stem: 4x4 stride-4 patchify conv as ONE MXU matmul over M rows ------
    h = jnp.dot(patches_ref[...], stem_w_ref[...],
                preferred_element_type=jnp.float32) + stem_b_ref[...]   # (M, CP) f32
    res = h                                           # residual; padded lanes are exactly 0

    # --- depthwise 3x3, stride 1, zero border padding ------------------------
    # Stem output is written once to a halo'd VMEM scratch; each tap is a
    # static sublane-offset load instead of a full-array roll.  Border and
    # cross-image contributions are zeroed by host-precomputed (M, 1) masks
    # (hoisted out of the tap loop); the center tap needs no mask.
    dw_scr[pl.ds(0, halo), :] = jnp.zeros((halo, CP), jnp.float32)
    dw_scr[pl.ds(halo + M, halo), :] = jnp.zeros((halo, CP), jnp.float32)
    dw_scr[pl.ds(halo, M), :] = h

    w_all = dw_w_ref[...]                                               # (9, CP) f32
    masks = dwmask_ref[...]                                             # (M, 9) f32 {0,1}
    acc = h * w_all[4:5, :]                                             # center tap
    for dh in (-1, 0, 1):
        for dj in (-1, 0, 1):
            if dh == 0 and dj == 0:
                continue
            off = dh * Wp + dj                                          # static int
            t = (dh + 1) * 3 + (dj + 1)
            shifted = dw_scr[pl.ds(halo + off, M), :]                   # offset load
            acc = acc + shifted * w_all[t:t + 1, :] * masks[:, t:t + 1]
    h = acc + dw_b_ref[...]

    # --- LayerNorm over the C0 real channels ---------------------------------
    # Padded lanes of h are exactly 0 (all weights/biases zero-padded), so the
    # mean needs no mask and the variance uses a closed-form padding correction.
    mu = jnp.sum(h, axis=-1, keepdims=True) * inv_c
    d = h - mu
    var = jnp.sum(d * d, axis=-1, keepdims=True) * inv_c - pad_corr * (mu * mu)
    h = d * jax.lax.rsqrt(var + EPS) * ln1_g_ref[...] + ln1_b_ref[...]

    # --- pointwise MLP (bf16 MXU operands, f32 accumulate) + residual --------
    h1 = jnp.dot(h.astype(jnp.bfloat16), pw1_w_ref[...],
                 preferred_element_type=jnp.float32) + pw1_b_ref[...]
    h1 = jax.nn.gelu(h1, approximate=True)                              # f32 EUP
    h2 = jnp.dot(h1.astype(jnp.bfloat16), pw2_w_ref[...],
                 preferred_element_type=jnp.float32) + pw2_b_ref[...] + res

    # --- per-image global average pool via a block-diagonal pooling matmul ---
    pooled = jnp.dot(pool_ref[...], h2, preferred_element_type=jnp.float32)  # (Bt, CP)

    # --- fused head: LayerNorm + Linear -> 512 (lane-dense unmasked stores) --
    mu2 = jnp.sum(pooled, axis=-1, keepdims=True) * inv_c
    d2 = pooled - mu2
    var2 = jnp.sum(d2 * d2, axis=-1, keepdims=True) * inv_c - pad_corr * (mu2 * mu2)
    pn = d2 * jax.lax.rsqrt(var2 + EPS) * ln2_g_ref[...] + ln2_b_ref[...]
    o_ref[...] = jnp.dot(pn.astype(jnp.bfloat16), head_w_ref[...],
                         preferred_element_type=jnp.float32) + head_b_ref[...]


# ----------------------------------------------------------------------------
# Pallas wrapper
# ----------------------------------------------------------------------------
def pallas_forward(patches, dw_masks, pool_mat, pp, *, B, P, Hp, Wp, Bt):
    """One fused pallas_call: (B*P, KP) patches -> (B, FEATDIM) features."""
    del Hp  # only needed for mask construction (done on host)
    M = Bt * P
    halo = ((Wp + 1 + 7) // 8) * 8           # sublane-aligned halo >= Wp+1
    assert B % Bt == 0
    assert M % 8 == 0
    assert Bt == B or Bt % 8 == 0, "output block must satisfy sublane tiling"
    n_steps = B // Bt

    weight_names = ("stem_w", "stem_b", "dw_w", "dw_b", "ln1_g", "ln1_b",
                    "pw1_w", "pw1_b", "pw2_w", "pw2_b", "ln2_g", "ln2_b",
                    "head_w", "head_b")
    weights = [pp[n] for n in weight_names]

    kernel = functools.partial(_fused_kernel, Bt=Bt, P=P, Wp=Wp, halo=halo)

    in_specs = [pl.BlockSpec((M, KP), lambda b: (b, 0)),      # patch rows (batch tile)
                pl.BlockSpec((M, 9), lambda b: (0, 0)),       # dwconv tap masks
                pl.BlockSpec((Bt, M), lambda b: (0, 0))]      # GAP pooling matrix
    # Weight blocks are grid-invariant (block index (0, 0)) -> resident in VMEM.
    in_specs += [pl.BlockSpec(w.shape, lambda b: (0, 0)) for w in weights]

    mtot = B * P
    flops = (2 * mtot * KP * CP + 18 * mtot * CP + 2 * mtot * CP * H1
             + 2 * mtot * H1 * CP + 2 * B * CP * FEATDIM)
    bytes_accessed = (mtot * KP * 2 + mtot * 9 * 4 + Bt * M * 4
                      + sum(int(np.prod(w.shape)) * w.dtype.itemsize for w in weights)
                      + B * FEATDIM * 4)

    return pl.pallas_call(
        kernel,
        out_shape=jax.ShapeDtypeStruct((B, FEATDIM), jnp.float32),
        grid=(n_steps,),
        in_specs=in_specs,
        out_specs=pl.BlockSpec((Bt, FEATDIM), lambda b: (b, 0)),
        scratch_shapes=[pltpu.VMEM((M + 2 * halo, CP), jnp.float32)],
        compiler_params=pltpu.CompilerParams(
            dimension_semantics=("parallel",)),
        cost_estimate=pl.CostEstimate(flops=flops, transcendentals=mtot * H1,
                                      bytes_accessed=bytes_accessed),
        # TODO(synk): at real EdgeNeXt resolutions, row-tile the spatial axis
        # (512-1024 rows on v5e/v6e, ~half on v7x's 64 MiB VMEM), raise
        # vmem_limit_bytes, and when B is tiny on v7x add a spatial grid axis
        # with per-core partial-GAP accumulators so both TensorCores are busy.
    )(patches, dw_masks, pool_mat, *weights)


# ----------------------------------------------------------------------------
# Parameters & host-side glue
# ----------------------------------------------------------------------------
def init_params(key):
    ks = jax.random.split(key, 6)

    def dense(k, fan_in, fan_out):
        return jax.random.normal(k, (fan_in, fan_out), jnp.float32) / np.sqrt(fan_in)

    return {
        "stem_w": dense(ks[0], PATCH * PATCH * C_IN, C0),
        "stem_b": jnp.zeros((C0,), jnp.float32),
        "dw_w": jax.random.normal(ks[1], (3, 3, C0), jnp.float32) * 0.1,
        "dw_b": jnp.zeros((C0,), jnp.float32),
        "ln1_g": jnp.ones((C0,), jnp.float32),
        "ln1_b": jnp.zeros((C0,), jnp.float32),
        "pw1_w": dense(ks[2], C0, H1),
        "pw1_b": jnp.zeros((H1,), jnp.float32),
        "pw2_w": dense(ks[3], H1, C0),
        "pw2_b": jnp.zeros((C0,), jnp.float32),
        "ln2_g": jnp.ones((C0,), jnp.float32),
        "ln2_b": jnp.zeros((C0,), jnp.float32),
        "head_w": dense(ks[4], C0, FEATDIM),
        "head_b": jnp.zeros((FEATDIM,), jnp.float32),
    }


def _pad_params(p):
    """Zero-pad channel axes to lane-dense widths; cast MXU weights to bf16.

    NOTE: correctness of the lane-padding scheme relies on every gamma/bias/
    weight being padded with ZEROS (never ones), so lanes >= C0 stay exactly
    zero through the dwconv, MLP, residual and pooling paths.
    """
    def pad_to(a, axis, size):
        padw = [(0, 0)] * a.ndim
        padw[axis] = (0, size - a.shape[axis])
        return jnp.pad(a, padw)

    return {
        "stem_w": pad_to(pad_to(p["stem_w"], 0, KP), 1, CP).astype(jnp.bfloat16),
        "stem_b": pad_to(p["stem_b"].reshape(1, -1), 1, CP),
        "dw_w": pad_to(p["dw_w"].reshape(9, C0), 1, CP),
        "dw_b": pad_to(p["dw_b"].reshape(1, -1), 1, CP),
        "ln1_g": pad_to(p["ln1_g"].reshape(1, -1), 1, CP),
        "ln1_b": pad_to(p["ln1_b"].reshape(1, -1), 1, CP),
        "pw1_w": pad_to(p["pw1_w"], 0, CP).astype(jnp.bfloat16),
        "pw1_b": p["pw1_b"].reshape(1, -1),
        "pw2_w": pad_to(p["pw2_w"], 1, CP).astype(jnp.bfloat16),
        "pw2_b": pad_to(p["pw2_b"].reshape(1, -1), 1, CP),
        "ln2_g": pad_to(p["ln2_g"].reshape(1, -1), 1, CP),
        "ln2_b": pad_to(p["ln2_b"].reshape(1, -1), 1, CP),
        "head_w": pad_to(p["head_w"], 0, CP).astype(jnp.bfloat16),
        "head_b": p["head_b"].reshape(1, -1),
    }


def _patchify(x_nhwc):
    """(B,H,W,C) -> (B*Hp*Wp, KP) non-overlapping patches, lane-dense bf16."""
    B, H, W, C = x_nhwc.shape
    Hp, Wp = H // PATCH, W // PATCH
    x = x_nhwc.reshape(B, Hp, PATCH, Wp, PATCH, C).transpose(0, 1, 3, 2, 4, 5)
    patches = x.reshape(B * Hp * Wp, PATCH * PATCH * C)
    patches = jnp.pad(patches, ((0, 0), (0, KP - PATCH * PATCH * C)))
    return patches.astype(jnp.bfloat16), (B, Hp, Wp)


def _dw_tap_masks(Bt, P, Hp, Wp):
    """(Bt*P, 9) f32 {0,1}: validity of each 3x3 tap at each flattened row."""
    p = np.arange(Bt * P) % P
    hh, ww = p // Wp, p % Wp
    cols = []
    for dh in (-1, 0, 1):
        for dj in (-1, 0, 1):
            cols.append(((hh + dh >= 0) & (hh + dh < Hp) &
                         (ww + dj >= 0) & (ww + dj < Wp)).astype(np.float32))
    return jnp.asarray(np.stack(cols, axis=1))


def _pool_matrix(Bt, P):
    """(Bt, Bt*P) block-diagonal averaging matrix for per-image GAP."""
    m = np.zeros((Bt, Bt * P), np.float32)
    for b in range(Bt):
        m[b, b * P:(b + 1) * P] = 1.0 / P
    return jnp.asarray(m)


def timmfr_forward(params, x_nchw):
    """Forward: NCHW image -> (B, FEATDIM) features, ONE fused Pallas call."""
    pp = _pad_params(params)
    x = jnp.transpose(x_nchw, (0, 2, 3, 1)).astype(jnp.float32)
    # TODO(synk): at real resolutions fold the NCHW->NHWC transpose and patch
    # extraction into the stem kernel via the BlockSpec index_map instead of
    # materializing the padded patch matrix in HBM.
    patches, (B, Hp, Wp) = _patchify(x)
    P = Hp * Wp
    Bt = B  # batch tile: each grid step feeds the MXU Bt*P (>=128) rows.
    # TODO(synk): for large B choose Bt (multiple of 8 or == B) so Bt*P is
    # 128-256 on v5e and 256-1024 on v6e, roughly half that on v7x (64 MiB VMEM).
    dw_masks = _dw_tap_masks(Bt, P, Hp, Wp)
    pool_mat = _pool_matrix(Bt, P)
    return pallas_forward(patches, dw_masks, pool_mat, pp,
                          B=B, P=P, Hp=Hp, Wp=Wp, Bt=Bt)


# ----------------------------------------------------------------------------
# Pure-JAX reference (same bf16-operand / f32-accumulate matmul recipe)
# ----------------------------------------------------------------------------
def _reference_forward(params, x_nchw):
    x = jnp.transpose(x_nchw, (0, 2, 3, 1)).astype(jnp.float32)
    B, H, W, C = x.shape
    Hp, Wp = H // PATCH, W // PATCH
    P = Hp * Wp
    pat = x.reshape(B, Hp, PATCH, Wp, PATCH, C).transpose(0, 1, 3, 2, 4, 5)
    pat = pat.reshape(B * P, PATCH * PATCH * C)

    def bdot(a, w):
        return jnp.dot(a.astype(jnp.bfloat16), w.astype(jnp.bfloat16),
                       preferred_element_type=jnp.float32)

    def ln(v, g, b):
        mu = jnp.mean(v, axis=-1, keepdims=True)
        var = jnp.mean((v - mu) ** 2, axis=-1, keepdims=True)
        return (v - mu) * jax.lax.rsqrt(var + EPS) * g + b

    h = bdot(pat, params["stem_w"]) + params["stem_b"]
    h = h.reshape(B, Hp, Wp, C0)
    res = h.reshape(B * P, C0)

    xp = jnp.pad(h, ((0, 0), (1, 1), (1, 1), (0, 0)))
    acc = jnp.zeros_like(h)
    for di in range(3):
        for dj in range(3):
            acc = acc + xp[:, di:di + Hp, dj:dj + Wp, :] * params["dw_w"][di, dj, :]
    h = (acc + params["dw_b"]).reshape(B * P, C0)

    h = ln(h, params["ln1_g"], params["ln1_b"])
    h = jax.nn.gelu(bdot(h, params["pw1_w"]) + params["pw1_b"], approximate=True)
    h = bdot(h, params["pw2_w"]) + params["pw2_b"] + res

    h = jnp.mean(h.reshape(B, P, C0), axis=1)
    h = ln(h, params["ln2_g"], params["ln2_b"])
    return bdot(h, params["head_w"]) + params["head_b"]


# ----------------------------------------------------------------------------
if __name__ == "__main__":
    key = jax.random.PRNGKey(0)
    k_param, k_input = jax.random.split(key)

    params = init_params(k_param)
    # 32x32 input -> Hp=Wp=8, P=64, so a batch tile of 2 images gives the MXU
    # 128 rows per matmul (per perf review), while staying a small test shape.
    x = jax.random.normal(k_input, (2, C_IN, 32, 32), jnp.float32)   # NCHW input

    out = jax.jit(timmfr_forward)(params, x)
    out = jax.block_until_ready(out)
    assert out.shape == (2, FEATDIM), out.shape

    ref = _reference_forward(params, x)
    # bf16 MXU operands -> tolerance loosened accordingly.
    np.testing.assert_allclose(np.asarray(out), np.asarray(ref), rtol=2e-2, atol=2e-2)

    print("KERNEL_OK")
</pallas_src>

<mosaic_0001>
module attributes {stable_mosaic.version = 11 : i64} {
  func.func @_fused_kernel(%arg0: i32, %arg1: memref<128x128xbf16, #tpu.memory_space<vmem>>, %arg2: memref<128x9xf32, #tpu.memory_space<vmem>>, %arg3: memref<2x128xf32, #tpu.memory_space<vmem>>, %arg4: memref<128x128xbf16, #tpu.memory_space<vmem>>, %arg5: memref<1x128xf32, #tpu.memory_space<vmem>>, %arg6: memref<9x128xf32, #tpu.memory_space<vmem>>, %arg7: memref<1x128xf32, #tpu.memory_space<vmem>>, %arg8: memref<1x128xf32, #tpu.memory_space<vmem>>, %arg9: memref<1x128xf32, #tpu.memory_space<vmem>>, %arg10: memref<128x128xbf16, #tpu.memory_space<vmem>>, %arg11: memref<1x128xf32, #tpu.memory_space<vmem>>, %arg12: memref<128x128xbf16, #tpu.memory_space<vmem>>, %arg13: memref<1x128xf32, #tpu.memory_space<vmem>>, %arg14: memref<1x128xf32, #tpu.memory_space<vmem>>, %arg15: memref<1x128xf32, #tpu.memory_space<vmem>>, %arg16: memref<128x512xbf16, #tpu.memory_space<vmem>>, %arg17: memref<1x512xf32, #tpu.memory_space<vmem>>, %arg18: memref<2x512xf32, #tpu.memory_space<vmem>>, %arg19: memref<160x128xf32, #tpu.memory_space<vmem>>) attributes {dimension_semantics = [#tpu.dimension_semantics<parallel>], iteration_bounds = array<i64: 1>, scalar_prefetch = 0 : i64, scratch_operands = 1 : i64, tpu.core_type = #tpu.core_type<tc>, window_params = [{transform_indices = @transform_0, window_bounds = array<i64: 128, 128>}, {pipeline_mode = #tpu.pipeline_mode<synchronous>, transform_indices = @transform_1, window_bounds = array<i64: 128, 9>}, {pipeline_mode = #tpu.pipeline_mode<synchronous>, transform_indices = @transform_2, window_bounds = array<i64: 2, 128>}, {pipeline_mode = #tpu.pipeline_mode<synchronous>, transform_indices = @transform_3, window_bounds = array<i64: 128, 128>}, {pipeline_mode = #tpu.pipeline_mode<synchronous>, transform_indices = @transform_4, window_bounds = array<i64: 1, 128>}, {pipeline_mode = #tpu.pipeline_mode<synchronous>, transform_indices = @transform_5, window_bounds = array<i64: 9, 128>}, {pipeline_mode = #tpu.pipeline_mode<synchronous>, transform_indices = @transform_6, window_bounds = array<i64: 1, 128>}, {pipeline_mode = #tpu.pipeline_mode<synchronous>, transform_indices = @transform_7, window_bounds = array<i64: 1, 128>}, {pipeline_mode = #tpu.pipeline_mode<synchronous>, transform_indices = @transform_8, window_bounds = array<i64: 1, 128>}, {pipeline_mode = #tpu.pipeline_mode<synchronous>, transform_indices = @transform_9, window_bounds = array<i64: 128, 128>}, {pipeline_mode = #tpu.pipeline_mode<synchronous>, transform_indices = @transform_10, window_bounds = array<i64: 1, 128>}, {pipeline_mode = #tpu.pipeline_mode<synchronous>, transform_indices = @transform_11, window_bounds = array<i64: 128, 128>}, {pipeline_mode = #tpu.pipeline_mode<synchronous>, transform_indices = @transform_12, window_bounds = array<i64: 1, 128>}, {pipeline_mode = #tpu.pipeline_mode<synchronous>, transform_indices = @transform_13, window_bounds = array<i64: 1, 128>}, {pipeline_mode = #tpu.pipeline_mode<synchronous>, transform_indices = @transform_14, window_bounds = array<i64: 1, 128>}, {pipeline_mode = #tpu.pipeline_mode<synchronous>, transform_indices = @transform_15, window_bounds = array<i64: 128, 512>}, {pipeline_mode = #tpu.pipeline_mode<synchronous>, transform_indices = @transform_16, window_bounds = array<i64: 1, 512>}, {transform_indices = @transform_17, window_bounds = array<i64: 2, 512>}]} {
    %c0 = arith.constant 0 : index
    %c0_0 = arith.constant 0 : index
    %0 = vector.load %arg1[%c0, %c0_0] : memref<128x128xbf16, #tpu.memory_space<vmem>>, vector<128x128xbf16>
    %c0_1 = arith.constant 0 : index
    %c0_2 = arith.constant 0 : index
    %1 = vector.load %arg4[%c0_1, %c0_2] : memref<128x128xbf16, #tpu.memory_space<vmem>>, vector<128x128xbf16>
    %cst = arith.constant dense<0.000000e+00> : vector<128x128xf32>
    %2 = tpu.matmul %0, %1, %cst {dimension_numbers = #tpu.dot_dimension_numbers<[1], [0], [0], [1], [0, 0, 1, 1], [], []>} : vector<128x128xbf16>, vector<128x128xbf16>, vector<128x128xf32> -> vector<128x128xf32>
    %c0_3 = arith.constant 0 : index
    %c0_4 = arith.constant 0 : index
    %3 = vector.load %arg5[%c0_3, %c0_4] : memref<1x128xf32, #tpu.memory_space<vmem>>, vector<1x128xf32>
    %4 = vector.broadcast %3 : vector<1x128xf32> to vector<128x128xf32>
    %5 = arith.addf %2, %4 : vector<128x128xf32>
    %cst_5 = arith.constant 0.000000e+00 : f32
    %6 = vector.broadcast %cst_5 : f32 to vector<16x128xf32>
    %c0_6 = arith.constant 0 : index
    %c0_7 = arith.constant 0 : index
    %7 = vector.load %arg19[%c0_6, %c0_7] : memref<160x128xf32, #tpu.memory_space<vmem>>, vector<16x128xf32>
    tpu.vector_store %arg19[%c0_6, %c0_7], %6 {strides = array<i32>} : memref<160x128xf32, #tpu.memory_space<vmem>>, vector<16x128xf32>,
    %cst_8 = arith.constant 0.000000e+00 : f32
    %8 = vector.broadcast %cst_8 : f32 to vector<16x128xf32>
    %c144 = arith.constant 144 : index
    %c0_9 = arith.constant 0 : index
    %9 = vector.load %arg19[%c144, %c0_9] : memref<160x128xf32, #tpu.memory_space<vmem>>, vector<16x128xf32>
    tpu.vector_store %arg19[%c144, %c0_9], %8 {strides = array<i32>} : memref<160x128xf32, #tpu.memory_space<vmem>>, vector<16x128xf32>,
    %c16 = arith.constant 16 : index
    %c0_10 = arith.constant 0 : index
    %10 = vector.load %arg19[%c16, %c0_10] : memref<160x128xf32, #tpu.memory_space<vmem>>, vector<128x128xf32>
    tpu.vector_store %arg19[%c16, %c0_10], %5 {strides = array<i32>} : memref<160x128xf32, #tpu.memory_space<vmem>>, vector<128x128xf32>,
    %c0_11 = arith.constant 0 : index
    %c0_12 = arith.constant 0 : index
    %11 = vector.load %arg6[%c0_11, %c0_12] : memref<9x128xf32, #tpu.memory_space<vmem>>, vector<9x128xf32>
    %c0_13 = arith.constant 0 : index
    %c0_14 = arith.constant 0 : index
    %12 = vector.load %arg2[%c0_13, %c0_14] : memref<128x9xf32, #tpu.memory_space<vmem>>, vector<128x9xf32>
    %13 = vector.extract_strided_slice %11 {offsets = [4, 0], sizes = [1, 128], strides = [1, 1]} : vector<9x128xf32> to vector<1x128xf32>
    %14 = vector.broadcast %13 : vector<1x128xf32> to vector<128x128xf32>
    %15 = arith.mulf %5, %14 : vector<128x128xf32>
    %c7 = arith.constant 7 : index
    %c0_15 = arith.constant 0 : index
    %16 = vector.load %arg19[%c7, %c0_15] : memref<160x128xf32, #tpu.memory_space<vmem>>, vector<128x128xf32>
    %17 = vector.extract_strided_slice %11 {offsets = [0, 0], sizes = [1, 128], strides = [1, 1]} : vector<9x128xf32> to vector<1x128xf32>
    %18 = vector.broadcast %17 : vector<1x128xf32> to vector<128x128xf32>
    %19 = arith.mulf %16, %18 : vector<128x128xf32>
    %20 = vector.extract_strided_slice %12 {offsets = [0, 0], sizes = [128, 1], strides = [1, 1]} : vector<128x9xf32> to vector<128x1xf32>
    %21 = vector.broadcast %20 : vector<128x1xf32> to vector<128x128xf32>
    %22 = arith.mulf %19, %21 : vector<128x128xf32>
    %23 = arith.addf %15, %22 : vector<128x128xf32>
    %c8 = arith.constant 8 : index
    %c0_16 = arith.constant 0 : index
    %24 = vector.load %arg19[%c8, %c0_16] : memref<160x128xf32, #tpu.memory_space<vmem>>, vector<128x128xf32>
    %25 = vector.extract_strided_slice %11 {offsets = [1, 0], sizes = [1, 128], strides = [1, 1]} : vector<9x128xf32> to vector<1x128xf32>
    %26 = vector.broadcast %25 : vector<1x128xf32> to vector<128x128xf32>
    %27 = arith.mulf %24, %26 : vector<128x128xf32>
    %28 = vector.extract_strided_slice %12 {offsets = [0, 1], sizes = [128, 1], strides = [1, 1]} : vector<128x9xf32> to vector<128x1xf32>
    %29 = vector.broadcast %28 : vector<128x1xf32> to vector<128x128xf32>
    %30 = arith.mulf %27, %29 : vector<128x128xf32>
    %31 = arith.addf %23, %30 : vector<128x128xf32>
    %c9 = arith.constant 9 : index
    %c0_17 = arith.constant 0 : index
    %32 = vector.load %arg19[%c9, %c0_17] : memref<160x128xf32, #tpu.memory_space<vmem>>, vector<128x128xf32>
    %33 = vector.extract_strided_slice %11 {offsets = [2, 0], sizes = [1, 128], strides = [1, 1]} : vector<9x128xf32> to vector<1x128xf32>
    %34 = vector.broadcast %33 : vector<1x128xf32> to vector<128x128xf32>
    %35 = arith.mulf %32, %34 : vector<128x128xf32>
    %36 = vector.extract_strided_slice %12 {offsets = [0, 2], sizes = [128, 1], strides = [1, 1]} : vector<128x9xf32> to vector<128x1xf32>
    %37 = vector.broadcast %36 : vector<128x1xf32> to vector<128x128xf32>
    %38 = arith.mulf %35, %37 : vector<128x128xf32>
    %39 = arith.addf %31, %38 : vector<128x128xf32>
    %c15 = arith.constant 15 : index
    %c0_18 = arith.constant 0 : index
    %40 = vector.load %arg19[%c15, %c0_18] : memref<160x128xf32, #tpu.memory_space<vmem>>, vector<128x128xf32>
    %41 = vector.extract_strided_slice %11 {offsets = [3, 0], sizes = [1, 128], strides = [1, 1]} : vector<9x128xf32> to vector<1x128xf32>
    %42 = vector.broadcast %41 : vector<1x128xf32> to vector<128x128xf32>
    %43 = arith.mulf %40, %42 : vector<128x128xf32>
    %44 = vector.extract_strided_slice %12 {offsets = [0, 3], sizes = [128, 1], strides = [1, 1]} : vector<128x9xf32> to vector<128x1xf32>
    %45 = vector.broadcast %44 : vector<128x1xf32> to vector<128x128xf32>
    %46 = arith.mulf %43, %45 : vector<128x128xf32>
    %47 = arith.addf %39, %46 : vector<128x128xf32>
    %c17 = arith.constant 17 : index
    %c0_19 = arith.constant 0 : index
    %48 = vector.load %arg19[%c17, %c0_19] : memref<160x128xf32, #tpu.memory_space<vmem>>, vector<128x128xf32>
    %49 = vector.extract_strided_slice %11 {offsets = [5, 0], sizes = [1, 128], strides = [1, 1]} : vector<9x128xf32> to vector<1x128xf32>
    %50 = vector.broadcast %49 : vector<1x128xf32> to vector<128x128xf32>
    %51 = arith.mulf %48, %50 : vector<128x128xf32>
    %52 = vector.extract_strided_slice %12 {offsets = [0, 5], sizes = [128, 1], strides = [1, 1]} : vector<128x9xf32> to vector<128x1xf32>
    %53 = vector.broadcast %52 : vector<128x1xf32> to vector<128x128xf32>
    %54 = arith.mulf %51, %53 : vector<128x128xf32>
    %55 = arith.addf %47, %54 : vector<128x128xf32>
    %c23 = arith.constant 23 : index
    %c0_20 = arith.constant 0 : index
    %56 = vector.load %arg19[%c23, %c0_20] : memref<160x128xf32, #tpu.memory_space<vmem>>, vector<128x128xf32>
    %57 = vector.extract_strided_slice %11 {offsets = [6, 0], sizes = [1, 128], strides = [1, 1]} : vector<9x128xf32> to vector<1x128xf32>
    %58 = vector.broadcast %57 : vector<1x128xf32> to vector<128x128xf32>
    %59 = arith.mulf %56, %58 : vector<128x128xf32>
    %60 = vector.extract_strided_slice %12 {offsets = [0, 6], sizes = [128, 1], strides = [1, 1]} : vector<128x9xf32> to vector<128x1xf32>
    %61 = vector.broadcast %60 : vector<128x1xf32> to vector<128x128xf32>
    %62 = arith.mulf %59, %61 : vector<128x128xf32>
    %63 = arith.addf %55, %62 : vector<128x128xf32>
    %c24 = arith.constant 24 : index
    %c0_21 = arith.constant 0 : index
    %64 = vector.load %arg19[%c24, %c0_21] : memref<160x128xf32, #tpu.memory_space<vmem>>, vector<128x128xf32>
    %65 = vector.extract_strided_slice %11 {offsets = [7, 0], sizes = [1, 128], strides = [1, 1]} : vector<9x128xf32> to vector<1x128xf32>
    %66 = vector.broadcast %65 : vector<1x128xf32> to vector<128x128xf32>
    %67 = arith.mulf %64, %66 : vector<128x128xf32>
    %68 = vector.extract_strided_slice %12 {offsets = [0, 7], sizes = [128, 1], strides = [1, 1]} : vector<128x9xf32> to vector<128x1xf32>
    %69 = vector.broadcast %68 : vector<128x1xf32> to vector<128x128xf32>
    %70 = arith.mulf %67, %69 : vector<128x128xf32>
    %71 = arith.addf %63, %70 : vector<128x128xf32>
    %c25 = arith.constant 25 : index
    %c0_22 = arith.constant 0 : index
    %72 = vector.load %arg19[%c25, %c0_22] : memref<160x128xf32, #tpu.memory_space<vmem>>, vector<128x128xf32>
    %73 = vector.extract_strided_slice %11 {offsets = [8, 0], sizes = [1, 128], strides = [1, 1]} : vector<9x128xf32> to vector<1x128xf32>
    %74 = vector.broadcast %73 : vector<1x128xf32> to vector<128x128xf32>
    %75 = arith.mulf %72, %74 : vector<128x128xf32>
    %76 = vector.extract_strided_slice %12 {offsets = [0, 8], sizes = [128, 1], strides = [1, 1]} : vector<128x9xf32> to vector<128x1xf32>
    %77 = vector.broadcast %76 : vector<128x1xf32> to vector<128x128xf32>
    %78 = arith.mulf %75, %77 : vector<128x128xf32>
    %79 = arith.addf %71, %78 : vector<128x128xf32>
    %c0_23 = arith.constant 0 : index
    %c0_24 = arith.constant 0 : index
    %80 = vector.load %arg7[%c0_23, %c0_24] : memref<1x128xf32, #tpu.memory_space<vmem>>, vector<1x128xf32>
    %81 = vector.broadcast %80 : vector<1x128xf32> to vector<128x128xf32>
    %82 = arith.addf %79, %81 : vector<128x128xf32>
    %cst_25 = arith.constant dense<0.000000e+00> : vector<128xf32>
    %83 = vector.multi_reduction <add>, %82, %cst_25 [1] : vector<128x128xf32> to vector<128xf32>
    %84 = vector.shape_cast %83 : vector<128xf32> to vector<128x1xf32>
    %cst_26 = arith.constant 3.125000e-02 : f32
    %85 = vector.broadcast %cst_26 : f32 to vector<128x1xf32>
    %86 = arith.mulf %84, %85 : vector<128x1xf32>
    %87 = vector.broadcast %86 : vector<128x1xf32> to vector<128x128xf32>
    %88 = arith.subf %82, %87 : vector<128x128xf32>
    %89 = arith.mulf %88, %88 : vector<128x128xf32>
    %cst_27 = arith.constant dense<0.000000e+00> : vector<128xf32>
    %90 = vector.multi_reduction <add>, %89, %cst_27 [1] : vector<128x128xf32> to vector<128xf32>
    %91 = vector.shape_cast %90 : vector<128xf32> to vector<128x1xf32>
    %cst_28 = arith.constant 3.125000e-02 : f32
    %92 = vector.broadcast %cst_28 : f32 to vector<128x1xf32>
    %93 = arith.mulf %91, %92 : vector<128x1xf32>
    %94 = arith.mulf %86, %86 : vector<128x1xf32>
    %cst_29 = arith.constant 3.000000e+00 : f32
    %95 = vector.broadcast %cst_29 : f32 to vector<128x1xf32>
    %96 = arith.mulf %95, %94 : vector<128x1xf32>
    %97 = arith.subf %93, %96 : vector<128x1xf32>
    %cst_30 = arith.constant 9.99999997E-7 : f32
    %98 = vector.broadcast %cst_30 : f32 to vector<128x1xf32>
    %99 = arith.addf %97, %98 : vector<128x1xf32>
    %100 = math.rsqrt %99 : vector<128x1xf32>
    %101 = vector.broadcast %100 : vector<128x1xf32> to vector<128x128xf32>
    %102 = arith.mulf %88, %101 : vector<128x128xf32>
    %c0_31 = arith.constant 0 : index
    %c0_32 = arith.constant 0 : index
    %103 = vector.load %arg8[%c0_31, %c0_32] : memref<1x128xf32, #tpu.memory_space<vmem>>, vector<1x128xf32>
    %104 = vector.broadcast %103 : vector<1x128xf32> to vector<128x128xf32>
    %105 = arith.mulf %102, %104 : vector<128x128xf32>
    %c0_33 = arith.constant 0 : index
    %c0_34 = arith.constant 0 : index
    %106 = vector.load %arg9[%c0_33, %c0_34] : memref<1x128xf32, #tpu.memory_space<vmem>>, vector<1x128xf32>
    %107 = vector.broadcast %106 : vector<1x128xf32> to vector<128x128xf32>
    %108 = arith.addf %105, %107 : vector<128x128xf32>
    %109 = arith.truncf %108 : vector<128x128xf32> to vector<128x128xbf16>
    %c0_35 = arith.constant 0 : index
    %c0_36 = arith.constant 0 : index
    %110 = vector.load %arg10[%c0_35, %c0_36] : memref<128x128xbf16, #tpu.memory_space<vmem>>, vector<128x128xbf16>
    %cst_37 = arith.constant dense<0.000000e+00> : vector<128x128xf32>
    %111 = tpu.matmul %109, %110, %cst_37 {dimension_numbers = #tpu.dot_dimension_numbers<[1], [0], [0], [1], [0, 0, 1, 1], [], []>} : vector<128x128xbf16>, vector<128x128xbf16>, vector<128x128xf32> -> vector<128x128xf32>
    %c0_38 = arith.constant 0 : index
    %c0_39 = arith.constant 0 : index
    %112 = vector.load %arg11[%c0_38, %c0_39] : memref<1x128xf32, #tpu.memory_space<vmem>>, vector<1x128xf32>
    %113 = vector.broadcast %112 : vector<1x128xf32> to vector<128x128xf32>
    %114 = arith.addf %111, %113 : vector<128x128xf32>
    %115 = arith.mulf %114, %114 : vector<128x128xf32>
    %116 = arith.mulf %114, %115 : vector<128x128xf32>
    %cst_40 = arith.constant 4.471500e-02 : f32
    %117 = vector.broadcast %cst_40 : f32 to vector<128x128xf32>
    %118 = arith.mulf %117, %116 : vector<128x128xf32>
    %119 = arith.addf %114, %118 : vector<128x128xf32>
    %cst_41 = arith.constant 0.797884583 : f32
    %120 = vector.broadcast %cst_41 : f32 to vector<128x128xf32>
    %121 = arith.mulf %120, %119 : vector<128x128xf32>
    %122 = math.tanh %121 : vector<128x128xf32>
    %cst_42 = arith.constant 1.000000e+00 : f32
    %123 = vector.broadcast %cst_42 : f32 to vector<128x128xf32>
    %124 = arith.addf %123, %122 : vector<128x128xf32>
    %cst_43 = arith.constant 5.000000e-01 : f32
    %125 = vector.broadcast %cst_43 : f32 to vector<128x128xf32>
    %126 = arith.mulf %125, %124 : vector<128x128xf32>
    %127 = arith.mulf %114, %126 : vector<128x128xf32>
    %128 = arith.truncf %127 : vector<128x128xf32> to vector<128x128xbf16>
    %c0_44 = arith.constant 0 : index
    %c0_45 = arith.constant 0 : index
    %129 = vector.load %arg12[%c0_44, %c0_45] : memref<128x128xbf16, #tpu.memory_space<vmem>>, vector<128x128xbf16>
    %cst_46 = arith.constant dense<0.000000e+00> : vector<128x128xf32>
    %130 = tpu.matmul %128, %129, %cst_46 {dimension_numbers = #tpu.dot_dimension_numbers<[1], [0], [0], [1], [0, 0, 1, 1], [], []>} : vector<128x128xbf16>, vector<128x128xbf16>, vector<128x128xf32> -> vector<128x128xf32>
    %c0_47 = arith.constant 0 : index
    %c0_48 = arith.constant 0 : index
    %131 = vector.load %arg13[%c0_47, %c0_48] : memref<1x128xf32, #tpu.memory_space<vmem>>, vector<1x128xf32>
    %132 = vector.broadcast %131 : vector<1x128xf32> to vector<128x128xf32>
    %133 = arith.addf %130, %132 : vector<128x128xf32>
    %134 = arith.addf %133, %5 : vector<128x128xf32>
    %c0_49 = arith.constant 0 : index
    %c0_50 = arith.constant 0 : index
    %135 = vector.load %arg3[%c0_49, %c0_50] : memref<2x128xf32, #tpu.memory_space<vmem>>, vector<2x128xf32>
    %cst_51 = arith.constant dense<0.000000e+00> : vector<2x128xf32>
    %136 = tpu.matmul %135, %134, %cst_51 {dimension_numbers = #tpu.dot_dimension_numbers<[1], [0], [0], [1], [0, 0, 1, 1], [], []>} : vector<2x128xf32>, vector<128x128xf32>, vector<2x128xf32> -> vector<2x128xf32>
    %cst_52 = arith.constant dense<0.000000e+00> : vector<2xf32>
    %137 = vector.multi_reduction <add>, %136, %cst_52 [1] : vector<2x128xf32> to vector<2xf32>
    %138 = vector.shape_cast %137 : vector<2xf32> to vector<2x1xf32>
    %cst_53 = arith.constant 3.125000e-02 : f32
    %139 = vector.broadcast %cst_53 : f32 to vector<2x1xf32>
    %140 = arith.mulf %138, %139 : vector<2x1xf32>
    %141 = vector.broadcast %140 : vector<2x1xf32> to vector<2x128xf32>
    %142 = arith.subf %136, %141 : vector<2x128xf32>
    %143 = arith.mulf %142, %142 : vector<2x128xf32>
    %cst_54 = arith.constant dense<0.000000e+00> : vector<2xf32>
    %144 = vector.multi_reduction <add>, %143, %cst_54 [1] : vector<2x128xf32> to vector<2xf32>
    %145 = vector.shape_cast %144 : vector<2xf32> to vector<2x1xf32>
    %cst_55 = arith.constant 3.125000e-02 : f32
    %146 = vector.broadcast %cst_55 : f32 to vector<2x1xf32>
    %147 = arith.mulf %145, %146 : vector<2x1xf32>
    %148 = arith.mulf %140, %140 : vector<2x1xf32>
    %cst_56 = arith.constant 3.000000e+00 : f32
    %149 = vector.broadcast %cst_56 : f32 to vector<2x1xf32>
    %150 = arith.mulf %149, %148 : vector<2x1xf32>
    %151 = arith.subf %147, %150 : vector<2x1xf32>
    %cst_57 = arith.constant 9.99999997E-7 : f32
    %152 = vector.broadcast %cst_57 : f32 to vector<2x1xf32>
    %153 = arith.addf %151, %152 : vector<2x1xf32>
    %154 = math.rsqrt %153 : vector<2x1xf32>
    %155 = vector.broadcast %154 : vector<2x1xf32> to vector<2x128xf32>
    %156 = arith.mulf %142, %155 : vector<2x128xf32>
    %c0_58 = arith.constant 0 : index
    %c0_59 = arith.constant 0 : index
    %157 = vector.load %arg14[%c0_58, %c0_59] : memref<1x128xf32, #tpu.memory_space<vmem>>, vector<1x128xf32>
    %158 = vector.broadcast %157 : vector<1x128xf32> to vector<2x128xf32>
    %159 = arith.mulf %156, %158 : vector<2x128xf32>
    %c0_60 = arith.constant 0 : index
    %c0_61 = arith.constant 0 : index
    %160 = vector.load %arg15[%c0_60, %c0_61] : memref<1x128xf32, #tpu.memory_space<vmem>>, vector<1x128xf32>
    %161 = vector.broadcast %160 : vector<1x128xf32> to vector<2x128xf32>
    %162 = arith.addf %159, %161 : vector<2x128xf32>
    %163 = arith.truncf %162 : vector<2x128xf32> to vector<2x128xbf16>
    %c0_62 = arith.constant 0 : index
    %c0_63 = arith.constant 0 : index
    %164 = vector.load %arg16[%c0_62, %c0_63] : memref<128x512xbf16, #tpu.memory_space<vmem>>, vector<128x512xbf16>
    %cst_64 = arith.constant dense<0.000000e+00> : vector<2x512xf32>
    %165 = tpu.matmul %163, %164, %cst_64 {dimension_numbers = #tpu.dot_dimension_numbers<[1], [0], [0], [1], [0, 0, 1, 1], [], []>} : vector<2x128xbf16>, vector<128x512xbf16>, vector<2x512xf32> -> vector<2x512xf32>
    %c0_65 = arith.constant 0 : index
    %c0_66 = arith.constant 0 : index
    %166 = vector.load %arg17[%c0_65, %c0_66] : memref<1x512xf32, #tpu.memory_space<vmem>>, vector<1x512xf32>
    %167 = vector.broadcast %166 : vector<1x512xf32> to vector<2x512xf32>
    %168 = arith.addf %165, %167 : vector<2x512xf32>
    %c0_67 = arith.constant 0 : index
    %c0_68 = arith.constant 0 : index
    %169 = vector.load %arg18[%c0_67, %c0_68] : memref<2x512xf32, #tpu.memory_space<vmem>>, vector<2x512xf32>
    tpu.vector_store %arg18[%c0_67, %c0_68], %168 {strides = array<i32>} : memref<2x512xf32, #tpu.memory_space<vmem>>, vector<2x512xf32>,
    return
  }
  func.func @transform_0(%arg0: i32) -> (i32, i32) {
    %c0_i32 = arith.constant 0 : i32
    %c0_i32_0 = arith.constant 0 : i32
    return %arg0, %c0_i32 : i32, i32
  }
  func.func @transform_1(%arg0: i32) -> (i32, i32) {
    %c0_i32 = arith.constant 0 : i32
    %c0_i32_0 = arith.constant 0 : i32
    %c0_i32_1 = arith.constant 0 : i32
    return %c0_i32, %c0_i32_0 : i32, i32
  }
  func.func @transform_2(%arg0: i32) -> (i32, i32) {
    %c0_i32 = arith.constant 0 : i32
    %c0_i32_0 = arith.constant 0 : i32
    %c0_i32_1 = arith.constant 0 : i32
    return %c0_i32, %c0_i32_0 : i32, i32
  }
  func.func @transform_3(%arg0: i32) -> (i32, i32) {
    %c0_i32 = arith.constant 0 : i32
    %c0_i32_0 = arith.constant 0 : i32
    %c0_i32_1 = arith.constant 0 : i32
    return %c0_i32, %c0_i32_0 : i32, i32
  }
  func.func @transform_4(%arg0: i32) -> (i32, i32) {
    %c0_i32 = arith.constant 0 : i32
    %c0_i32_0 = arith.constant 0 : i32
    %c0_i32_1 = arith.constant 0 : i32
    return %c0_i32, %c0_i32_0 : i32, i32
  }
  func.func @transform_5(%arg0: i32) -> (i32, i32) {
    %c0_i32 = arith.constant 0 : i32
    %c0_i32_0 = arith.constant 0 : i32
    %c0_i32_1 = arith.constant 0 : i32
    return %c0_i32, %c0_i32_0 : i32, i32
  }
  func.func @transform_6(%arg0: i32) -> (i32, i32) {
    %c0_i32 = arith.constant 0 : i32
    %c0_i32_0 = arith.constant 0 : i32
    %c0_i32_1 = arith.constant 0 : i32
    return %c0_i32, %c0_i32_0 : i32, i32
  }
  func.func @transform_7(%arg0: i32) -> (i32, i32) {
    %c0_i32 = arith.constant 0 : i32
    %c0_i32_0 = arith.constant 0 : i32
    %c0_i32_1 = arith.constant 0 : i32
    return %c0_i32, %c0_i32_0 : i32, i32
  }
  func.func @transform_8(%arg0: i32) -> (i32, i32) {
    %c0_i32 = arith.constant 0 : i32
    %c0_i32_0 = arith.constant 0 : i32
    %c0_i32_1 = arith.constant 0 : i32
    return %c0_i32, %c0_i32_0 : i32, i32
  }
  func.func @transform_9(%arg0: i32) -> (i32, i32) {
    %c0_i32 = arith.constant 0 : i32
    %c0_i32_0 = arith.constant 0 : i32
    %c0_i32_1 = arith.constant 0 : i32
    return %c0_i32, %c0_i32_0 : i32, i32
  }
  func.func @transform_10(%arg0: i32) -> (i32, i32) {
    %c0_i32 = arith.constant 0 : i32
    %c0_i32_0 = arith.constant 0 : i32
    %c0_i32_1 = arith.constant 0 : i32
    return %c0_i32, %c0_i32_0 : i32, i32
  }
  func.func @transform_11(%arg0: i32) -> (i32, i32) {
    %c0_i32 = arith.constant 0 : i32
    %c0_i32_0 = arith.constant 0 : i32
    %c0_i32_1 = arith.constant 0 : i32
    return %c0_i32, %c0_i32_0 : i32, i32
  }
  func.func @transform_12(%arg0: i32) -> (i32, i32) {
    %c0_i32 = arith.constant 0 : i32
    %c0_i32_0 = arith.constant 0 : i32
    %c0_i32_1 = arith.constant 0 : i32
    return %c0_i32, %c0_i32_0 : i32, i32
  }
  func.func @transform_13(%arg0: i32) -> (i32, i32) {
    %c0_i32 = arith.constant 0 : i32
    %c0_i32_0 = arith.constant 0 : i32
    %c0_i32_1 = arith.constant 0 : i32
    return %c0_i32, %c0_i32_0 : i32, i32
  }
  func.func @transform_14(%arg0: i32) -> (i32, i32) {
    %c0_i32 = arith.constant 0 : i32
    %c0_i32_0 = arith.constant 0 : i32
    %c0_i32_1 = arith.constant 0 : i32
    return %c0_i32, %c0_i32_0 : i32, i32
  }
  func.func @transform_15(%arg0: i32) -> (i32, i32) {
    %c0_i32 = arith.constant 0 : i32
    %c0_i32_0 = arith.constant 0 : i32
    %c0_i32_1 = arith.constant 0 : i32
    return %c0_i32, %c0_i32_0 : i32, i32
  }
  func.func @transform_16(%arg0: i32) -> (i32, i32) {
    %c0_i32 = arith.constant 0 : i32
    %c0_i32_0 = arith.constant 0 : i32
    %c0_i32_1 = arith.constant 0 : i32
    return %c0_i32, %c0_i32_0 : i32, i32
  }
  func.func @transform_17(%arg0: i32) -> (i32, i32) {
    %c0_i32 = arith.constant 0 : i32
    %c0_i32_0 = arith.constant 0 : i32
    return %arg0, %c0_i32 : i32, i32
  }
}

</mosaic_0001>

<bundles_post_ra>
// kernel: timmfr_forward.1
= control target key start
LH: loop header
LB: loop body
LE: loop exit
PB: predicated region body
PF: predicated region fallthrough
CT: control target
= control target key end

     0   :  { %s4948_s0 = inlined_call_operand.vmem [shape: bf16[128,128], index: 0, kind: input, shape index: {}]   ;;  %s4949_s1 = inlined_call_operand.vmem [shape: f32[128,9], index: 1, kind: input, shape index: {}]   ;;  %s4950_s2 = inlined_call_operand.vmem [shape: f32[2,128], index: 2, kind: input, shape index: {}]   ;;  %s4951_s3 = inlined_call_operand.vmem [shape: bf16[128,128], index: 3, kind: input, shape index: {}]   ;;  %s4952_s4 = inlined_call_operand.vmem [shape: f32[1,128], index: 4, kind: input, shape index: {}]   ;;  %s4953_s5 = inlined_call_operand.vmem [shape: f32[9,128], index: 5, kind: input, shape index: {}]   ;;  %s4954_s6 = inlined_call_operand.vmem [shape: f32[1,128], index: 6, kind: input, shape index: {}]   ;;  %s4955_s7 = inlined_call_operand.vmem [shape: f32[1,128], index: 7, kind: input, shape index: {}]   ;;  %s4956_s8 = inlined_call_operand.vmem [shape: f32[1,128], index: 8, kind: input, shape index: {}]   ;;  %s4957_s9 = inlined_call_operand.vmem [shape: bf16[128,128], index: 9, kind: input, shape index: {}]   ;;  %s4958_s10 = inlined_call_operand.vmem [shape: f32[1,128], index: 10, kind: input, shape index: {}]   ;;  %s4959_s11 = inlined_call_operand.vmem [shape: bf16[128,128], index: 11, kind: input, shape index: {}]   ;;  %s4960_s12 = inlined_call_operand.vmem [shape: f32[1,128], index: 12, kind: input, shape index: {}]   ;;  %s4961_s13 = inlined_call_operand.vmem [shape: f32[1,128], index: 13, kind: input, shape index: {}]   ;;  %s4962_s14 = inlined_call_operand.vmem [shape: f32[1,128], index: 14, kind: input, shape index: {}]   ;;  %s4963_s15 = inlined_call_operand.vmem [shape: bf16[128,512], index: 15, kind: input, shape index: {}]   ;;  %s4964_s16 = inlined_call_operand.vmem [shape: f32[1,512], index: 16, kind: input, shape index: {}]   ;;  %s4965_s17 = inlined_call_operand.hbm [shape: f32[2,512], index: 17, kind: output, shape index: {}]  }
   0x1   :  { %5041 = sst [smem:[#allocation55_spill]] %s4948_s0 }
   0x2   :  { %5042 = sst [smem:[#allocation56_spill]] %s4949_s1 }
   0x3   :  { %s5043_s26 = sld [smem:[#allocation56_spill]]  ;;  %v3009_v1 = vld [vmem:[%s4951_s3 + $0x38] sm:$0xff]   ;;  %v4981_v2 = vmov 8   ;;  %v4978_v3 = vmov 0   ;;  %v3010_v4 = vld [vmem:[%s4951_s3 + $0x30] sm:$0xff]   ;;  %v3011_v7 = vld [vmem:[%s4951_s3 + $0x28] sm:$0xff]  }
   0x4   :  { %2963 = vset.pattern.permute.xlu0 %v4981_v2  ;;  %2944 = vset.pattern.permute.xlu1 %v4978_v3  ;;  %v3012_v10 = vld [vmem:[%s4951_s3 + $0x20] sm:$0xff]   ;;  %v4974_v11 = vmov 1   ;;  %s5044_s30 = sld [smem:[#allocation55_spill]]  ;;  %v3204_v13 = vmov 0.0   ;;  %v3013_v14 = vld [vmem:[%s4951_s3 + $0x18] sm:$0xff]   ;;  %v3014_v16 = vld [vmem:[%s4951_s3 + $0x10] sm:$0xff]  }
   0x5   :  { %2801 = vmatprep.subr.bf16.mxu0 %v3009_v1  ;;  %290 = vst [vmem:[#allocation2] sm:$0xff] %v3204_v13  ;;  %291 = vst [vmem:[#allocation2 + $0x8] sm:$0xff] %v3204_v13  ;;  %v4970_v17 = vmov 2   ;;  %v3015_v18 = vld [vmem:[%s4951_s3 + $0x8] sm:$0xff]   ;;  %v3016_v20 = vld [vmem:[%s4951_s3] sm:$0xff]   ;;  %v4983_v25 = vmov 3  }
   0x6   :  { %2802 = vmatpush3.bf16.msra.mxu0 %v3009_v1  ;;  %292 = vst [vmem:[#allocation2 + $0x90] sm:$0xff] %v3204_v13  ;;  %293 = vst [vmem:[#allocation2 + $0x98] sm:$0xff] %v3204_v13 }
   0x7   :  { %2803 = vmatprep.subr.bf16.mxu0 %v3010_v4 }
   0x9   :  { %v3306_v0 = vld [vmem:[%s5043_s26 + $0x10] sm:$0xff]  ;;  %v3326_v6 = vld [vmem:[%s5043_s26 + $0x18] sm:$0xff]  ;;  %v3336_v8 = vld [vmem:[%s5043_s26 + $0x8] sm:$0xff] }
   0xa   :  { %1333 = vperm.xlu0 %2963, %v3306_v0   ;;  %396 = vperm.xlu1 %2944, %v3306_v0   ;;  %v3321_v5 = vld [vmem:[%s5043_s26 + $0x30] sm:$0xff]  ;;  %v3341_v9 = vld [vmem:[%s5043_s26] sm:$0xff]  ;;  %v3361_v15 = vld [vmem:[%s5043_s26 + $0x28] sm:$0xff] }
   0xb   :  { %2804 = vmatpush3.bf16.msra.mxu0 %v3010_v4  ;;  %v3017_v12 = vld [vmem:[%s5044_s30] sm:$0xff]   ;;  %v3375_v19 = vld [vmem:[%s5043_s26 + $0x48] sm:$0xff]  ;;  %v3385_v21 = vld [vmem:[%s5043_s26 + $0x50] sm:$0xff] }
   0xc   :  { %2805 = vmatprep.subr.bf16.mxu0 %v3011_v7  ;;  %2817 = vmatprep.mubr.bf16.mxu0 %v3017_v12  ;;  %5045 = vst [vmem:[#allocation6_spill] sm:$0xff] %v3375_v19  ;;  %v3018_v22 = vld [vmem:[%s5044_s30 + $0x8] sm:$0xff]   ;;  %v3019_v24 = vld [vmem:[%s5044_s30 + $0x10] sm:$0xff]   ;;  %v3413_v27 = vld [vmem:[%s5043_s26 + $0x20] sm:$0xff] }
   0xd   :  { %v3395_v23 = vld [vmem:[%s5043_s26 + $0x68] sm:$0xff]  ;;  %v3406_v26 = vld [vmem:[%s5043_s26 + $0x70] sm:$0xff]  ;;  %v3020_v28 = vld [vmem:[%s5044_s30 + $0x18] sm:$0xff]  }
   0xe   :  { %1349 = vperm.xlu0 %2963, %v3321_v5   ;;  %401 = vperm.xlu1 %2944, %v3326_v6   ;;  %v3021_v29 = vld [vmem:[%s5044_s30 + $0x20] sm:$0xff]  }
   0xf   :  { %2806 = vmatpush3.bf16.msra.mxu0 %v3011_v7 }
  0x10   :  { %2807 = vmatprep.subr.bf16.mxu0 %v3012_v10 }
  0x12   :  { %2980 = vset.pattern.permute.xlu0 %v4978_v3  ;;  %2945 = vset.pattern.permute.xlu1 %v4974_v11 }
  0x13   :  { %537 = vperm.xlu1 %2945, %v3336_v8   ;;  %386 = vperm.xlu0 %2980, %v3341_v9  }
  0x14   :  { %2808 = vmatpush3.bf16.msra.mxu0 %v3012_v10 }
  0x15   :  { %2809 = vmatprep.subr.bf16.mxu0 %v3013_v14 }
  0x17   :  { %541 = vperm.xlu1 %2945, %v3306_v0   ;;  %391 = vperm.xlu0 %2980, %v3336_v8  }
  0x18   :  { %2810 = vmatpush3.bf16.msra.mxu0 %v3013_v14 }
  0x19   :  { %2811 = vmatprep.subr.bf16.mxu0 %v3014_v16 }
  0x1b   :  { %2946 = vset.pattern.permute.xlu1 %v4970_v17  ;;  %411 = vperm.xlu0 %2980, %v3361_v15  }
  0x1c   :  { %665 = vperm.xlu1 %2946, %v3341_v9   ;;  %2812 = vmatpush3.bf16.msra.mxu0 %v3014_v16 }
  0x1d   :  { %2813 = vmatprep.subr.bf16.mxu0 %v3015_v18 }
  0x1f   :  { %416 = vperm.xlu0 %2980, %v3321_v5  }
  0x20   :  { %673 = vperm.xlu1 %2946, %v3306_v0   ;;  %2814 = vmatpush3.bf16.msra.mxu0 %v3015_v18 }
  0x21   :  { %2815 = vmatprep.subr.bf16.mxu0 %v3016_v20 }
  0x23   :  { %431 = vperm.xlu0 %2980, %v3375_v19  }
  0x24   :  { %677 = vperm.xlu1 %2946, %v3326_v6   ;;  %2816 = vmatpush3.bf16.msra.mxu0 %v3016_v20 }
  0x27   :  { %436 = vperm.xlu0 %2980, %v3385_v21   ;;  %2818 = vmatmul.mubr.bf16.vlgmr.msra.gmra.mxu0 %v3018_v22 }
  0x28   :  { %2947 = vset.pattern.permute.xlu1 %v4983_v25  ;;  %2821 = vmatprep.mubr.bf16.mxu0 %v3019_v24 }
  0x29   :  { %801 = vperm.xlu1 %2947, %v3336_v8  }
  0x2b   :  { %451 = vperm.xlu0 %2980, %v3395_v23  }
  0x2d   :  { %805 = vperm.xlu1 %2947, %v3306_v0  }
  0x2f   :  { %456 = vperm.xlu0 %2980, %v3406_v26   ;;  %2822 = vmatmul.mubr.bf16.gmra.mxu0 %v3020_v28 }
  0x31   :  { %2948 = vset.pattern.permute.xlu1 %v4978_v3 }
  0x32   :  { %406 = vperm.xlu1 %2948, %v3413_v27  }
  0x33   :  { %2984 = vset.pattern.permute.xlu0 %v4974_v11 }
  0x34   :  { %22 = vsyncpa [#allocation4], 0  ;;  %533 = vperm.xlu0 %2984, %v3341_v9   ;;  %2825 = vmatprep.mubr.bf16.mxu0 %v3021_v29  ;;  %v4976_v30 = vmov 5   ;;  %v3022_v31 = vld [vmem:[%s5044_s30 + $0x28] sm:$0xff]   ;;  %v3023_v32 = vld [vmem:[%s5044_s30 + $0x30] sm:$0xff]   ;;  %v4972_v35 = vmov 6   ;;  %v328_v24 = vlaneseq }
  0x35   :  { %v3440_v33 = vld [vmem:[%s5043_s26 + $0x38] sm:$0xff]  ;;  %v4968_v36 = vmov 7   ;;  %v3513_v43 = vld [vmem:[%s5043_s26 + $0x40] sm:$0xff]  ;;  %vm3210_vm0 = vmmov 0   ;;  %vm2296_vm1 = vcmask 1041408  }
  0x36   :  { %2949 = vset.pattern.permute.xlu1 %v4976_v30  ;;  %v3024_v34 = vld [vmem:[%s5044_s30 + $0x38] sm:$0xff]   ;;  %5049 = vst [vmem:[#allocation10_spill] sm:$0xff] %v3513_v43  ;;  %v3571_v59 = vld [vmem:[%s5043_s26 + $0x60] sm:$0xff]  ;;  %v3655_v29 = vshrl.u32 %v328_v24, 7 }
  0x37   :  { %929 = vperm.xlu1 %2949, %v3341_v9   ;;  %2826 = vmatmul.mubr.bf16.gmra.mxu0 %v3022_v31  ;;  %v3539_v50 = vld [vmem:[%s5043_s26 + $0x58] sm:$0xff]  ;;  %v348_v24 = vld [vmem:[#allocation2 + $0x7] sm:$0xff] }
  0x38   :  { %545 = vperm.xlu0 %2984, %v3326_v6   ;;  %2829 = vmatprep.mubr.bf16.mxu0 %v3023_v32  ;;  %v3581_v61 = vld [vmem:[%s5043_s26 + $0x78] sm:$0xff]  ;;  %5070 = vst [vmem:[#allocation31_spill] sm:$0xff] %v3655_v29  ;;  %v4980_v32 = vsub.s32 0, %v3655_v29 }
  0x3b   :  { %933 = vperm.xlu1 %2949, %v3336_v8  }
  0x3c   :  { %553 = vperm.xlu0 %2984, %v3361_v15  }
  0x3f   :  { %2950 = vset.pattern.permute.xlu1 %v4978_v3  ;;  %2830 = vmatmul.mubr.bf16.gmra.mxu0 %v3024_v34 }
  0x40   :  { %557 = vperm.xlu0 %2984, %v3321_v5   ;;  %421 = vperm.xlu1 %2950, %v3440_v33  }
  0x44   :  { %569 = vperm.xlu0 %2984, %v3375_v19   ;;  %2951 = vset.pattern.permute.xlu1 %v4976_v30 }
  0x45   :  { %941 = vperm.xlu1 %2951, %v3326_v6  }
  0x48   :  { %573 = vperm.xlu0 %2984, %v3385_v21  }
  0x49   :  { %2952 = vset.pattern.permute.xlu1 %v4974_v11 }
  0x4a   :  { %549 = vperm.xlu1 %2952, %v3413_v27  }
  0x4c   :  { %585 = vperm.xlu0 %2984, %v3395_v23  }
  0x4e   :  { %2953 = vset.pattern.permute.xlu1 %v4972_v35 }
  0x4f   :  { %1061 = vperm.xlu1 %2953, %v3341_v9  }
  0x50   :  { %589 = vperm.xlu0 %2984, %v3406_v26  }
  0x53   :  { %1065 = vperm.xlu1 %2953, %v3336_v8  }
  0x54   :  { %2989 = vset.pattern.permute.xlu0 %v4970_v17 }
  0x55   :  { %669 = vperm.xlu0 %2989, %v3336_v8  }
  0x57   :  { %2954 = vset.pattern.permute.xlu1 %v4974_v11 }
  0x58   :  { %561 = vperm.xlu1 %2954, %v3440_v33  }
  0x59   :  { %685 = vperm.xlu0 %2989, %v3361_v15  }
  0x5c   :  { %2955 = vset.pattern.permute.xlu1 %v4972_v35 }
  0x5d   :  { %689 = vperm.xlu0 %2989, %v3321_v5   ;;  %1073 = vperm.xlu1 %2955, %v3326_v6  }
  0x61   :  { %701 = vperm.xlu0 %2989, %v3375_v19   ;;  %2956 = vset.pattern.permute.xlu1 %v4970_v17 }
  0x62   :  { %681 = vperm.xlu1 %2956, %v3413_v27  }
  0x65   :  { %705 = vperm.xlu0 %2989, %v3385_v21  }
  0x66   :  { %2957 = vset.pattern.permute.xlu1 %v4968_v36 }
  0x67   :  { %1193 = vperm.xlu1 %2957, %v3341_v9  }
  0x69   :  { %717 = vperm.xlu0 %2989, %v3395_v23  }
  0x6b   :  { %1197 = vperm.xlu1 %2957, %v3336_v8  }
  0x6d   :  { %721 = vperm.xlu0 %2989, %v3406_v26  }
  0x6f   :  { %2958 = vset.pattern.permute.xlu1 %v4970_v17 }
  0x70   :  { %693 = vperm.xlu1 %2958, %v3440_v33  }
  0x71   :  { %2994 = vset.pattern.permute.xlu0 %v4983_v25 }
  0x72   :  { %797 = vperm.xlu0 %2994, %v3341_v9  }
  0x74   :  { %2959 = vset.pattern.permute.xlu1 %v4968_v36 }
  0x75   :  { %1205 = vperm.xlu1 %2959, %v3326_v6  }
  0x76   :  { %809 = vperm.xlu0 %2994, %v3326_v6  }
  0x79   :  { %2960 = vset.pattern.permute.xlu1 %v4983_v25 }
  0x7a   :  { %817 = vperm.xlu0 %2994, %v3361_v15   ;;  %813 = vperm.xlu1 %2960, %v3413_v27  }
  0x7e   :  { %821 = vperm.xlu0 %2994, %v3321_v5   ;;  %2961 = vset.pattern.permute.xlu1 %v4981_v2 }
  0x7f   :  { %1325 = vperm.xlu1 %2961, %v3341_v9  }
  0x82   :  { %833 = vperm.xlu0 %2994, %v3375_v19  }
  0x83   :  { %1329 = vperm.xlu1 %2961, %v3336_v8  }
  0x85   :  { %v3491_v37 = vpop.permute.xlu1 %396  ;;  %v3493_v38 = vpop.permute.xlu0 %1333 }
  0x86   :  { %5046 = vst [vmem:[#allocation7_spill] sm:$0xff] %v3491_v37  ;;  %5047 = vst [vmem:[#allocation8_spill] sm:$0xff] %v3493_v38  ;;  %837 = vperm.xlu0 %2994, %v3385_v21   ;;  %v5079_v38 = vmov 0  }
  0x87   :  { %2962 = vset.pattern.permute.xlu1 %v4983_v25 }
  0x88   :  { %825 = vperm.xlu1 %2962, %v3440_v33  }
  0x89   :  { %v3498_v39 = vpop.permute.xlu1 %401  ;;  %v3500_v40 = vpop.permute.xlu0 %1349 }
  0x8a   :  { %5048 = vst [vmem:[#allocation9_spill] sm:$0xff] %v3500_v40  ;;  %849 = vperm.xlu0 %2994, %v3395_v23  }
  0x8c   :  { %2964 = vset.pattern.permute.xlu1 %v4981_v2 }
  0x8d   :  { %1337 = vperm.xlu1 %2964, %v3326_v6  }
  0x8e   :  { %v3505_v41 = vpop.permute.xlu1 %537  ;;  %853 = vperm.xlu0 %2994, %v3406_v26   ;;  %v3508_v42 = vpop.permute.xlu0 %386 }
  0x91   :  { %2965 = vset.pattern.permute.xlu1 %v4978_v3 }
  0x92   :  { %v3516_v44 = vpop.permute.xlu1 %541  ;;  %2999 = vset.pattern.permute.xlu0 %v4976_v30  ;;  %426 = vperm.xlu1 %2965, %v3513_v43   ;;  %v3520_v45 = vpop.permute.xlu0 %391 }
  0x93   :  { %5050 = vst [vmem:[#allocation11_spill] sm:$0xff] %v3516_v44  ;;  %937 = vperm.xlu0 %2999, %v3306_v0  }
  0x96   :  { %2966 = vset.pattern.permute.xlu1 %v4976_v30  ;;  %v3524_v46 = vpop.permute.xlu0 %411 }
  0x97   :  { %953 = vperm.xlu0 %2999, %v3321_v5   ;;  %945 = vperm.xlu1 %2966, %v3413_v27   ;;  %v3528_v47 = vpop.permute.xlu1 %665 }
  0x9a   :  { %v3530_v48 = vpop.permute.xlu0 %416 }
  0x9b   :  { %969 = vperm.xlu0 %2999, %v3385_v21   ;;  %949 = vperm.xlu1 %2966, %v3361_v15   ;;  %v3534_v49 = vpop.permute.xlu1 %673 }
  0x9c   :  { %5051 = vst [vmem:[#allocation12_spill] sm:$0xff] %v3534_v49  ;;  %v5082_v49 = vsub.s32 3, %v3655_v29 }
  0x9e   :  { %v3541_v51 = vpop.permute.xlu0 %431 }
  0x9f   :  { %5052 = vst [vmem:[#allocation13_spill] sm:$0xff] %v3541_v51  ;;  %981 = vperm.xlu0 %2999, %v3395_v23   ;;  %2967 = vset.pattern.permute.xlu1 %v4978_v3  ;;  %v3545_v52 = vpop.permute.xlu1 %677 }
  0xa0   :  { %441 = vperm.xlu1 %2967, %v3539_v50  }
  0xa2   :  { %v3548_v53 = vpop.permute.xlu0 %436 }
  0xa3   :  { %5053 = vst [vmem:[#allocation14_spill] sm:$0xff] %v3548_v53  ;;  %3003 = vset.pattern.permute.xlu0 %v4972_v35 }
  0xa4   :  { %1069 = vperm.xlu0 %3003, %v3306_v0   ;;  %2968 = vset.pattern.permute.xlu1 %v4976_v30  ;;  %v3553_v54 = vpop.permute.xlu1 %801  ;;  %v3681_v30 = vld [vmem:[%s4952_s4] ss:$0 sm:$0xff] }
  0xa5   :  { %957 = vperm.xlu1 %2968, %v3440_v33   ;;  %5073 = vst [vmem:[#allocation34_spill] sm:$0xff] %v3681_v30 }
  0xa6   :  { %v3556_v55 = vpop.permute.xlu0 %451 }
  0xa7   :  { %5054 = vst [vmem:[#allocation15_spill] sm:$0xff] %v3556_v55  ;;  %v910_v55 = vsub.s32 5, %v3655_v29 }
  0xa8   :  { %1085 = vperm.xlu0 %3003, %v3321_v5   ;;  %v3559_v56 = vpop.permute.xlu1 %805 }
  0xa9   :  { %5055 = vst [vmem:[#allocation16_spill] sm:$0xff] %v3559_v56  ;;  %2969 = vset.pattern.permute.xlu1 %v4974_v11 }
  0xaa   :  { %565 = vperm.xlu1 %2969, %v3513_v43   ;;  %v3563_v57 = vpop.permute.xlu0 %456 }
  0xab   :  { %5056 = vst [vmem:[#allocation17_spill] sm:$0xff] %v3563_v57 }
  0xac   :  { %1101 = vperm.xlu0 %3003, %v3385_v21  }
  0xad   :  { %v3566_v58 = vpop.permute.xlu1 %406 }
  0xae   :  { %5057 = vst [vmem:[#allocation18_spill] sm:$0xff] %v3566_v58  ;;  %2970 = vset.pattern.permute.xlu1 %v4972_v35 }
  0xaf   :  { %1077 = vperm.xlu1 %2970, %v3413_v27   ;;  %v3575_v60 = vpop.permute.xlu0 %533 }
  0xb0   :  { %1109 = vperm.xlu0 %3003, %v3571_v59  }
  0xb2   :  { %v3583_v62 = vpop.permute.xlu1 %929 }
  0xb3   :  { %1081 = vperm.xlu1 %2970, %v3361_v15   ;;  %v3586_v63 = vpop.permute.xlu0 %545 }
  0xb4   :  { %1121 = vperm.xlu0 %3003, %v3581_v61  }
  0xb6   :  { %v3589_v1 = vpop.permute.xlu1 %933 }
  0xb7   :  { %2971 = vset.pattern.permute.xlu1 %v4974_v11  ;;  %v3592_v4 = vpop.permute.xlu0 %553  ;;  %v4985_v11 = vsub.s32 1, %v3655_v29 }
  0xb8   :  { %5058 = vst [vmem:[#allocation19_spill] sm:$0xff] %v3592_v4  ;;  %3005 = vset.pattern.permute.xlu0 %v4968_v36  ;;  %577 = vperm.xlu1 %2971, %v3539_v50  }
  0xb9   :  { %1201 = vperm.xlu0 %3005, %v3306_v0  }
  0xbb   :  { %v3597_v6 = vpop.permute.xlu1 %421  ;;  %v3599_v7 = vpop.permute.xlu0 %557 }
  0xbc   :  { %2972 = vset.pattern.permute.xlu1 %v4972_v35 }
  0xbd   :  { %1217 = vperm.xlu0 %3005, %v3321_v5   ;;  %1089 = vperm.xlu1 %2972, %v3440_v33  }
  0xbf   :  { %v3604_v8 = vpop.permute.xlu0 %569 }
  0xc0   :  { %5059 = vst [vmem:[#allocation20_spill] sm:$0xff] %v3604_v8  ;;  %v3606_v9 = vpop.permute.xlu1 %941  ;;  %v5081_v8 = vsub.s32 2, %v3655_v29 }
  0xc1   :  { %5060 = vst [vmem:[#allocation21_spill] sm:$0xff] %v3606_v9  ;;  %1233 = vperm.xlu0 %3005, %v3385_v21   ;;  %2973 = vset.pattern.permute.xlu1 %v4970_v17 }
  0xc2   :  { %697 = vperm.xlu1 %2973, %v3513_v43  }
  0xc3   :  { %v3611_v0 = vpop.permute.xlu0 %573 }
  0xc4   :  { %5061 = vst [vmem:[#allocation22_spill] sm:$0xff] %v3611_v0 }
  0xc5   :  { %1245 = vperm.xlu0 %3005, %v3395_v23   ;;  %v3614_v10 = vpop.permute.xlu1 %549 }
  0xc6   :  { %5062 = vst [vmem:[#allocation23_spill] sm:$0xff] %v3614_v10  ;;  %2974 = vset.pattern.permute.xlu1 %v4968_v36 }
  0xc7   :  { %1209 = vperm.xlu1 %2974, %v3413_v27   ;;  %v3618_v5 = vpop.permute.xlu0 %585 }
  0xc8   :  { %5063 = vst [vmem:[#allocation24_spill] sm:$0xff] %v3618_v5 }
  0xc9   :  { %3007 = vset.pattern.permute.xlu0 %v4981_v2 }
  0xca   :  { %1365 = vperm.xlu0 %3007, %v3385_v21   ;;  %v3622_v12 = vpop.permute.xlu1 %1061 }
  0xcb   :  { %1213 = vperm.xlu1 %2974, %v3361_v15   ;;  %v3625_v13 = vpop.permute.xlu0 %589 }
  0xcc   :  { %5064 = vst [vmem:[#allocation25_spill] sm:$0xff] %v3625_v13 }
  0xce   :  { %v3627_v14 = vpop.permute.xlu1 %1065  ;;  %1373 = vperm.xlu0 %3007, %v3571_v59  }
  0xcf   :  { %2975 = vset.pattern.permute.xlu1 %v4970_v17 }
  0xd0   :  { %709 = vperm.xlu1 %2975, %v3539_v50   ;;  %v3632_v16 = vpop.permute.xlu0 %669 }
  0xd2   :  { %1385 = vperm.xlu0 %3007, %v3581_v61  }
  0xd3   :  { %v3635_v18 = vpop.permute.xlu1 %561 }
  0xd4   :  { %2976 = vset.pattern.permute.xlu1 %v4968_v36  ;;  %v3638_v20 = vpop.permute.xlu0 %685  ;;  %v310_v36 = vld [vmem:[%s4953_s5] sm:$0xff] }
  0xd5   :  { %5065 = vst [vmem:[#allocation26_spill] sm:$0xff] %v3638_v20  ;;  %1221 = vperm.xlu1 %2976, %v3440_v33   ;;  %v3694_v10 = vrot.slane %v310_v36, %v4985_v11  ;;  %v3721_v56 = vrot.slane %v310_v36, %v5081_v8  ;;  %v3725_v51 = vrot.slane %v310_v36, %v5082_v49  ;;  %v5087_v49 = vmov 5  }
  0xd8   :  { %v3641_v21 = vpop.permute.xlu1 %1073  ;;  %v3643_v22 = vpop.permute.xlu0 %689 }
  0xd9   :  { %5066 = vst [vmem:[#allocation27_spill] sm:$0xff] %v3641_v21  ;;  %2977 = vset.pattern.permute.xlu1 %v4983_v25 }
  0xda   :  { %829 = vperm.xlu1 %2977, %v3513_v43  }
  0xdc   :  { %v3647_v23 = vpop.permute.xlu0 %701 }
  0xdd   :  { %5067 = vst [vmem:[#allocation28_spill] sm:$0xff] %v3647_v23  ;;  %v3649_v26 = vpop.permute.xlu1 %681  ;;  %v1042_v23 = vsub.s32 6, %v3655_v29 }
  0xde   :  { %5068 = vst [vmem:[#allocation29_spill] sm:$0xff] %v3649_v26  ;;  %2978 = vset.pattern.permute.xlu1 %v4981_v2  ;;  %v5076_v26 = vmov 8  }
  0xdf   :  { %1341 = vperm.xlu1 %2978, %v3413_v27   ;;  %v3670_v27 = vrot.slane %v310_v36, %v4980_v32 }
  0xe0   :  { %v3653_v28 = vpop.permute.xlu0 %705 }
  0xe1   :  { %5069 = vst [vmem:[#allocation30_spill] sm:$0xff] %v3653_v28  ;;  %v368_v3 = vmul.f32 %v3670_v27, %v348_v24  ;;  %v3748_v28 = vrot.slane %v310_v36, %v1042_v23 }
  0xe2   :  { %v3657_v31 = vpop.permute.xlu1 %1193 }
  0xe3   :  { %1345 = vperm.xlu1 %2978, %v3361_v15   ;;  %v330_v15 = vsub.s32 4, %v3655_v29 }
  0xe4   :  { %v3661_v34 = vpop.permute.xlu0 %717 }
  0xe5   :  { %5071 = vst [vmem:[#allocation32_spill] sm:$0xff] %v3661_v34  ;;  %v3689_v40 = vrot.slane %v310_v36, %v330_v15 }
  0xe6   :  { %v3666_v17 = vpop.permute.xlu1 %1197 }
  0xe7   :  { %2979 = vset.pattern.permute.xlu1 %v4983_v25  ;;  %v2819_v2 = vpop.f32.mrf.mxu0 }
  0xe8   :  { %841 = vperm.xlu1 %2979, %v3539_v50   ;;  %v3674_v35 = vpop.permute.xlu0 %721  ;;  %v3687_v25 = vadd.f32 %v2819_v2, %v3681_v30  ;;  %v516_v2 = vmul.f32 0.0, %v3694_v10 }
  0xe9   :  { %5072 = vst [vmem:[#allocation33_spill] sm:$0xff] %v3674_v35  ;;  %v227_v58 = vpop.f32.mrf.mxu0  ;;  %v464_v35 = vmul.f32 %v3508_v42, %v368_v3  ;;  %v1174_v3 = vsub.s32 7, %v3655_v29 }
  0xea   :  { %5075 = vst [vmem:[#allocation36_spill] sm:$0xff] %v3687_v25  ;;  %296 = vst [vmem:[#allocation2 + $0x20] sm:$0xff] %v3687_v25  ;;  %v228_v24 = vadd.f32 %v3681_v30, %v227_v58  ;;  %v596_v11 = vmul.f32 %v3575_v60, %v516_v2 }
  0xeb   :  { %v3684_v32 = vpop.permute.xlu1 %693  ;;  %v2820_v15 = vpop.f32.mrf.mxu0  ;;  %v3734_v2 = vrot.slane %v310_v36, %v1174_v3  ;;  %v3746_v3 = vrot.slane %v310_v36, %v910_v55 }
  0xec   :  { %5074 = vst [vmem:[#allocation35_spill] sm:$0xff] %v3684_v32  ;;  %2981 = vset.pattern.permute.xlu1 %v5076_v26  ;;  %294 = vst [vmem:[#allocation2 + $0x10] sm:$0xff] %v228_v24  ;;  %v332_v26 = vmul.f32 %v3689_v40, %v228_v24 }
  0xed   :  { %1353 = vperm.xlu1 %2981, %v3440_v33   ;;  %v798_v34 = vpop.permute.xlu0 %797  ;;  %v3705_v33 = vadd.f32 %v2820_v15, %v3681_v30  ;;  %v230_v58 = vpop.f32.mrf.mxu0  ;;  %v1177_v23 = vmul.f32 %v3734_v2, %v3687_v25 }
  0xee   :  { %v3713_v42 = vadd.f32 %v3681_v30, %v230_v58  ;;  %v480_v13 = vadd.f32 %v464_v35, %v332_v26  ;;  %v517_v35 = vmul.f32 %v3694_v10, %v228_v24  ;;  %v519_v24 = vmul.f32 %v3694_v10, %v3687_v25 }
  0xef   :  { %5077 = vst [vmem:[#allocation37_spill] sm:$0xff] %v3705_v33  ;;  %297 = vst [vmem:[#allocation2 + $0x28] sm:$0xff] %v3705_v33  ;;  %v2823_v15 = vpop.f32.mrf.mxu0 }
  0xf0   :  { %v3707_v57 = vpop.permute.xlu1 %1205  ;;  %5080 = vst [vmem:[#allocation39_spill] sm:$0xff] %v3713_v42  ;;  %295 = vst [vmem:[#allocation2 + $0x18] sm:$0xff] %v3713_v42  ;;  %v3729_v58 = vadd.f32 %v2823_v15, %v3681_v30  ;;  %v612_v44 = vadd.f32 %v596_v11, %v480_v13  ;;  %v333_v53 = vmul.f32 %v3689_v40, %v3713_v42 }
  0xf1   :  { %5078 = vst [vmem:[#allocation38_spill] sm:$0xff] %v3707_v57  ;;  %2982 = vset.pattern.permute.xlu1 %v5079_v38  ;;  %v810_v5 = vpop.permute.xlu0 %809  ;;  %v243_v26 = vpop.f32.mrf.mxu0  ;;  %v335_v13 = vmul.f32 %v3689_v40, %v3705_v33  ;;  %v599_v21 = vmul.f32 %v3586_v63, %v519_v24 }
  0xf2   :  { %446 = vperm.xlu1 %2982, %v3571_v59   ;;  %5083 = vst [vmem:[#allocation40_spill] sm:$0xff] %v3729_v58  ;;  %300 = vst [vmem:[#allocation2 + $0x40] sm:$0xff] %v3729_v58  ;;  %v3738_v8 = vadd.f32 %v3681_v30, %v243_v26 }
  0xf3   :  { %v628_v37 = vld [vmem:[#allocation2 + $0x9] sm:$0xff] }
  0xf4   :  { %5085 = vst [vmem:[#allocation42_spill] sm:$0xff] %v3738_v8  ;;  %v760_v15 = vld [vmem:[#allocation2 + $0xf] sm:$0xff]  ;;  %v648_v26 = vmul.f32 %v3721_v56, %v628_v37  ;;  %298 = vst [vmem:[#allocation2 + $0x30] sm:$0xff] %v3738_v8 }
  0xf5   :  { %v3732_v60 = vpop.permute.xlu1 %813  ;;  %v3740_v29 = vpop.permute.xlu0 %817  ;;  %v780_v0 = vmul.f32 %v3725_v51, %v760_v15  ;;  %v369_v11 = vmul.f32 %v760_v15, %v3670_v27 }
  0xf6   :  { %5084 = vst [vmem:[#allocation41_spill] sm:$0xff] %v3732_v60  ;;  %5086 = vst [vmem:[#allocation43_spill] sm:$0xff] %v3740_v29  ;;  %2983 = vset.pattern.permute.xlu1 %v5087_v49  ;;  %v2824_v60 = vpop.f32.mrf.mxu0  ;;  %v597_v29 = vmul.f32 %v3505_v41, %v517_v35  ;;  %v3759_v55 = vld [vmem:[#allocation2 + $0x21] sm:$0xff]  ;;  %v728_v20 = vmul.f32 %v3528_v47, %v648_v26 }
  0xf7   :  { %961 = vperm.xlu1 %2983, %v3513_v43   ;;  %v3762_v36 = vadd.f32 %v2824_v60, %v3681_v30  ;;  %v860_v4 = vmul.f32 %v798_v34, %v780_v0  ;;  %v465_v15 = vmul.f32 %v3520_v45, %v369_v11  ;;  %v651_v43 = vmul.f32 %v3721_v56, %v3759_v55  ;;  %v3770_v33 = vld [vmem:[#allocation2 + $0x27] sm:$0xff]  ;;  %v629_v60 = vld [vmem:[#allocation2 + $0x11] sm:$0xff]  ;;  %v3776_v57 = vld [vmem:[#allocation2 + $0x1f] sm:$0xff] }
  0xf8   :  { %v246_v37 = vpop.f32.mrf.mxu0  ;;  %5089 = vst [vmem:[#allocation45_spill] sm:$0xff] %v3770_v33  ;;  %v783_v25 = vmul.f32 %v3725_v51, %v3770_v33  ;;  %v1176_v45 = vmul.f32 %v3734_v2, %v3713_v42  ;;  %v523_v0 = vmul.f32 %v3694_v10, %v3729_v58  ;;  %v744_v34 = vadd.f32 %v728_v20, %v612_v44 }
  0xf9   :  { %5088 = vst [vmem:[#allocation44_spill] sm:$0xff] %v3762_v36  ;;  %v3772_v41 = vpop.permute.xlu0 %821  ;;  %301 = vst [vmem:[#allocation2 + $0x48] sm:$0xff] %v3762_v36  ;;  %v3782_v47 = vadd.f32 %v3681_v30, %v246_v37  ;;  %v481_v26 = vadd.f32 %v465_v15, %v333_v53  ;;  %v649_v11 = vmul.f32 %v3721_v56, %v629_v60  ;;  %v3794_v37 = vld [vmem:[#allocation2 + $0x17] sm:$0xff] }
  0xfa   :  { %v3774_v35 = vpop.permute.xlu1 %1325  ;;  %v371_v33 = vmul.f32 %v3670_v27, %v3776_v57  ;;  %v863_v32 = vmul.f32 %v810_v5, %v783_v25  ;;  %v876_v42 = vadd.f32 %v860_v4, %v744_v34  ;;  %v338_v20 = vmul.f32 %v3689_v40, %v3729_v58  ;;  %v3807_v25 = vld [vmem:[%s4953_s5 + $0x8] ss:$0 sm:$0xff]  ;;  %v3811_v5 = vld [vmem:[#allocation2 + $0x19] sm:$0xff] }
  0xfb   :  { %5090 = vst [vmem:[#allocation46_spill] sm:$0xff] %v3782_v47  ;;  %965 = vperm.xlu1 %2983, %v3375_v19   ;;  %299 = vst [vmem:[#allocation2 + $0x38] sm:$0xff] %v3782_v47  ;;  %v613_v30 = vadd.f32 %v597_v29, %v481_v26  ;;  %v729_v19 = vmul.f32 %v3632_v16, %v649_v11  ;;  %v912_v63 = vmul.f32 %v3746_v3, %v629_v60 }
  0xfc   :  { %v467_v9 = vmul.f32 %v3498_v39, %v371_v33  ;;  %v1256_v4 = vmul.f32 %v3657_v31, %v1176_v45  ;;  %v3814_v39 = vmul.f32 %v3666_v17, %v1177_v23  ;;  %v3819_v29 = vmul.f32 %v3694_v10, %v3738_v8 }
  0xfd   :  { %v3798_v44 = vpop.permute.xlu0 %833  ;;  %v1044_v33 = vmul.f32 %v3748_v28, %v3794_v37  ;;  %v3825_v24 = vmul.f32 %v3635_v18, %v523_v0  ;;  %v731_v31 = vmul.f32 %v3545_v52, %v651_v43  ;;  %v522_v17 = vmul.f32 %v3694_v10, %v3782_v47  ;;  %v3843_v52 = vld [vmem:[#allocation2 + $0x2f] sm:$0xff] }
  0xfe   :  { %v3800_v53 = vpop.permute.xlu1 %1329  ;;  %v483_v16 = vadd.f32 %v467_v9, %v335_v13  ;;  %v992_v23 = vmul.f32 %v3583_v62, %v912_v63  ;;  %v3833_v9 = vmul.f32 %v3734_v2, %v3738_v8  ;;  %v745_v13 = vadd.f32 %v729_v19, %v613_v30  ;;  %5091 = vst [vmem:[#allocation47_spill] sm:$0xff] %v3843_v52 }
  0xff   :  { %2985 = vset.pattern.permute.xlu1 %v5079_v38  ;;  %v1308_v60 = vmul.f32 %v3807_v25, %v3811_v5  ;;  %v781_v18 = vmul.f32 %v3794_v37, %v3725_v51  ;;  %v339_v43 = vmul.f32 %v3689_v40, %v3762_v36  ;;  %v1124_v0 = vmul.f32 %v3622_v12, %v1044_v33  ;;  %v3878_v36 = vld [vmem:[#allocation2 + $0x29] sm:$0xff] }
 0x100   :  { %461 = vperm.xlu1 %2985, %v3581_v61   ;;  %v615_v15 = vadd.f32 %v599_v21, %v483_v16  ;;  %v1008_v62 = vadd.f32 %v992_v23, %v876_v42  ;;  %v913_v19 = vmul.f32 %v3811_v5, %v3746_v3  ;;  %v373_v34 = vmul.f32 %v3670_v27, %v3843_v52 }
 0x101   :  { %v3839_v45 = vpop.permute.xlu0 %837  ;;  %v861_v63 = vmul.f32 %v3553_v54, %v781_v18  ;;  %v1045_v42 = vmul.f32 %v3748_v28, %v3776_v57  ;;  %v602_v16 = vmul.f32 %v3599_v7, %v522_v17  ;;  %v1388_v18 = vmul.f32 %v3774_v35, %v1308_v60  ;;  %v3885_v60 = vld [vmem:[#allocation2 + $0x47] sm:$0xff] }
 0x102   :  { %v747_v21 = vadd.f32 %v731_v31, %v615_v15  ;;  %v3852_v26 = vld [vmem:[#allocation2 + $0x37] sm:$0xff]  ;;  %v3865_v31 = vld [vmem:[#allocation2 + $0x3f] sm:$0xff]  ;;  %v1140_v23 = vadd.f32 %v1124_v0, %v1008_v62  ;;  %v2827_v15 = vpop.f32.mrf.mxu0  ;;  %v993_v58 = vmul.f32 %v3589_v1, %v913_v19  ;;  %v1309_v1 = vmul.f32 %v3807_v25, %v3759_v55 }
 0x103   :  { %v3848_v30 = vpop.permute.xlu1 %825  ;;  %v3854_v11 = vld [vmem:[#allocation2 + $0x39] sm:$0xff]  ;;  %v374_v12 = vmul.f32 %v3670_v27, %v3852_v26  ;;  %v877_v38 = vadd.f32 %v861_v63, %v745_v13  ;;  %v786_v62 = vmul.f32 %v3725_v51, %v3865_v31  ;;  %v1125_v35 = vmul.f32 %v3627_v14, %v1045_v42 }
 0x104   :  { %2986 = vset.pattern.permute.xlu1 %v5087_v49  ;;  %v654_v33 = vmul.f32 %v3721_v56, %v3854_v11  ;;  %v879_v54 = vadd.f32 %v863_v32, %v747_v21  ;;  %v3870_v49 = vld [vmem:[#allocation2 + $0x41] sm:$0xff]  ;;  %v1272_v0 = vadd.f32 %v1256_v4, %v1140_v23  ;;  %v375_v13 = vmul.f32 %v3865_v31, %v3670_v27  ;;  %v259_v14 = vpop.f32.mrf.mxu0 }
 0x105   :  { %973 = vperm.xlu1 %2986, %v3539_v50   ;;  %5092 = vst [vmem:[#allocation48_spill] sm:$0xff] %v3870_v49  ;;  %v3872_v8 = vpop.permute.xlu0 %849  ;;  %v470_v7 = vmul.f32 %v3530_v48, %v374_v12  ;;  %v1009_v32 = vadd.f32 %v993_v58, %v877_v38  ;;  %v655_v38 = vmul.f32 %v3721_v56, %v3870_v49  ;;  %v5095_v58 = vmov 1  }
 0x106   :  { %5093 = vst [vmem:[#allocation49_spill] sm:$0xff] %v3872_v8  ;;  %v734_v17 = vmul.f32 %v3643_v22, %v654_v33  ;;  %v337_v22 = vmul.f32 %v3689_v40, %v3782_v47  ;;  %v3889_v21 = vadd.f32 %v1388_v18, %v1272_v0  ;;  %v471_v63 = vmul.f32 %v3597_v6, %v375_v13  ;;  %v3906_v0 = vld [vmem:[#allocation2 + $0x31] sm:$0xff]  ;;  %v5097_v13 = vld [vmem:[#allocation21_spill] sm:$0xff]  ;;  %v5099_v8 = vld [vmem:[#allocation34_spill] sm:$0xff] }
 0x107   :  { %v486_v19 = vadd.f32 %v470_v7, %v338_v20  ;;  %v1141_v4 = vadd.f32 %v1125_v35, %v1009_v32  ;;  %v915_v42 = vmul.f32 %v3746_v3, %v3878_v36  ;;  %v1047_v12 = vmul.f32 %v3748_v28, %v3843_v52  ;;  %v5098_v52 = vld [vmem:[#allocation35_spill] sm:$0xff] }
 0x108   :  { %v1338_v48 = vpop.permute.xlu1 %1337  ;;  %5094 = vst [vmem:[#allocation50_spill] sm:$0xff] %v3889_v21  ;;  %v469_v20 = vmul.f32 %v3524_v46, %v373_v34  ;;  %v866_v18 = vmul.f32 %v3772_v41, %v786_v62  ;;  %v787_v7 = vmul.f32 %v3725_v51, %v3885_v60  ;;  %v1389_v32 = vmul.f32 %v3800_v53, %v1309_v1 }
 0x109   :  { %2987 = vset.pattern.permute.xlu1 %v5095_v58  ;;  %v3899_v33 = vpop.permute.xlu0 %853  ;;  %v618_v23 = vadd.f32 %v602_v16, %v486_v19  ;;  %v1273_v6 = vadd.f32 %v3814_v39, %v1141_v4  ;;  %v487_v35 = vadd.f32 %v471_v63, %v339_v43  ;;  %v995_v21 = vmul.f32 %v5097_v13, %v915_v42  ;;  %v2828_v16 = vpop.f32.mrf.mxu0  ;;  %v5102_v19 = vld [vmem:[#allocation27_spill] sm:$0xff] }
 0x10a   :  { %5096 = vst [vmem:[#allocation51_spill] sm:$0xff] %v3899_v33  ;;  %581 = vperm.xlu1 %2987, %v3571_v59   ;;  %v735_v33 = vmul.f32 %v5098_v52, %v655_v38  ;;  %v3913_v46 = vadd.f32 %v2827_v15, %v5099_v8  ;;  %v3916_v41 = vadd.f32 %v5099_v8, %v259_v14  ;;  %v5103_v52 = vmov 6   ;;  %v5104_v38 = vld [vmem:[#allocation38_spill] sm:$0xff]  ;;  %v5107_v42 = vld [vmem:[#allocation19_spill] sm:$0xff] }
 0x10b   :  { %v750_v47 = vadd.f32 %v734_v17, %v618_v23  ;;  %v619_v62 = vadd.f32 %v3825_v24, %v487_v35  ;;  %v1011_v39 = vadd.f32 %v995_v21, %v879_v54  ;;  %v1127_v53 = vmul.f32 %v5102_v19, %v1047_v12  ;;  %v5105_v24 = vld [vmem:[#allocation10_spill] sm:$0xff]  ;;  %v262_v12 = vpop.f32.mrf.mxu0 }
 0x10c   :  { %5100 = vst [vmem:[#allocation21_spill] sm:$0xff] %v3913_v46  ;;  %5101 = vst [vmem:[#allocation35_spill] sm:$0xff] %v3916_v41  ;;  %v1311_v43 = vmul.f32 %v3807_v25, %v3906_v0  ;;  %v867_v1 = vmul.f32 %v3848_v30, %v787_v7  ;;  %v1259_v14 = vmul.f32 %v5104_v38, %v3833_v9 }
 0x10d   :  { %v3918_v34 = vpop.permute.xlu1 %426  ;;  %v882_v15 = vadd.f32 %v866_v18, %v750_v47  ;;  %304 = vst [vmem:[#allocation2 + $0x60] sm:$0xff] %v3913_v46  ;;  %302 = vst [vmem:[#allocation2 + $0x50] sm:$0xff] %v3916_v41  ;;  %v1405_v54 = vadd.f32 %v1389_v32, %v1273_v6  ;;  %v751_v21 = vadd.f32 %v735_v33, %v619_v62  ;;  %v3946_v33 = vld [vmem:[%s4954_s6] ss:$0 sm:$0xff]  ;;  %v5109_v6 = vld [vmem:[#allocation6_spill] sm:$0xff]  ;;  %v2831_v32 = vpop.f32.mrf.mxu0 }
 0x10e   :  { %v3924_v17 = vpop.permute.xlu0 %937  ;;  %2988 = vset.pattern.permute.xlu1 %v5103_v52  ;;  %v1143_v4 = vadd.f32 %v1127_v53, %v1011_v39  ;;  %v3934_v63 = vadd.f32 %v2828_v16, %v5099_v8  ;;  %v601_v47 = vmul.f32 %v5107_v42, %v3819_v29  ;;  %v485_v30 = vadd.f32 %v469_v20, %v337_v22 }
 0x10f   :  { %1093 = vperm.xlu1 %2988, %v5105_v24   ;;  %v3938_v23 = vadd.f32 %v867_v1, %v751_v21  ;;  %v1391_v18 = vmul.f32 %v1338_v48, %v1311_v43  ;;  %v3952_v22 = vadd.f32 %v3946_v33, %v1405_v54  ;;  %v3955_v48 = vadd.f32 %v5099_v8, %v262_v12  ;;  %v275_v53 = vpop.f32.mrf.mxu0  ;;  %v5113_v1 = vld [vmem:[#allocation26_spill] sm:$0xff] }
 0x110   :  { %5106 = vst [vmem:[#allocation34_spill] sm:$0xff] %v3934_v63  ;;  %v1275_v9 = vadd.f32 %v1259_v14, %v1143_v4  ;;  %305 = vst [vmem:[#allocation2 + $0x68] sm:$0xff] %v3934_v63  ;;  %v918_v20 = vmul.f32 %v3746_v3, %v3870_v49  ;;  %v617_v13 = vadd.f32 %v601_v47, %v485_v30  ;;  %v5114_v14 = vld [vmem:[#allocation43_spill] sm:$0xff]  ;;  %v5126_v63 = vmov 2  }
 0x111   :  { %5108 = vst [vmem:[#allocation27_spill] sm:$0xff] %v3938_v23  ;;  %5111 = vst [vmem:[#allocation10_spill] sm:$0xff] %v3952_v22  ;;  %1445 = vadd.xlane.f32.xlu0 %v3952_v22  ;;  %v653_v62 = vmul.f32 %v3906_v0, %v3721_v56  ;;  %v785_v39 = vmul.f32 %v3725_v51, %v3852_v26  ;;  %v917_v21 = vmul.f32 %v3746_v3, %v3854_v11  ;;  %v5133_v49 = vmov 7  }
 0x112   :  { %v3941_v7 = vpop.permute.xlu1 %945  ;;  %v954_v35 = vpop.permute.xlu0 %953  ;;  %v3949_v29 = vadd.f32 %v1391_v18, %v1275_v9  ;;  %5112 = vst [vmem:[#allocation19_spill] sm:$0xff] %v3955_v48  ;;  %303 = vst [vmem:[#allocation2 + $0x58] sm:$0xff] %v3955_v48  ;;  %v526_v18 = vmul.f32 %v3694_v10, %v3955_v48 }
 0x113   :  { %1097 = vperm.xlu1 %2988, %v5109_v6   ;;  %v998_v43 = vmul.f32 %v954_v35, %v918_v20  ;;  %v733_v38 = vmul.f32 %v5113_v1, %v653_v62  ;;  %v865_v54 = vmul.f32 %v5114_v14, %v785_v39  ;;  %v370_v35 = vmul.f32 %v3794_v37, %v3670_v27  ;;  %v5120_v14 = vld [vmem:[#allocation14_spill] sm:$0xff] }
 0x114   :  { %5110 = vst [vmem:[#allocation38_spill] sm:$0xff] %v3949_v29  ;;  %v3988_v20 = vadd.f32 %v2831_v32, %v5099_v8  ;;  %v4006_v32 = vadd.f32 %v5099_v8, %v275_v53  ;;  %v5124_v29 = vld [vmem:[#allocation36_spill] sm:$0xff] }
 0x115   :  { %v3971_v4 = vadd.f32 %v998_v43, %v882_v15  ;;  %v749_v42 = vadd.f32 %v733_v38, %v617_v13  ;;  %v342_v13 = vmul.f32 %v3689_v40, %v3913_v46  ;;  %v334_v23 = vmul.f32 %v3689_v40, %v5124_v29  ;;  %v5130_v29 = vld [vmem:[#allocation39_spill] sm:$0xff] }
 0x116   :  { %v950_v16 = vpop.permute.xlu1 %949  ;;  %v970_v19 = vpop.permute.xlu0 %969  ;;  %5118 = vst [vmem:[#allocation52_spill] sm:$0xff] %v3988_v20  ;;  %308 = vst [vmem:[#allocation2 + $0x80] sm:$0xff] %v3988_v20  ;;  %v914_v46 = vmul.f32 %v3746_v3, %v3759_v55  ;;  %v5141_v55 = vld [vmem:[#allocation45_spill] sm:$0xff] }
 0x117   :  { %2990 = vset.pattern.permute.xlu1 %v5095_v58  ;;  %v997_v12 = vmul.f32 %v950_v16, %v917_v21  ;;  %v2832_v58 = vpop.f32.mrf.mxu0  ;;  %v881_v9 = vadd.f32 %v865_v54, %v749_v42  ;;  %v4000_v43 = vld [vmem:[#allocation2 + $0x61] sm:$0xff]  ;;  %306 = vst [vmem:[#allocation2 + $0x70] sm:$0xff] %v4006_v32 }
 0x118   :  { %593 = vperm.xlu1 %2990, %v3581_v61   ;;  %5119 = vst [vmem:[#allocation53_spill] sm:$0xff] %v4000_v43  ;;  %v5121_v21 = vld [vmem:[#allocation22_spill] sm:$0xff]  ;;  %v4021_v53 = vadd.f32 %v2832_v58, %v5099_v8 }
 0x119   :  { %v3982_v6 = vld [vmem:[#allocation2 + $0x57] sm:$0xff]  ;;  %v3992_v16 = vadd.f32 %v997_v12, %v881_v9  ;;  %v3998_v39 = vld [vmem:[#allocation2 + $0x5f] sm:$0xff]  ;;  %v278_v38 = vpop.f32.mrf.mxu0  ;;  %v606_v42 = vmul.f32 %v5121_v21, %v526_v18  ;;  %v5122_v12 = vld [vmem:[#allocation30_spill] sm:$0xff] }
 0x11a   :  { %v3973_v47 = vpop.permute.xlu0 %981  ;;  %5116 = vst [vmem:[#allocation26_spill] sm:$0xff] %v3982_v6  ;;  %v3984_v15 = vld [vmem:[#allocation2 + $0x59] sm:$0xff]  ;;  %v378_v62 = vmul.f32 %v3670_v27, %v3982_v6  ;;  %v790_v22 = vmul.f32 %v3725_v51, %v3998_v39  ;;  %5127 = vst [vmem:[#allocation22_spill] sm:$0xff] %v4021_v53  ;;  %v4023_v18 = vld [vmem:[#allocation2 + $0x67] sm:$0xff] }
 0x11b   :  { %v3975_v30 = vpop.permute.xlu1 %441  ;;  %5117 = vst [vmem:[#allocation43_spill] sm:$0xff] %v3984_v15  ;;  %v658_v37 = vmul.f32 %v3721_v56, %v3984_v15  ;;  %5128 = vst [vmem:[#allocation30_spill] sm:$0xff] %v4023_v18 }
 0x11c   :  { %5115 = vst [vmem:[#allocation6_spill] sm:$0xff] %v3975_v30  ;;  %2991 = vset.pattern.permute.xlu1 %v5103_v52  ;;  %v474_v54 = vmul.f32 %v5120_v14, %v378_v62  ;;  %v5125_v52 = vld [vmem:[#allocation7_spill] sm:$0xff]  ;;  %v4029_v14 = vadd.f32 %v5099_v8, %v278_v38  ;;  %309 = vst [vmem:[#allocation2 + $0x88] sm:$0xff] %v4021_v53 }
 0x11d   :  { %1105 = vperm.xlu1 %2991, %v3539_v50   ;;  %v738_v9 = vmul.f32 %v5122_v12, %v658_v37  ;;  %v466_v30 = vmul.f32 %v5125_v52, %v370_v35  ;;  %v922_v37 = vmul.f32 %v3746_v3, %v4000_v43  ;;  %v518_v52 = vmul.f32 %v3694_v10, %v5130_v29  ;;  %v4033_v35 = vld [vmem:[#allocation2 + $0x4f] sm:$0xff] }
 0x11e   :  { %v490_v62 = vadd.f32 %v474_v54, %v342_v13  ;;  %5129 = vst [vmem:[#allocation36_spill] sm:$0xff] %v4029_v14  ;;  %5131 = vst [vmem:[#allocation7_spill] sm:$0xff] %v4033_v35  ;;  %v870_v13 = vmul.f32 %v3839_v45, %v790_v22  ;;  %v1054_v54 = vmul.f32 %v3748_v28, %v4023_v18  ;;  %v4046_v43 = vld [vmem:[#allocation2 + $0x49] sm:$0xff] }
 0x11f   :  { %v4002_v1 = vpop.permute.xlu0 %1069  ;;  %307 = vst [vmem:[#allocation2 + $0x78] sm:$0xff] %v4029_v14  ;;  %v482_v12 = vadd.f32 %v466_v30, %v334_v23  ;;  %v377_v38 = vmul.f32 %v3670_v27, %v4033_v35  ;;  %5132 = vst [vmem:[#allocation39_spill] sm:$0xff] %v4046_v43  ;;  %v650_v45 = vmul.f32 %v3811_v5, %v3721_v56 }
 0x120   :  { %v4013_v15 = vpop.permute.xlu1 %957  ;;  %v622_v58 = vadd.f32 %v606_v42, %v490_v62  ;;  %v5134_v42 = vld [vmem:[#allocation11_spill] sm:$0xff]  ;;  %v4055_v23 = vmul.f32 %v4046_v43, %v3721_v56  ;;  %v782_v18 = vmul.f32 %v3725_v51, %v3776_v57 }
 0x121   :  { %5123 = vst [vmem:[#allocation14_spill] sm:$0xff] %v4013_v15  ;;  %2992 = vset.pattern.permute.xlu1 %v5126_v63  ;;  %v1002_v15 = vmul.f32 %v970_v19, %v922_v37  ;;  %v598_v62 = vmul.f32 %v5134_v42, %v518_v52  ;;  %v341_v19 = vmul.f32 %v3689_v40, %v3955_v48  ;;  %v5135_v37 = vld [vmem:[#allocation13_spill] sm:$0xff]  ;;  %v5136_v42 = vld [vmem:[#allocation12_spill] sm:$0xff]  ;;  %v4067_v43 = vld [vmem:[#allocation2 + $0x6f] sm:$0xff] }
 0x122   :  { %713 = vperm.xlu1 %2992, %v3571_v59   ;;  %v754_v29 = vadd.f32 %v738_v9, %v622_v58  ;;  %v473_v58 = vmul.f32 %v5135_v37, %v377_v38  ;;  %v730_v5 = vmul.f32 %v5136_v42, %v650_v45  ;;  %5137 = vst [vmem:[#allocation11_spill] sm:$0xff] %v4067_v43 }
 0x123   :  { %v4035_v21 = vpop.permute.xlu0 %1085  ;;  %v614_v9 = vadd.f32 %v598_v62, %v482_v12  ;;  %v4079_v12 = vld [vmem:[#allocation2 + $0x51] sm:$0xff]  ;;  %v381_v45 = vmul.f32 %v3670_v27, %v4067_v43 }
 0x124   :  { %v886_v30 = vadd.f32 %v870_v13, %v754_v29  ;;  %v4072_v13 = vld [vmem:[%s5043_s26 + $0x48] sm:$0xff]  ;;  %5139 = vst [vmem:[#allocation12_spill] sm:$0xff] %v4079_v12  ;;  %v1046_v29 = vmul.f32 %v3748_v28, %v5141_v55  ;;  %v489_v62 = vadd.f32 %v473_v58, %v341_v19  ;;  %v657_v37 = vmul.f32 %v4079_v12, %v3721_v56  ;;  %v5144_v58 = vld [vmem:[#allocation37_spill] sm:$0xff] }
 0x125   :  { %v4042_v8 = vpop.permute.xlu1 %565  ;;  %v746_v38 = vadd.f32 %v730_v5, %v614_v9  ;;  %v789_v19 = vmul.f32 %v3725_v51, %v3982_v6  ;;  %v1178_v5 = vmul.f32 %v3734_v2, %v5144_v58 }
 0x126   :  { %2993 = vset.pattern.permute.xlu1 %v5133_v49  ;;  %v1018_v53 = vadd.f32 %v1002_v15, %v886_v30  ;;  %v525_v30 = vmul.f32 %v3694_v10, %v3916_v41 }
 0x127   :  { %1225 = vperm.xlu1 %2993, %v5105_v24   ;;  %v1102_v22 = vpop.permute.xlu0 %1101  ;;  %v869_v6 = vmul.f32 %v3798_v44, %v789_v19  ;;  %v346_v44 = vmul.f32 %v3689_v40, %v3988_v20 }
 0x128   :  { %v1134_v35 = vmul.f32 %v1102_v22, %v1054_v54  ;;  %v1049_v54 = vmul.f32 %v3748_v28, %v3865_v31  ;;  %v5142_v31 = vld [vmem:[#allocation16_spill] sm:$0xff] }
 0x129   :  { %v862_v42 = vmul.f32 %v5142_v31, %v782_v18 }
 0x12a   :  { %v4060_v52 = vpop.permute.xlu1 %1077  ;;  %v4081_v57 = vadd.f32 %v1134_v35, %v1018_v53  ;;  %v994_v53 = vmul.f32 %v3924_v17, %v914_v46  ;;  %v1126_v46 = vmul.f32 %v4002_v1, %v1046_v29  ;;  %v529_v17 = vmul.f32 %v3694_v10, %v4006_v32 }
 0x12b   :  { %1229 = vperm.xlu1 %2993, %v4072_v13   ;;  %v4075_v15 = vpop.permute.xlu0 %1109  ;;  %v878_v18 = vadd.f32 %v862_v42, %v746_v38  ;;  %v1310_v1 = vmul.f32 %v3807_v25, %v3878_v36  ;;  %v4119_v38 = vld [vmem:[#allocation2 + $0x77] sm:$0xff] }
 0x12c   :  { %5138 = vst [vmem:[#allocation13_spill] sm:$0xff] %v4075_v15  ;;  %5140 = vst [vmem:[#allocation54_spill] sm:$0xff] %v4081_v57  ;;  %v5145_v15 = vld [vmem:[#allocation20_spill] sm:$0xff] }
 0x12d   :  { %v605_v43 = vmul.f32 %v5145_v15, %v525_v30  ;;  %v5146_v57 = vld [vmem:[#allocation28_spill] sm:$0xff]  ;;  %v1010_v15 = vadd.f32 %v994_v53, %v878_v18  ;;  %5148 = vst [vmem:[#allocation16_spill] sm:$0xff] %v4119_v38 }
 0x12e   :  { %v1082_v22 = vpop.permute.xlu1 %1081  ;;  %v737_v48 = vmul.f32 %v5146_v57, %v657_v37  ;;  %v376_v57 = vmul.f32 %v3885_v60, %v3670_v27  ;;  %v4127_v37 = vld [vmem:[#allocation2 + $0x79] sm:$0xff]  ;;  %v4129_v42 = vld [vmem:[#allocation2 + $0x71] sm:$0xff] }
 0x12f   :  { %v1129_v35 = vmul.f32 %v1082_v22, %v1049_v54  ;;  %2995 = vset.pattern.permute.xlu1 %v5126_v63  ;;  %v4094_v9 = vpop.permute.xlu0 %1121  ;;  %v345_v54 = vmul.f32 %v3689_v40, %v4029_v14  ;;  %v5147_v22 = vld [vmem:[#allocation15_spill] sm:$0xff]  ;;  %5149 = vst [vmem:[#allocation37_spill] sm:$0xff] %v4129_v42  ;;  %v5150_v53 = vld [vmem:[#allocation44_spill] sm:$0xff] }
 0x130   :  { %5143 = vst [vmem:[#allocation45_spill] sm:$0xff] %v4094_v9  ;;  %725 = vperm.xlu1 %2995, %v3581_v61   ;;  %v477_v31 = vmul.f32 %v5147_v22, %v381_v45  ;;  %v621_v9 = vadd.f32 %v605_v43, %v489_v62  ;;  %v340_v43 = vmul.f32 %v3689_v40, %v3916_v41  ;;  %v5151_v18 = vld [vmem:[#allocation24_spill] sm:$0xff] }
 0x131   :  { %v4107_v63 = vadd.f32 %v1129_v35, %v3992_v16  ;;  %v1142_v62 = vadd.f32 %v1126_v46, %v1010_v15  ;;  %v524_v35 = vmul.f32 %v3694_v10, %v5150_v53  ;;  %v4136_v22 = vld [vmem:[#allocation2 + $0x7f] sm:$0xff]  ;;  %v472_v41 = vmul.f32 %v3918_v34, %v376_v57 }
 0x132   :  { %v753_v29 = vadd.f32 %v737_v48, %v621_v9  ;;  %v493_v19 = vadd.f32 %v477_v31, %v345_v54  ;;  %v609_v48 = vmul.f32 %v5151_v18, %v529_v17  ;;  %5153 = vst [vmem:[#allocation28_spill] sm:$0xff] %v4136_v22  ;;  %v5154_v15 = vld [vmem:[#allocation8_spill] sm:$0xff]  ;;  %v662_v17 = vmul.f32 %v4127_v37, %v3721_v56  ;;  %v5158_v18 = vld [vmem:[#allocation25_spill] sm:$0xff] }
 0x133   :  { %v4113_v30 = vpop.permute.xlu1 %577  ;;  %v1390_v12 = vmul.f32 %v5154_v15, %v1310_v1  ;;  %v793_v54 = vmul.f32 %v4119_v38, %v3725_v51  ;;  %v5156_v1 = vmov 3   ;;  %v604_v34 = vmul.f32 %v4042_v8, %v524_v35 }
 0x134   :  { %v1202_v16 = vpop.permute.xlu0 %1201  ;;  %2996 = vset.pattern.permute.xlu1 %v5133_v49  ;;  %v4134_v9 = vadd.f32 %v869_v6, %v753_v29  ;;  %v661_v6 = vmul.f32 %v4129_v42, %v3721_v56  ;;  %v5157_v29 = vld [vmem:[#allocation17_spill] sm:$0xff]  ;;  %v625_v57 = vadd.f32 %v609_v48, %v493_v19  ;;  %v5162_v19 = vld [vmem:[#allocation51_spill] sm:$0xff] }
 0x135   :  { %v1258_v45 = vmul.f32 %v1202_v16, %v1178_v5  ;;  %1237 = vperm.xlu1 %2996, %v3539_v50   ;;  %v382_v5 = vmul.f32 %v4119_v38, %v3670_v27  ;;  %v530_v16 = vmul.f32 %v3694_v10, %v4029_v14  ;;  %v5159_v38 = vld [vmem:[#allocation33_spill] sm:$0xff] }
 0x136   :  { %5152 = vst [vmem:[#allocation20_spill] sm:$0xff] %v4134_v9  ;;  %v5160_v9 = vld [vmem:[#allocation32_spill] sm:$0xff] }
 0x137   :  { %v1274_v46 = vadd.f32 %v1258_v45, %v1142_v62  ;;  %v478_v62 = vmul.f32 %v5157_v29, %v382_v5  ;;  %v794_v45 = vmul.f32 %v3725_v51, %v4136_v22  ;;  %v610_v15 = vmul.f32 %v5158_v18, %v530_v16  ;;  %v5161_v5 = vld [vmem:[#allocation49_spill] sm:$0xff]  ;;  %v5166_v18 = vld [vmem:[#allocation23_spill] sm:$0xff] }
 0x138   :  { %v4144_v20 = vpop.permute.xlu1 %1089  ;;  %v873_v29 = vmul.f32 %v5161_v5, %v793_v54  ;;  %v925_v22 = vmul.f32 %v4127_v37, %v3746_v3 }
 0x139   :  { %5155 = vst [vmem:[#allocation15_spill] sm:$0xff] %v4144_v20  ;;  %v1406_v31 = vadd.f32 %v1390_v12, %v1274_v46  ;;  %2997 = vset.pattern.permute.xlu1 %v5156_v1  ;;  %v494_v42 = vadd.f32 %v478_v62, %v346_v44  ;;  %v742_v12 = vmul.f32 %v5159_v38, %v662_v17  ;;  %v5163_v44 = vmov 8  }
 0x13a   :  { %845 = vperm.xlu1 %2997, %v3571_v59   ;;  %v488_v46 = vadd.f32 %v472_v41, %v340_v43  ;;  %v741_v20 = vmul.f32 %v5160_v9, %v661_v6  ;;  %v874_v48 = vmul.f32 %v5162_v19, %v794_v45  ;;  %v1005_v41 = vmul.f32 %v3973_v47, %v925_v22  ;;  %v5165_v47 = vld [vmem:[#allocation18_spill] sm:$0xff] }
 0x13b   :  { %v4160_v14 = vadd.f32 %v3946_v33, %v1406_v31  ;;  %v626_v35 = vadd.f32 %v610_v15, %v494_v42  ;;  %v372_v42 = vmul.f32 %v5141_v55, %v3670_v27  ;;  %v520_v45 = vmul.f32 %v3694_v10, %v5144_v58  ;;  %v5167_v15 = vld [vmem:[#allocation29_spill] sm:$0xff] }
 0x13c   :  { %v620_v16 = vadd.f32 %v604_v34, %v488_v46  ;;  %v757_v38 = vadd.f32 %v741_v20, %v625_v57  ;;  %v652_v34 = vmul.f32 %v3878_v36, %v3721_v56  ;;  %v916_v58 = vmul.f32 %v3906_v0, %v3746_v3 }
 0x13d   :  { %v698_v8 = vpop.permute.xlu1 %697  ;;  %1447 = vadd.xlane.f32.xlu0 %v4160_v14  ;;  %v758_v43 = vadd.f32 %v742_v12, %v626_v35  ;;  %v468_v22 = vmul.f32 %v5165_v47, %v372_v42  ;;  %v1050_v36 = vmul.f32 %v3748_v28, %v3885_v60  ;;  %v1048_v35 = vmul.f32 %v3748_v28, %v3852_v26  ;;  %v5171_v60 = vld [vmem:[#allocation46_spill] sm:$0xff] }
 0x13e   :  { %v736_v31 = vmul.f32 %v698_v8, %v4055_v23  ;;  %2998 = vset.pattern.permute.xlu1 %v5163_v44  ;;  %v889_v17 = vadd.f32 %v873_v29, %v757_v38  ;;  %v5164_v23 = vld [vmem:[#allocation42_spill] sm:$0xff]  ;;  %v732_v12 = vmul.f32 %v5167_v15, %v652_v34  ;;  %v5169_v19 = vmov 5   ;;  %v5175_v15 = vld [vmem:[#allocation48_spill] sm:$0xff] }
 0x13f   :  { %1357 = vperm.xlu1 %2998, %v5105_v24   ;;  %v4175_v6 = vadd.f32 %v874_v48, %v758_v43  ;;  %v336_v20 = vmul.f32 %v3689_v40, %v5164_v23  ;;  %v5170_v48 = vld [vmem:[#allocation41_spill] sm:$0xff]  ;;  %v1182_v0 = vmul.f32 %v3734_v2, %v5150_v53  ;;  %v1180_v38 = vmul.f32 %v3734_v2, %v5171_v60  ;;  %v1218_v43 = vpop.permute.xlu0 %1217  ;;  %v5172_v23 = vld [vmem:[#allocation40_spill] sm:$0xff] }
 0x140   :  { %v4173_v9 = vadd.f32 %v736_v31, %v620_v16  ;;  %v4179_v62 = vadd.f32 %v1005_v41, %v889_v17  ;;  %v996_v16 = vmul.f32 %v3941_v7, %v916_v58  ;;  %v1130_v31 = vmul.f32 %v4035_v21, %v1050_v36  ;;  %v5177_v58 = vld [vmem:[#allocation6_spill] sm:$0xff] }
 0x141   :  { %v484_v55 = vadd.f32 %v468_v22, %v336_v20  ;;  %v1128_v26 = vmul.f32 %v4060_v52, %v1048_v35  ;;  %v1181_v7 = vmul.f32 %v3734_v2, %v5172_v23  ;;  %v1262_v53 = vmul.f32 %v1218_v43, %v1182_v0 }
 0x142   :  { %v1210_v54 = vpop.permute.xlu1 %1209  ;;  %v1146_v21 = vadd.f32 %v1130_v31, %v3971_v4  ;;  %v1312_v47 = vmul.f32 %v3807_v25, %v3854_v11  ;;  %v379_v52 = vmul.f32 %v3998_v39, %v3670_v27  ;;  %v1313_v4 = vmul.f32 %v3807_v25, %v5175_v15 }
 0x143   :  { %1361 = vperm.xlu1 %2998, %v4072_v13   ;;  %v600_v13 = vmul.f32 %v5166_v18, %v520_v45  ;;  %v1260_v20 = vmul.f32 %v1210_v54, %v1180_v38  ;;  %v5173_v45 = vld [vmem:[#allocation39_spill] sm:$0xff]  ;;  %v3157_v38 = vld [vmem:[%s5043_s26 + $0x68] sm:$0xff] }
 0x144   :  { %v1314_v34 = vmul.f32 %v3807_v25, %v5173_v45  ;;  %v1278_v54 = vadd.f32 %v1262_v53, %v1146_v21  ;;  %v475_v36 = vmul.f32 %v5177_v58, %v379_v52 }
 0x145   :  { %v616_v46 = vadd.f32 %v600_v13, %v484_v55  ;;  %v5174_v55 = vld [vmem:[#allocation21_spill] sm:$0xff] }
 0x146   :  { %v1214_v24 = vpop.permute.xlu1 %1213  ;;  %v527_v18 = vmul.f32 %v3694_v10, %v5174_v55 }
 0x147   :  { %3000 = vset.pattern.permute.xlu1 %v5156_v1  ;;  %v5168_v1 = vld [vmem:[#allocation47_spill] sm:$0xff]  ;;  %v748_v29 = vadd.f32 %v732_v12, %v616_v46  ;;  %v1261_v46 = vmul.f32 %v1214_v24, %v1181_v7 }
 0x148   :  { %857 = vperm.xlu1 %3000, %v3581_v61   ;;  %v784_v5 = vmul.f32 %v3725_v51, %v5168_v1  ;;  %v5176_v1 = vld [vmem:[#allocation34_spill] sm:$0xff] }
 0x149   :  { %v1277_v24 = vadd.f32 %v1261_v46, %v4107_v63  ;;  %v528_v46 = vmul.f32 %v3694_v10, %v5176_v1 }
 0x14b   :  { %v710_v57 = vpop.permute.xlu1 %709 }
 0x14c   :  { %3001 = vset.pattern.permute.xlu1 %v5163_v44 }
 0x14d   :  { %1369 = vperm.xlu1 %3001, %v3539_v50   ;;  %v864_v50 = vmul.f32 %v5170_v48, %v784_v5  ;;  %v343_v5 = vmul.f32 %v3689_v40, %v5176_v1 }
 0x14f   :  { %v880_v41 = vadd.f32 %v864_v50, %v748_v29  ;;  %v5178_v29 = vld [vmem:[#allocation53_spill] sm:$0xff]  ;;  %v491_v43 = vadd.f32 %v475_v36, %v343_v5 }
 0x150   :  { %v4201_v8 = vpop.permute.xlu1 %1221  ;;  %v659_v35 = vmul.f32 %v5178_v29, %v3721_v56 }
 0x151   :  { %3002 = vset.pattern.permute.xlu1 %v5169_v19  ;;  %v1012_v42 = vadd.f32 %v996_v16, %v880_v41  ;;  %v5179_v19 = vld [vmem:[#allocation9_spill] sm:$0xff]  ;;  %v5180_v16 = vmov 6  }
 0x152   :  { %977 = vperm.xlu1 %3002, %v3571_v59   ;;  %v3156_v59 = vld [vmem:[%s5043_s26 + $0x70] sm:$0xff]  ;;  %v1394_v48 = vmul.f32 %v5179_v19, %v1314_v34  ;;  %v3159_v34 = vld [vmem:[%s5043_s26 + $0x78] sm:$0xff] }
 0x153   :  { %v1144_v22 = vadd.f32 %v1128_v26, %v1012_v42  ;;  %v739_v26 = vmul.f32 %v710_v57, %v659_v35  ;;  %v5181_v42 = vld [vmem:[#allocation30_spill] sm:$0xff]  ;;  %v3158_v57 = vld [vmem:[%s5043_s26 + $0x60] sm:$0xff]  ;;  %v5182_v35 = vld [vmem:[#allocation28_spill] sm:$0xff] }
 0x154   :  { %v1410_v0 = vadd.f32 %v1394_v48, %v1278_v54  ;;  %v380_v15 = vmul.f32 %v5181_v42, %v3670_v27  ;;  %v344_v54 = vmul.f32 %v3689_v40, %v4006_v32  ;;  %v5183_v48 = vld [vmem:[#allocation22_spill] sm:$0xff] }
 0x155   :  { %v4215_v17 = vpop.permute.xlu1 %829  ;;  %v1276_v12 = vadd.f32 %v1260_v20, %v1144_v22 }
 0x156   :  { %985 = vperm.xlu1 %3002, %v3156_v59   ;;  %v4255_v21 = vadd.f32 %v3946_v33, %v1410_v0 }
 0x15a   :  { %989 = vperm.xlu1 %3002, %v3581_v61   ;;  %v1342_v13 = vpop.permute.xlu1 %1341  ;;  %v607_v61 = vmul.f32 %v4113_v30, %v527_v18  ;;  %v791_v30 = vmul.f32 %v5181_v42, %v3725_v51 }
 0x15b   :  { %v1392_v11 = vmul.f32 %v1342_v13, %v1312_v47 }
 0x15c   :  { %v623_v7 = vadd.f32 %v607_v61, %v491_v43 }
 0x15d   :  { %v1408_v50 = vadd.f32 %v1392_v11, %v1276_v12 }
 0x15e   :  { %3004 = vset.pattern.permute.xlu1 %v5180_v16  ;;  %v1346_v31 = vpop.permute.xlu1 %1345  ;;  %v755_v53 = vadd.f32 %v739_v26, %v623_v7  ;;  %v5184_v16 = vld [vmem:[#allocation52_spill] sm:$0xff]  ;;  %v5185_v26 = vld [vmem:[#allocation7_spill] sm:$0xff] }
 0x15f   :  { %v1393_v60 = vmul.f32 %v1346_v31, %v1313_v4  ;;  %1113 = vperm.xlu1 %3004, %v3157_v38   ;;  %v4247_v41 = vadd.f32 %v3946_v33, %v1408_v50  ;;  %v347_v50 = vmul.f32 %v3689_v40, %v5183_v48  ;;  %v531_v31 = vmul.f32 %v3694_v10, %v5184_v16  ;;  %v5187_v40 = vld [vmem:[#allocation35_spill] sm:$0xff] }
 0x160   :  { %v1051_v42 = vmul.f32 %v3748_v28, %v5185_v26 }
 0x161   :  { %v4251_v23 = vadd.f32 %v1393_v60, %v1277_v24  ;;  %1451 = vadd.xlane.f32.xlu0 %v4247_v41 }
 0x163   :  { %1117 = vperm.xlu1 %3004, %v3156_v59   ;;  %v842_v63 = vpop.permute.xlu1 %841 }
 0x164   :  { %v871_v20 = vmul.f32 %v842_v63, %v791_v30  ;;  %v5186_v30 = vld [vmem:[#allocation14_spill] sm:$0xff] }
 0x165   :  { %1455 = vadd.xlane.f32.xlu0 %v4255_v21  ;;  %v1298_v63 = vld [vmem:[#allocation2 + $0x69] sm:$0xff] }
 0x166   :  { %v4258_v47 = vadd.f32 %v871_v20, %v755_v53  ;;  %v1183_v53 = vmul.f32 %v3734_v2, %v5187_v40  ;;  %v660_v10 = vmul.f32 %v1298_v63, %v3721_v56  ;;  %v5188_v20 = vld [vmem:[#allocation15_spill] sm:$0xff] }
 0x167   :  { %3006 = vset.pattern.permute.xlu1 %v5133_v49 }
 0x168   :  { %1241 = vperm.xlu1 %3006, %v3158_v57   ;;  %v1354_v52 = vpop.permute.xlu1 %1353  ;;  %v1131_v57 = vmul.f32 %v5188_v20, %v1051_v42  ;;  %v1234_v42 = vpop.permute.xlu0 %1233 }
 0x16c   :  { %1249 = vperm.xlu1 %3006, %v3156_v59   ;;  %v4334_v20 = vpop.permute.xlu0 %1245 }
 0x16d   :  { %v447_v22 = vpop.permute.xlu1 %446 }
 0x16e   :  { %v476_v12 = vmul.f32 %v447_v22, %v380_v15  ;;  %v5189_v22 = vld [vmem:[#allocation12_spill] sm:$0xff]  ;;  %v5191_v15 = vld [vmem:[#allocation27_spill] sm:$0xff] }
 0x170   :  { %1253 = vperm.xlu1 %3006, %v3159_v34   ;;  %v492_v5 = vadd.f32 %v476_v12, %v344_v54  ;;  %v1315_v34 = vmul.f32 %v3807_v25, %v5189_v22  ;;  %v1263_v12 = vmul.f32 %v4201_v8, %v1183_v53  ;;  %v4317_v8 = vadd.f32 %v3946_v33, %v4251_v23 }
 0x171   :  { %v788_v23 = vmul.f32 %v3725_v51, %v5185_v26  ;;  %v920_v53 = vmul.f32 %v5189_v22, %v3746_v3  ;;  %v1186_v26 = vmul.f32 %v3734_v2, %v5176_v1 }
 0x172   :  { %v4267_v18 = vpop.permute.xlu1 %961 }
 0x174   :  { %3008 = vset.pattern.permute.xlu1 %v5163_v44 }
 0x175   :  { %1377 = vperm.xlu1 %3008, %v3157_v38   ;;  %v919_v38 = vmul.f32 %v3746_v3, %v5173_v45  ;;  %v5190_v45 = vld [vmem:[#allocation50_spill] sm:$0xff] }
 0x176   :  { %v4270_v13 = vpop.permute.xlu1 %965 }
 0x177   :  { %v999_v7 = vmul.f32 %v5186_v30, %v919_v38 }
 0x179   :  { %1381 = vperm.xlu1 %3008, %v3156_v59   ;;  %v383_v59 = vmul.f32 %v3670_v27, %v5182_v35  ;;  %v1015_v54 = vadd.f32 %v999_v7, %v5191_v15  ;;  %v5194_v15 = vld [vmem:[#allocation43_spill] sm:$0xff] }
 0x17a   :  { %v1316_v1 = vmul.f32 %v3807_v25, %v5194_v15 }
 0x17b   :  { %v462_v49 = vpop.permute.xlu1 %461 }
 0x17c   :  { %v479_v61 = vmul.f32 %v462_v49, %v383_v59  ;;  %v4303_v49 = vadd.f32 %v3946_v33, %v5190_v45  ;;  %v5192_v59 = vld [vmem:[#allocation38_spill] sm:$0xff]  ;;  %v1000_v45 = vmul.f32 %v4267_v18, %v920_v53  ;;  %v1185_v18 = vmul.f32 %v3734_v2, %v5174_v55 }
 0x17e   :  { %v495_v24 = vadd.f32 %v479_v61, %v347_v50  ;;  %v4310_v50 = vadd.f32 %v3946_v33, %v5192_v59 }
 0x180   :  { %v4274_v4 = vpop.permute.xlu1 %973 }
 0x185   :  { %v582_v11 = vpop.permute.xlu1 %581 }
 0x186   :  { %v608_v44 = vmul.f32 %v582_v11, %v528_v46 }
 0x188   :  { %v624_v58 = vadd.f32 %v608_v44, %v492_v5  ;;  %v1147_v5 = vadd.f32 %v1131_v57, %v1015_v54  ;;  %v1395_v44 = vmul.f32 %v1354_v52, %v1315_v34  ;;  %v868_v57 = vmul.f32 %v4215_v17, %v788_v23  ;;  %v5193_v34 = vld [vmem:[#allocation26_spill] sm:$0xff]  ;;  %v5196_v23 = vld [vmem:[#allocation20_spill] sm:$0xff] }
 0x189   :  { %v921_v54 = vmul.f32 %v3746_v3, %v5194_v15  ;;  %v1053_v17 = vmul.f32 %v3748_v28, %v3998_v39 }
 0x18a   :  { %v1094_v36 = vpop.permute.xlu1 %1093  ;;  %v884_v22 = vadd.f32 %v868_v57, %v4173_v9 }
 0x18c   :  { %v1016_v59 = vadd.f32 %v1000_v45, %v884_v22 }
 0x18e   :  { %v4282_v19 = vpop.permute.xlu1 %1097 }
 0x193   :  { %v594_v0 = vpop.permute.xlu1 %593 }
 0x194   :  { %v611_v60 = vmul.f32 %v594_v0, %v531_v31  ;;  %v1279_v31 = vadd.f32 %v1263_v12, %v1147_v5  ;;  %v5195_v12 = vld [vmem:[#allocation19_spill] sm:$0xff]  ;;  %v1318_v5 = vmul.f32 %v3807_v25, %v1298_v63 }
 0x196   :  { %v627_v43 = vadd.f32 %v611_v60, %v495_v24  ;;  %v1411_v24 = vadd.f32 %v1395_v44, %v1279_v31  ;;  %v4320_v60 = vld [vmem:[#allocation2 + $0x81] sm:$0xff]  ;;  %v1366_v44 = vpop.permute.xlu0 %1365  ;;  %v1001_v31 = vmul.f32 %v4270_v13, %v921_v54 }
 0x198   :  { %v4292_v27 = vpop.permute.xlu1 %1105  ;;  %v4323_v38 = vadd.f32 %v3946_v33, %v1411_v24  ;;  %v1017_v53 = vadd.f32 %v1001_v31, %v5196_v23 }
 0x19d   :  { %v714_v46 = vpop.permute.xlu1 %713  ;;  %1443 = vadd.xlane.f32.xlu1 %v4303_v49 }
 0x19e   :  { %v740_v11 = vmul.f32 %v714_v46, %v660_v10 }
 0x1a0   :  { %v4312_v61 = vadd.f32 %v740_v11, %v624_v58  ;;  %v663_v58 = vmul.f32 %v3721_v56, %v4320_v60  ;;  %v1052_v56 = vmul.f32 %v3748_v28, %v5193_v34 }
 0x1a1   :  { %1449 = vadd.xlane.f32.xlu1 %v4310_v50 }
 0x1a2   :  { %v1226_v0 = vpop.permute.xlu1 %1225  ;;  %v1132_v46 = vmul.f32 %v1094_v36, %v1052_v56  ;;  %v1133_v36 = vmul.f32 %v4282_v19, %v1053_v17  ;;  %v5197_v56 = vld [vmem:[#allocation54_spill] sm:$0xff] }
 0x1a4   :  { %v1148_v9 = vadd.f32 %v1132_v46, %v1016_v59  ;;  %v1149_v45 = vadd.f32 %v1133_v36, %v1017_v53 }
 0x1a5   :  { %1453 = vadd.xlane.f32.xlu1 %v4317_v8 }
 0x1a6   :  { %v1230_v52 = vpop.permute.xlu1 %1229 }
 0x1a7   :  { %v1265_v57 = vmul.f32 %v1230_v52, %v1185_v18  ;;  %v1187_v52 = vmul.f32 %v3734_v2, %v4006_v32  ;;  %v5199_v32 = vld [vmem:[#allocation37_spill] sm:$0xff] }
 0x1a8   :  { %v924_v36 = vmul.f32 %v5199_v32, %v3746_v3 }
 0x1a9   :  { %1457 = vadd.xlane.f32.xlu1 %v4323_v38 }
 0x1ab   :  { %v726_v30 = vpop.permute.xlu1 %725 }
 0x1ac   :  { %v743_v7 = vmul.f32 %v726_v30, %v663_v58  ;;  %v1266_v58 = vmul.f32 %v1234_v42, %v1186_v26  ;;  %v1398_v30 = vmul.f32 %v1366_v44, %v1318_v5  ;;  %v5198_v42 = vld [vmem:[#allocation11_spill] sm:$0xff] }
 0x1ad   :  { %v1055_v54 = vmul.f32 %v3748_v28, %v5198_v42 }
 0x1ae   :  { %v4330_v40 = vadd.f32 %v743_v7, %v627_v43  ;;  %v1184_v43 = vmul.f32 %v3734_v2, %v5195_v12  ;;  %v1317_v7 = vmul.f32 %v3807_v25, %v5178_v29  ;;  %v1282_v13 = vadd.f32 %v1266_v58, %v5197_v56 }
 0x1b0   :  { %v1238_v10 = vpop.permute.xlu1 %1237  ;;  %v1264_v24 = vmul.f32 %v1226_v0, %v1184_v43  ;;  %v923_v0 = vmul.f32 %v1298_v63, %v3746_v3  ;;  %v1414_v12 = vadd.f32 %v1398_v30, %v1282_v13  ;;  %v1281_v43 = vadd.f32 %v1265_v57, %v1149_v45  ;;  %v5200_v30 = vld [vmem:[#allocation16_spill] sm:$0xff]  ;;  %v5201_v57 = vld [vmem:[#allocation13_spill] sm:$0xff]  ;;  %v1039_v13 = vld [vmem:[#allocation2 + $0x8f] sm:$0xff] }
 0x1b1   :  { %v1135_v63 = vmul.f32 %v4292_v27, %v1055_v54  ;;  %v1267_v59 = vmul.f32 %v1238_v10, %v1187_v52  ;;  %v792_v27 = vmul.f32 %v3725_v51, %v5198_v42  ;;  %v1059_v54 = vmul.f32 %v3748_v28, %v1039_v13 }
 0x1b2   :  { %v1280_v55 = vadd.f32 %v1264_v24, %v1148_v9  ;;  %v1003_v22 = vmul.f32 %v4274_v4, %v923_v0  ;;  %v4375_v18 = vadd.f32 %v3946_v33, %v1414_v12  ;;  %v1319_v4 = vmul.f32 %v3807_v25, %v5199_v32 }
 0x1b4   :  { %v1019_v44 = vadd.f32 %v1003_v22, %v4258_v47  ;;  %v775_v47 = vld [vmem:[#allocation2 + $0x87] sm:$0xff] }
 0x1b5   :  { %v846_v11 = vpop.permute.xlu1 %845  ;;  %v795_v53 = vmul.f32 %v3725_v51, %v775_v47  ;;  %v5202_v51 = vld [vmem:[#allocation45_spill] sm:$0xff] }
 0x1b6   :  { %v1151_v31 = vadd.f32 %v1135_v63, %v1019_v44  ;;  %v872_v9 = vmul.f32 %v846_v11, %v792_v27  ;;  %v907_v11 = vld [vmem:[#allocation2 + $0x89] sm:$0xff]  ;;  %v3160_v63 = vld [vmem:[%s4953_s5 + $0x8] ss:$0 sm:$0xff]  ;;  %v5203_v44 = vld [vmem:[#allocation36_spill] sm:$0xff]  ;;  %v1374_v27 = vpop.permute.xlu0 %1373 }
 0x1b8   :  { %v888_v25 = vadd.f32 %v872_v9, %v4312_v61 }
 0x1ba   :  { %v1358_v39 = vpop.permute.xlu1 %1357 }
 0x1bb   :  { %v1396_v34 = vmul.f32 %v1358_v39, %v1316_v1  ;;  %v1283_v1 = vadd.f32 %v1267_v59, %v1151_v31  ;;  %v1056_v39 = vmul.f32 %v3748_v28, %v5200_v30  ;;  %v1188_v59 = vmul.f32 %v3734_v2, %v5203_v44  ;;  %v4409_v30 = vld [vmem:[#allocation2] sm:$0xff] }
 0x1bd   :  { %v1412_v15 = vadd.f32 %v1396_v34, %v1280_v55  ;;  %v1136_v34 = vmul.f32 %v5201_v57, %v1056_v39 }
 0x1be   :  { %v1362_v19 = vpop.permute.xlu1 %1361 }
 0x1bf   :  { %v1397_v26 = vmul.f32 %v1362_v19, %v1317_v7  ;;  %v4364_v29 = vadd.f32 %v3946_v33, %v1412_v15  ;;  %v927_v15 = vmul.f32 %v3746_v3, %v907_v11 }
 0x1c1   :  { %v1413_v46 = vadd.f32 %v1397_v26, %v1281_v43  ;;  %1459 = vadd.xlane.f32.xlu0 %v4364_v29  ;;  %v1139_v43 = vmul.f32 %v5202_v51, %v1059_v54  ;;  %v1322_v51 = vmul.f32 %v3160_v63, %v907_v11 }
 0x1c3   :  { %v858_v17 = vpop.permute.xlu1 %857  ;;  %v4372_v5 = vadd.f32 %v3946_v33, %v1413_v46 }
 0x1c4   :  { %v875_v45 = vmul.f32 %v858_v17, %v795_v53  ;;  %v1320_v17 = vmul.f32 %v3160_v63, %v4127_v37  ;;  %v1191_v37 = vmul.f32 %v4409_v30, %v3734_v2 }
 0x1c5   :  { %1461 = vadd.xlane.f32.xlu1 %v4372_v5  ;;  %1463 = vadd.xlane.f32.xlu0 %v4375_v18 }
 0x1c6   :  { %v891_v61 = vadd.f32 %v875_v45, %v4330_v40  ;;  %v1057_v40 = vmul.f32 %v3748_v28, %v5182_v35  ;;  %v1400_v31 = vmul.f32 %v1374_v27, %v1320_v17  ;;  %v1189_v35 = vmul.f32 %v3734_v2, %v5184_v16 }
 0x1c7   :  { %v1190_v45 = vmul.f32 %v3734_v2, %v5183_v48 }
 0x1c8   :  { %v1370_v24 = vpop.permute.xlu1 %1369 }
 0x1c9   :  { %v1399_v58 = vmul.f32 %v1370_v24, %v1319_v4 }
 0x1cb   :  { %v1415_v10 = vadd.f32 %v1399_v58, %v1283_v1  ;;  %v926_v58 = vmul.f32 %v3746_v3, %v4320_v60 }
 0x1cd   :  { %v978_v7 = vpop.permute.xlu1 %977  ;;  %v4389_v23 = vadd.f32 %v3946_v33, %v1415_v10 }
 0x1ce   :  { %v1004_v55 = vmul.f32 %v978_v7, %v924_v36  ;;  %v1303_v36 = vld [vmem:[#allocation2 + $0x91] sm:$0xff]  ;;  %v1386_v7 = vpop.permute.xlu0 %1385 }
 0x1cf   :  { %1465 = vadd.xlane.f32.xlu1 %v4389_v23 }
 0x1d0   :  { %v1020_v56 = vadd.f32 %v1004_v55, %v888_v25  ;;  %v1058_v25 = vmul.f32 %v3748_v28, %v775_v47  ;;  %v1323_v55 = vmul.f32 %v3160_v63, %v1303_v36 }
 0x1d1   :  { %v986_v0 = vpop.permute.xlu1 %985 }
 0x1d2   :  { %v1152_v42 = vadd.f32 %v1136_v34, %v1020_v56  ;;  %v1006_v3 = vmul.f32 %v986_v0, %v926_v58  ;;  %v1269_v56 = vmul.f32 %v4334_v20, %v1189_v35  ;;  %v1403_v16 = vmul.f32 %v1386_v7, %v1323_v55  ;;  %v1446_v47 = vpop.xlane.xlu0 %1445 }
 0x1d5   :  { %v990_v19 = vpop.permute.xlu1 %989 }
 0x1d6   :  { %v1007_v12 = vmul.f32 %v990_v19, %v927_v15  ;;  %v1321_v15 = vmul.f32 %v3160_v63, %v4320_v60  ;;  %v1448_v17 = vpop.xlane.xlu0 %1447 }
 0x1d7   :  { %v4446_v44 = vmul.f32 0.03125, %v1448_v17 }
 0x1d8   :  { %v1023_v26 = vadd.f32 %v1007_v12, %v891_v61 }
 0x1da   :  { %v1114_v22 = vpop.permute.xlu1 %1113  ;;  %v1155_v52 = vadd.f32 %v1139_v43, %v1023_v26  ;;  %v4426_v43 = vmul.f32 0.03125, %v1446_v47 }
 0x1db   :  { %v1137_v10 = vmul.f32 %v1114_v22, %v1057_v40 }
 0x1dd   :  { %v1153_v57 = vadd.f32 %v1137_v10, %v4179_v62 }
 0x1de   :  { %v1118_v46 = vpop.permute.xlu1 %1117 }
 0x1df   :  { %v1138_v13 = vmul.f32 %v1118_v46, %v1058_v25  ;;  %v1285_v19 = vadd.f32 %v1269_v56, %v1153_v57  ;;  %v3025_v57 = vld [vmem:[%s4957_s9 + $0x38] sm:$0xff]  }
 0x1e0   :  { %2833 = vmatprep.subr.bf16.mxu1 %v3025_v57 }
 0x1e1   :  { %2834 = vmatpush3.bf16.msra.mxu1 %v3025_v57 }
 0x1e3   :  { %v1242_v32 = vpop.permute.xlu1 %1241 }
 0x1e4   :  { %v1268_v4 = vmul.f32 %v1242_v32, %v1188_v59 }
 0x1e6   :  { %v1284_v24 = vadd.f32 %v1268_v4, %v1152_v42  ;;  %v1022_v42 = vadd.f32 %v1006_v3, %v4175_v6  ;;  %v5204_v6 = vld [vmem:[#allocation10_spill] sm:$0xff] }
 0x1e7   :  { %v1250_v1 = vpop.permute.xlu1 %1249 }
 0x1e8   :  { %v1416_v9 = vadd.f32 %v1400_v31, %v1284_v24  ;;  %v1270_v54 = vmul.f32 %v1250_v1, %v1190_v45  ;;  %v1154_v12 = vadd.f32 %v1138_v13, %v1022_v42  ;;  %v3028_v13 = vld [vmem:[%s4957_s9 + $0x20] sm:$0xff]   ;;  %v3029_v45 = vld [vmem:[%s4957_s9 + $0x18] sm:$0xff]  }
 0x1ea   :  { %v4414_v39 = vadd.f32 %v3946_v33, %v1416_v9  ;;  %v1286_v26 = vadd.f32 %v1270_v54, %v1154_v12  ;;  %v1452_v59 = vpop.xlane.xlu0 %1451 }
 0x1eb   :  { %v1254_v53 = vpop.permute.xlu1 %1253  ;;  %v4458_v31 = vmul.f32 0.03125, %v1452_v59 }
 0x1ec   :  { %1467 = vadd.xlane.f32.xlu0 %v4414_v39  ;;  %v1271_v34 = vmul.f32 %v1254_v53, %v1191_v37 }
 0x1ee   :  { %v1287_v0 = vadd.f32 %v1271_v34, %v1155_v52  ;;  %v4434_v52 = vsub.f32 %v5204_v6, %v4426_v43  ;;  %v1456_v58 = vpop.xlane.xlu0 %1455  ;;  %v3027_v34 = vld [vmem:[%s4957_s9 + $0x28] sm:$0xff]  }
 0x1ef   :  { %v4474_v10 = vmul.f32 0.03125, %v1456_v58 }
 0x1f0   :  { %v1378_v28 = vpop.permute.xlu1 %1377  ;;  %v1419_v22 = vadd.f32 %v1403_v16, %v1287_v0  ;;  %v1508_v63 = vmul.f32 %v4434_v52, %v4434_v52 }
 0x1f1   :  { %v1401_v61 = vmul.f32 %v1378_v28, %v1321_v15  ;;  %v4486_v25 = vsub.f32 %v4255_v21, %v4474_v10 }
 0x1f2   :  { %v4437_v46 = vadd.f32 %v3946_v33, %v1419_v22 }
 0x1f3   :  { %v1417_v62 = vadd.f32 %v1401_v61, %v1285_v19  ;;  %v1513_v21 = vmul.f32 %v4486_v25, %v4486_v25  ;;  %v3030_v19 = vld [vmem:[%s4957_s9 + $0x10] sm:$0xff]  }
 0x1f4   :  { %v1382_v20 = vpop.permute.xlu1 %1381 }
 0x1f5   :  { %v1402_v2 = vmul.f32 %v1382_v20, %v1322_v51  ;;  %v4429_v48 = vadd.f32 %v3946_v33, %v1417_v62  ;;  %v3031_v51 = vld [vmem:[%s4957_s9 + $0x8] sm:$0xff]  }
 0x1f7   :  { %v1418_v60 = vadd.f32 %v1402_v2, %v1286_v26  ;;  %1469 = vadd.xlane.f32.xlu1 %v4429_v48 }
 0x1f9   :  { %v4440_v11 = vadd.f32 %v3946_v33, %v1418_v60  ;;  %v4456_v33 = vsub.f32 %v4160_v14, %v4446_v44  ;;  %v4472_v14 = vsub.f32 %v4247_v41, %v4458_v31 }
 0x1fb   :  { %1473 = vadd.xlane.f32.xlu1 %v4437_v46  ;;  %1471 = vadd.xlane.f32.xlu0 %v4440_v11  ;;  %v1509_v36 = vmul.f32 %v4456_v33, %v4456_v33  ;;  %v1511_v55 = vmul.f32 %v4472_v14, %v4472_v14 }
 0x1ff   :  { %1525 = vadd.xlane.f32.xlu1 %v1508_v63 }
 0x226   :  { %v1444_v32 = vpop.xlane.xlu1 %1443 }
 0x227   :  { %v4448_v4 = vmul.f32 0.03125, %v1444_v32 }
 0x229   :  { %v4452_v27 = vsub.f32 %v4303_v49, %v4448_v4 }
 0x22a   :  { %v1450_v40 = vpop.xlane.xlu1 %1449 }
 0x22b   :  { %v4460_v24 = vmul.f32 0.03125, %v1450_v40  ;;  %v1507_v1 = vmul.f32 %v4452_v27, %v4452_v27 }
 0x22d   :  { %v4466_v9 = vsub.f32 %v4310_v50, %v4460_v24  ;;  %1523 = vadd.xlane.f32.xlu0 %v1507_v1 }
 0x22e   :  { %v1454_v49 = vpop.xlane.xlu1 %1453 }
 0x22f   :  { %v4476_v37 = vmul.f32 0.03125, %v1454_v49  ;;  %v1510_v35 = vmul.f32 %v4466_v9, %v4466_v9 }
 0x231   :  { %v4482_v50 = vsub.f32 %v4317_v8, %v4476_v37  ;;  %1529 = vadd.xlane.f32.xlu1 %v1510_v35  ;;  %1527 = vadd.xlane.f32.xlu0 %v1509_v36 }
 0x232   :  { %v1458_v7 = vpop.xlane.xlu1 %1457 }
 0x233   :  { %v4488_v41 = vmul.f32 0.03125, %v1458_v7  ;;  %v1512_v53 = vmul.f32 %v4482_v50, %v4482_v50  ;;  %v1572_v7 = vmul.f32 %v4426_v43, %v4426_v43  ;;  %v1575_v43 = vmul.f32 %v4458_v31, %v4458_v31 }
 0x235   :  { %v4496_v3 = vsub.f32 %v4323_v38, %v4488_v41  ;;  %1533 = vadd.xlane.f32.xlu1 %v1512_v53  ;;  %1531 = vadd.xlane.f32.xlu0 %v1511_v55  ;;  %v3026_v38 = vld [vmem:[%s4957_s9 + $0x30] sm:$0xff]   ;;  %v1578_v31 = vmul.f32 %v4488_v41, %v4488_v41 }
 0x236   :  { %2835 = vmatprep.subr.bf16.mxu1 %v3026_v38 }
 0x237   :  { %v1514_v8 = vmul.f32 %v4496_v3, %v4496_v3  ;;  %2836 = vmatpush3.bf16.msra.mxu1 %v3026_v38 }
 0x238   :  { %2837 = vmatprep.subr.bf16.mxu1 %v3027_v34 }
 0x239   :  { %1537 = vadd.xlane.f32.xlu1 %v1514_v8  ;;  %1535 = vadd.xlane.f32.xlu0 %v1513_v21  ;;  %v1573_v21 = vmul.f32 %v4446_v44, %v4446_v44 }
 0x23b   :  { %2838 = vmatpush3.bf16.msra.mxu1 %v3027_v34  ;;  %v1574_v34 = vmul.f32 %v4460_v24, %v4460_v24  ;;  %v1591_v24 = vmul.f32 3.0, %v1575_v43  ;;  %v4618_v43 = vld [vmem:[%s4956_s8] ss:$0 sm:$0xff] }
 0x23c   :  { %2839 = vmatprep.subr.bf16.mxu1 %v3028_v13 }
 0x23f   :  { %2840 = vmatpush3.bf16.msra.mxu1 %v3028_v13 }
 0x240   :  { %2841 = vmatprep.subr.bf16.mxu1 %v3029_v45 }
 0x243   :  { %2842 = vmatpush3.bf16.msra.mxu1 %v3029_v45  ;;  %v1589_v45 = vmul.f32 3.0, %v1573_v21 }
 0x244   :  { %2843 = vmatprep.subr.bf16.mxu1 %v3030_v19 }
 0x247   :  { %2844 = vmatpush3.bf16.msra.mxu1 %v3030_v19 }
 0x248   :  { %2845 = vmatprep.subr.bf16.mxu1 %v3031_v51 }
 0x24a   :  { %v1460_v56 = vpop.xlane.xlu0 %1459 }
 0x24b   :  { %v4517_v15 = vmul.f32 0.03125, %v1460_v56  ;;  %2846 = vmatpush3.bf16.msra.mxu1 %v3031_v51 }
 0x24d   :  { %v4521_v16 = vsub.f32 %v4364_v29, %v4517_v15 }
 0x24e   :  { %v1462_v42 = vpop.xlane.xlu1 %1461  ;;  %v1464_v28 = vpop.xlane.xlu0 %1463 }
 0x24f   :  { %v4523_v47 = vmul.f32 0.03125, %v1462_v42  ;;  %v4525_v54 = vmul.f32 0.03125, %v1464_v28  ;;  %v1515_v0 = vmul.f32 %v4521_v16, %v4521_v16  ;;  %v1576_v42 = vmul.f32 %v4476_v37, %v4476_v37 }
 0x251   :  { %v4534_v61 = vsub.f32 %v4372_v5, %v4523_v47  ;;  %v4538_v29 = vsub.f32 %v4375_v18, %v4525_v54  ;;  %1539 = vadd.xlane.f32.xlu0 %v1515_v0  ;;  %v3032_v5 = vld [vmem:[%s4957_s9] sm:$0xff]   ;;  %v1590_v0 = vmul.f32 3.0, %v1574_v34 }
 0x252   :  { %2847 = vmatprep.subr.bf16.mxu1 %v3032_v5  ;;  %v4611_v34 = vld [vmem:[%s4955_s7] ss:$0 sm:$0xff] }
 0x253   :  { %v1516_v12 = vmul.f32 %v4534_v61, %v4534_v61  ;;  %v1517_v62 = vmul.f32 %v4538_v29, %v4538_v29  ;;  %2848 = vmatpush3.bf16.msra.mxu1 %v3032_v5  ;;  %v1577_v5 = vmul.f32 %v4474_v10, %v4474_v10 }
 0x254   :  { %2897 = vmatprep.subr.mxu1 %v4409_v30 }
 0x255   :  { %1541 = vadd.xlane.f32.xlu1 %v1516_v12  ;;  %1543 = vadd.xlane.f32.xlu0 %v1517_v62 }
 0x258   :  { %v1466_v18 = vpop.xlane.xlu1 %1465 }
 0x259   :  { %v4550_v20 = vmul.f32 0.03125, %v1466_v18  ;;  %v1592_v18 = vmul.f32 3.0, %v1576_v42 }
 0x25b   :  { %v4554_v26 = vsub.f32 %v4389_v23, %v4550_v20 }
 0x25d   :  { %v1518_v22 = vmul.f32 %v4554_v26, %v4554_v26 }
 0x25f   :  { %1545 = vadd.xlane.f32.xlu1 %v1518_v22 }
 0x275   :  { %v1468_v2 = vpop.xlane.xlu0 %1467 }
 0x276   :  { %v4559_v60 = vmul.f32 0.03125, %v1468_v2 }
 0x278   :  { %v4563_v6 = vsub.f32 %v4414_v39, %v4559_v60 }
 0x27a   :  { %v1519_v63 = vmul.f32 %v4563_v6, %v4563_v6 }
 0x27c   :  { %1547 = vadd.xlane.f32.xlu0 %v1519_v63 }
 0x280   :  { %v1470_v23 = vpop.xlane.xlu1 %1469 }
 0x281   :  { %v4567_v17 = vmul.f32 0.03125, %v1470_v23 }
 0x283   :  { %v4571_v59 = vsub.f32 %v4429_v48, %v4567_v17 }
 0x284   :  { %v1474_v32 = vpop.xlane.xlu1 %1473  ;;  %v1472_v30 = vpop.xlane.xlu0 %1471 }
 0x285   :  { %v4573_v40 = vmul.f32 0.03125, %v1474_v32  ;;  %v4575_v1 = vmul.f32 0.03125, %v1472_v30  ;;  %v1520_v39 = vmul.f32 %v4571_v59, %v4571_v59 }
 0x287   :  { %v4581_v58 = vsub.f32 %v4437_v46, %v4573_v40  ;;  %v4585_v49 = vsub.f32 %v4440_v11, %v4575_v1  ;;  %1549 = vadd.xlane.f32.xlu1 %v1520_v39  ;;  %v1588_v46 = vmul.f32 3.0, %v1572_v7  ;;  %v1571_v11 = vmul.f32 %v4448_v4, %v4448_v4 }
 0x288   :  { %v1526_v35 = vpop.xlane.xlu1 %1525 }
 0x289   :  { %v1522_v48 = vmul.f32 %v4581_v58, %v4581_v58  ;;  %v1521_v36 = vmul.f32 %v4585_v49, %v4585_v49  ;;  %v1556_v53 = vmul.f32 0.03125, %v1526_v35  ;;  %v1587_v38 = vmul.f32 3.0, %v1571_v11 }
 0x28b   :  { %1553 = vadd.xlane.f32.xlu1 %v1522_v48  ;;  %1551 = vadd.xlane.f32.xlu0 %v1521_v36  ;;  %v1604_v55 = vsub.f32 %v1556_v53, %v1588_v46  ;;  %v1593_v48 = vmul.f32 3.0, %v1577_v5  ;;  %v1594_v36 = vmul.f32 3.0, %v1578_v31 }
 0x28d   :  { %v1620_v8 = vadd.f32 1e-06, %v1604_v55 }
 0x28f   :  { %3089 = vrsqrt.f32 %v1620_v8 }
 0x29c   :  { %v3090_v11 = vpop.eup %3089 }
 0x2b6   :  { %v1524_v57 = vpop.xlane.xlu0 %1523 }
 0x2b7   :  { %v1555_v56 = vmul.f32 0.03125, %v1524_v57 }
 0x2b9   :  { %v1603_v13 = vsub.f32 %v1555_v56, %v1587_v38  ;;  %v1652_v38 = vmul.f32 %v3090_v11, %v4434_v52 }
 0x2ba   :  { %v1530_v4 = vpop.xlane.xlu1 %1529  ;;  %v1528_v28 = vpop.xlane.xlu0 %1527 }
 0x2bb   :  { %v1619_v19 = vadd.f32 1e-06, %v1603_v13  ;;  %v1558_v44 = vmul.f32 0.03125, %v1530_v4  ;;  %v1557_v12 = vmul.f32 0.03125, %v1528_v28 }
 0x2bd   :  { %3091 = vrsqrt.f32 %v1619_v19  ;;  %v1606_v62 = vsub.f32 %v1558_v44, %v1590_v0  ;;  %v1605_v51 = vsub.f32 %v1557_v12, %v1589_v45  ;;  %v1675_v45 = vmul.f32 %v4611_v34, %v1652_v38 }
 0x2be   :  { %v1534_v22 = vpop.xlane.xlu1 %1533  ;;  %v1532_v2 = vpop.xlane.xlu0 %1531 }
 0x2bf   :  { %v1622_v37 = vadd.f32 1e-06, %v1606_v62  ;;  %v1621_v63 = vadd.f32 1e-06, %v1605_v51  ;;  %v1560_v23 = vmul.f32 0.03125, %v1534_v22  ;;  %v1559_v32 = vmul.f32 0.03125, %v1532_v2 }
 0x2c0   :  { %v1698_v0 = vadd.f32 %v4618_v43, %v1675_v45  ;;  %v1582_v45 = vmul.f32 %v4550_v20, %v4550_v20 }
 0x2c1   :  { %3093 = vrsqrt.f32 %v1622_v37  ;;  %v1608_v30 = vsub.f32 %v1560_v23, %v1592_v18  ;;  %v1607_v39 = vsub.f32 %v1559_v32, %v1591_v24  ;;  %v1579_v23 = vmul.f32 %v4517_v15, %v4517_v15 }
 0x2c2   :  { %3095 = vrsqrt.f32 %v1621_v63  ;;  %v1538_v35 = vpop.xlane.xlu1 %1537  ;;  %v1536_v7 = vpop.xlane.xlu0 %1535  ;;  %v1581_v15 = vmul.f32 %v4525_v54, %v4525_v54 }
 0x2c3   :  { %v1624_v53 = vadd.f32 1e-06, %v1608_v30  ;;  %v1623_v10 = vadd.f32 1e-06, %v1607_v39  ;;  %v1562_v46 = vmul.f32 0.03125, %v1538_v35  ;;  %v1561_v55 = vmul.f32 0.03125, %v1536_v7 }
 0x2c5   :  { %3097 = vrsqrt.f32 %v1624_v53  ;;  %v1610_v41 = vsub.f32 %v1562_v46, %v1594_v36  ;;  %v1609_v8 = vsub.f32 %v1561_v55, %v1593_v48  ;;  %v1580_v48 = vmul.f32 %v4523_v47, %v4523_v47 }
 0x2c6   :  { %3099 = vrsqrt.f32 %v1623_v10  ;;  %v1595_v53 = vmul.f32 3.0, %v1579_v23  ;;  %v1597_v47 = vmul.f32 3.0, %v1581_v15 }
 0x2c7   :  { %v1626_v21 = vadd.f32 1e-06, %v1610_v41  ;;  %v1625_v57 = vadd.f32 1e-06, %v1609_v8  ;;  %v1596_v55 = vmul.f32 3.0, %v1580_v48 }
 0x2c9   :  { %3101 = vrsqrt.f32 %v1626_v21 }
 0x2ca   :  { %v3092_v56 = vpop.eup %3091  ;;  %3103 = vrsqrt.f32 %v1625_v57 }
 0x2cb   :  { %v1651_v13 = vmul.f32 %v3092_v56, %v4452_v27 }
 0x2cd   :  { %v1674_v42 = vmul.f32 %v4611_v34, %v1651_v13 }
 0x2ce   :  { %v3094_v52 = vpop.eup %3093 }
 0x2cf   :  { %v3096_v4 = vpop.eup %3095  ;;  %v1697_v28 = vadd.f32 %v4618_v43, %v1674_v42  ;;  %v1654_v19 = vmul.f32 %v3094_v52, %v4466_v9 }
 0x2d0   :  { %v1653_v44 = vmul.f32 %v3096_v4, %v4456_v33  ;;  %v1598_v4 = vmul.f32 3.0, %v1582_v45 }
 0x2d1   :  { %v1713_v27 = vpack.c.bf16 %v1698_v0, %v1697_v28  ;;  %v1677_v12 = vmul.f32 %v4611_v34, %v1654_v19 }
 0x2d2   :  { %v3098_v62 = vpop.eup %3097  ;;  %v1676_v51 = vmul.f32 %v4611_v34, %v1653_v44 }
 0x2d3   :  { %v3100_v24 = vpop.eup %3099  ;;  %2849 = vmatprep.mubr.bf16.mxu1 %v1713_v27  ;;  %v1700_v5 = vadd.f32 %v4618_v43, %v1677_v12  ;;  %v1656_v18 = vmul.f32 %v3098_v62, %v4482_v50 }
 0x2d4   :  { %v1699_v31 = vadd.f32 %v4618_v43, %v1676_v51  ;;  %v1655_v22 = vmul.f32 %v3100_v24, %v4472_v14 }
 0x2d5   :  { %v1679_v9 = vmul.f32 %v4611_v34, %v1656_v18 }
 0x2d6   :  { %v3102_v2 = vpop.eup %3101  ;;  %v1714_v33 = vpack.c.bf16 %v1700_v5, %v1699_v31  ;;  %v1678_v37 = vmul.f32 %v4611_v34, %v1655_v22 }
 0x2d7   :  { %v3104_v63 = vpop.eup %3103  ;;  %v1702_v32 = vadd.f32 %v4618_v43, %v1679_v9  ;;  %v1658_v30 = vmul.f32 %v3102_v2, %v4496_v3 }
 0x2d8   :  { %2850 = vmatmul.mubr.bf16.vlgmr.msra.gmra.mxu1 %v1714_v33  ;;  %v1701_v50 = vadd.f32 %v4618_v43, %v1678_v37  ;;  %v1657_v39 = vmul.f32 %v3104_v63, %v4486_v25  ;;  %v1583_v63 = vmul.f32 %v4559_v60, %v4559_v60  ;;  %v1585_v60 = vmul.f32 %v4575_v1, %v4575_v1 }
 0x2d9   :  { %v1681_v14 = vmul.f32 %v4611_v34, %v1658_v30 }
 0x2da   :  { %v1540_v36 = vpop.xlane.xlu0 %1539  ;;  %v1715_v35 = vpack.c.bf16 %v1702_v32, %v1701_v50  ;;  %v1680_v7 = vmul.f32 %v4611_v34, %v1657_v39 }
 0x2db   :  { %v1563_v10 = vmul.f32 0.03125, %v1540_v36  ;;  %v1704_v3 = vadd.f32 %v4618_v43, %v1681_v14  ;;  %v1586_v36 = vmul.f32 %v4573_v40, %v4573_v40 }
 0x2dc   :  { %2853 = vmatprep.mubr.bf16.mxu1 %v1715_v35  ;;  %v1703_v46 = vadd.f32 %v4618_v43, %v1680_v7 }
 0x2dd   :  { %v1611_v25 = vsub.f32 %v1563_v10, %v1595_v53  ;;  %v1602_v15 = vmul.f32 3.0, %v1586_v36 }
 0x2de   :  { %v1542_v11 = vpop.xlane.xlu1 %1541  ;;  %v1544_v41 = vpop.xlane.xlu0 %1543  ;;  %v1716_v8 = vpack.c.bf16 %v1704_v3, %v1703_v46 }
 0x2df   :  { %v1627_v21 = vadd.f32 1e-06, %v1611_v25  ;;  %v1564_v57 = vmul.f32 0.03125, %v1542_v11  ;;  %v1565_v38 = vmul.f32 0.03125, %v1544_v41  ;;  %v1601_v25 = vmul.f32 3.0, %v1585_v60 }
 0x2e0   :  { %2854 = vmatmul.mubr.bf16.gmra.mxu1 %v1716_v8 }
 0x2e1   :  { %3105 = vrsqrt.f32 %v1627_v21  ;;  %v1612_v56 = vsub.f32 %v1564_v57, %v1596_v55  ;;  %v1613_v13 = vsub.f32 %v1565_v38, %v1597_v47 }
 0x2e3   :  { %v1628_v54 = vadd.f32 1e-06, %v1612_v56  ;;  %v1629_v42 = vadd.f32 1e-06, %v1613_v13 }
 0x2e5   :  { %3107 = vrsqrt.f32 %v1628_v54 }
 0x2e6   :  { %3109 = vrsqrt.f32 %v1629_v42 }
 0x2e8   :  { %v1546_v52 = vpop.xlane.xlu1 %1545 }
 0x2e9   :  { %v1566_v28 = vmul.f32 0.03125, %v1546_v52 }
 0x2eb   :  { %v1614_v0 = vsub.f32 %v1566_v28, %v1598_v4 }
 0x2ed   :  { %v1630_v19 = vadd.f32 1e-06, %v1614_v0 }
 0x2ee   :  { %v3106_v44 = vpop.eup %3105 }
 0x2ef   :  { %3111 = vrsqrt.f32 %v1630_v19  ;;  %v1659_v27 = vmul.f32 %v3106_v44, %v4521_v16  ;;  %v3033_v44 = vld [vmem:[%s4959_s11 + $0x38] sm:$0xff]  }
 0x2f0   :  { %2865 = vmatprep.subr.bf16.mxu0 %v3033_v44 }
 0x2f1   :  { %v1682_v51 = vmul.f32 %v4611_v34, %v1659_v27  ;;  %2866 = vmatpush3.bf16.msra.mxu0 %v3033_v44  ;;  %v3038_v27 = vld [vmem:[%s4959_s11 + $0x10] sm:$0xff]  }
 0x2f2   :  { %v3108_v12 = vpop.eup %3107 }
 0x2f3   :  { %v1660_v62 = vmul.f32 %v3108_v12, %v4534_v61  ;;  %v3110_v20 = vpop.eup %3109  ;;  %v1705_v5 = vadd.f32 %v4618_v43, %v1682_v51  ;;  %v3039_v12 = vld [vmem:[%s4959_s11 + $0x8] sm:$0xff]   ;;  %v4708_v51 = vld [vmem:[%s4958_s10] ss:$0 sm:$0xff] }
 0x2f4   :  { %v1661_v22 = vmul.f32 %v3110_v20, %v4538_v29  ;;  %v1599_v29 = vmul.f32 3.0, %v1583_v63 }
 0x2f5   :  { %v1683_v24 = vmul.f32 %v4611_v34, %v1660_v62  ;;  %v3040_v62 = vld [vmem:[%s4959_s11] sm:$0xff]  }
 0x2f6   :  { %v1684_v16 = vmul.f32 %v4611_v34, %v1661_v22 }
 0x2f7   :  { %v1706_v18 = vadd.f32 %v4618_v43, %v1683_v24 }
 0x2f8   :  { %v1707_v33 = vadd.f32 %v4618_v43, %v1684_v16 }
 0x2f9   :  { %v1717_v31 = vpack.c.bf16 %v1706_v18, %v1705_v5 }
 0x2fb   :  { %2857 = vmatprep.mubr.bf16.mxu1 %v1717_v31 }
 0x2fc   :  { %v3112_v9 = vpop.eup %3111 }
 0x2fd   :  { %v1662_v2 = vmul.f32 %v3112_v9, %v4554_v26  ;;  %v1584_v26 = vmul.f32 %v4567_v17, %v4567_v17 }
 0x2ff   :  { %v1685_v61 = vmul.f32 %v4611_v34, %v1662_v2  ;;  %v1600_v48 = vmul.f32 3.0, %v1584_v26 }
 0x301   :  { %v1708_v37 = vadd.f32 %v4618_v43, %v1685_v61 }
 0x303   :  { %v1718_v23 = vpack.c.bf16 %v1708_v37, %v1707_v33 }
 0x305   :  { %2858 = vmatmul.mubr.bf16.gmra.mxu1 %v1718_v23  ;;  %v1548_v32 = vpop.xlane.xlu0 %1547 }
 0x306   :  { %v1567_v30 = vmul.f32 0.03125, %v1548_v32 }
 0x308   :  { %v1615_v50 = vsub.f32 %v1567_v30, %v1599_v29 }
 0x30a   :  { %v1631_v39 = vadd.f32 1e-06, %v1615_v50 }
 0x30c   :  { %3113 = vrsqrt.f32 %v1631_v39 }
 0x310   :  { %v1550_v14 = vpop.xlane.xlu1 %1549 }
 0x311   :  { %v1568_v35 = vmul.f32 0.03125, %v1550_v14 }
 0x313   :  { %v1616_v7 = vsub.f32 %v1568_v35, %v1600_v48 }
 0x314   :  { %v1554_v53 = vpop.xlane.xlu1 %1553  ;;  %v1552_v46 = vpop.xlane.xlu0 %1551 }
 0x315   :  { %v1632_v10 = vadd.f32 1e-06, %v1616_v7  ;;  %v1570_v3 = vmul.f32 0.03125, %v1554_v53  ;;  %v1569_v55 = vmul.f32 0.03125, %v1552_v46 }
 0x317   :  { %3115 = vrsqrt.f32 %v1632_v10  ;;  %v1618_v17 = vsub.f32 %v1570_v3, %v1602_v15  ;;  %v1617_v11 = vsub.f32 %v1569_v55, %v1601_v25 }
 0x319   :  { %v1634_v41 = vadd.f32 1e-06, %v1618_v17  ;;  %v1633_v8 = vadd.f32 1e-06, %v1617_v11  ;;  %v3114_v40 = vpop.eup %3113 }
 0x31a   :  { %v1663_v47 = vmul.f32 %v3114_v40, %v4563_v6 }
 0x31b   :  { %3117 = vrsqrt.f32 %v1634_v41 }
 0x31c   :  { %3119 = vrsqrt.f32 %v1633_v8  ;;  %v1686_v57 = vmul.f32 %v4611_v34, %v1663_v47 }
 0x31e   :  { %v1709_v54 = vadd.f32 %v4618_v43, %v1686_v57 }
 0x324   :  { %v3116_v21 = vpop.eup %3115 }
 0x325   :  { %v1664_v1 = vmul.f32 %v3116_v21, %v4571_v59 }
 0x327   :  { %v1687_v38 = vmul.f32 %v4611_v34, %v1664_v1 }
 0x328   :  { %v3118_v56 = vpop.eup %3117 }
 0x329   :  { %v3120_v13 = vpop.eup %3119  ;;  %v1710_v45 = vadd.f32 %v4618_v43, %v1687_v38  ;;  %v1666_v42 = vmul.f32 %v3118_v56, %v4581_v58  ;;  %v3034_v58 = vld [vmem:[%s4959_s11 + $0x30] sm:$0xff]  }
 0x32a   :  { %v1665_v52 = vmul.f32 %v3120_v13, %v4585_v49  ;;  %2867 = vmatprep.subr.bf16.mxu0 %v3034_v58  ;;  %v3035_v49 = vld [vmem:[%s4959_s11 + $0x28] sm:$0xff]  }
 0x32b   :  { %v1719_v4 = vpack.c.bf16 %v1710_v45, %v1709_v54  ;;  %v1689_v6 = vmul.f32 %v4611_v34, %v1666_v42  ;;  %2868 = vmatpush3.bf16.msra.mxu0 %v3034_v58 }
 0x32c   :  { %v1688_v28 = vmul.f32 %v4611_v34, %v1665_v52  ;;  %2869 = vmatprep.subr.bf16.mxu0 %v3035_v49  ;;  %v3036_v34 = vld [vmem:[%s4959_s11 + $0x20] sm:$0xff]  }
 0x32d   :  { %2861 = vmatprep.mubr.bf16.mxu1 %v1719_v4  ;;  %v1712_v59 = vadd.f32 %v4618_v43, %v1689_v6 }
 0x32e   :  { %v1711_v0 = vadd.f32 %v4618_v43, %v1688_v28  ;;  %v3037_v43 = vld [vmem:[%s4959_s11 + $0x18] sm:$0xff]  }
 0x32f   :  { %2870 = vmatpush3.bf16.msra.mxu0 %v3035_v49 }
 0x330   :  { %v1720_v19 = vpack.c.bf16 %v1712_v59, %v1711_v0  ;;  %2871 = vmatprep.subr.bf16.mxu0 %v3036_v34 }
 0x332   :  { %2862 = vmatmul.mubr.bf16.gmra.mxu1 %v1720_v19 }
 0x333   :  { %2872 = vmatpush3.bf16.msra.mxu0 %v3036_v34 }
 0x334   :  { %2873 = vmatprep.subr.bf16.mxu0 %v3037_v43 }
 0x337   :  { %2874 = vmatpush3.bf16.msra.mxu0 %v3037_v43 }
 0x338   :  { %2875 = vmatprep.subr.bf16.mxu0 %v3038_v27 }
 0x33b   :  { %2876 = vmatpush3.bf16.msra.mxu0 %v3038_v27 }
 0x33c   :  { %2877 = vmatprep.subr.bf16.mxu0 %v3039_v12 }
 0x33f   :  { %2878 = vmatpush3.bf16.msra.mxu0 %v3039_v12 }
 0x340   :  { %2879 = vmatprep.subr.bf16.mxu0 %v3040_v62 }
 0x343   :  { %2880 = vmatpush3.bf16.msra.mxu0 %v3040_v62 }
 0x398   :  { %v2851_v24 = vpop.f32.mrf.mxu1 }
 0x399   :  { %v4711_v20 = vadd.f32 %v2851_v24, %v4708_v51 }
 0x39a   :  { %v1826_v5 = vpop.f32.mrf.mxu1 }
 0x39b   :  { %v1891_v18 = vmul.f32 %v4711_v20, %v4711_v20  ;;  %v4716_v31 = vadd.f32 %v4708_v51, %v1826_v5 }
 0x39c   :  { %v2852_v22 = vpop.f32.mrf.mxu1 }
 0x39d   :  { %v1907_v9 = vmul.f32 %v1891_v18, %v4711_v20  ;;  %v1889_v2 = vmul.f32 %v4716_v31, %v4716_v31  ;;  %v4722_v16 = vadd.f32 %v2852_v22, %v4708_v51 }
 0x39e   :  { %v1829_v61 = vpop.f32.mrf.mxu1 }
 0x39f   :  { %v1923_v33 = vmul.f32 0.044715, %v1907_v9  ;;  %v1905_v37 = vmul.f32 %v1889_v2, %v4716_v31  ;;  %v1892_v63 = vmul.f32 %v4722_v16, %v4722_v16  ;;  %v4728_v23 = vadd.f32 %v4708_v51, %v1829_v61 }
 0x3a0   :  { %v2855_v32 = vpop.f32.mrf.mxu1 }
 0x3a1   :  { %v1939_v30 = vadd.f32 %v1923_v33, %v4711_v20  ;;  %v1921_v29 = vmul.f32 0.044715, %v1905_v37  ;;  %v1908_v50 = vmul.f32 %v1892_v63, %v4722_v16  ;;  %v1890_v26 = vmul.f32 %v4728_v23, %v4728_v23 }
 0x3a2   :  { %v4735_v39 = vadd.f32 %v2855_v32, %v4708_v51  ;;  %v1842_v14 = vpop.f32.mrf.mxu1 }
 0x3a3   :  { %v1955_v48 = vmul.f32 0.7978846, %v1939_v30  ;;  %v1937_v36 = vadd.f32 %v1921_v29, %v4716_v31  ;;  %v1924_v35 = vmul.f32 0.044715, %v1908_v50  ;;  %v1906_v60 = vmul.f32 %v1890_v26, %v4728_v23 }
 0x3a4   :  { %v1895_v7 = vmul.f32 %v4735_v39, %v4735_v39  ;;  %v4742_v53 = vadd.f32 %v4708_v51, %v1842_v14  ;;  %v2856_v15 = vpop.f32.mrf.mxu1 }
 0x3a5   :  { %v1953_v10 = vmul.f32 0.7978846, %v1937_v36  ;;  %v1940_v3 = vadd.f32 %v1924_v35, %v4722_v16  ;;  %v1922_v46 = vmul.f32 0.044715, %v1906_v60  ;;  %3121 = vtanh.f32 %v1955_v48 }
 0x3a6   :  { %v1911_v25 = vmul.f32 %v1895_v7, %v4735_v39  ;;  %v1893_v55 = vmul.f32 %v4742_v53, %v4742_v53  ;;  %v1854_v17 = vadd.f32 %v2856_v15, %v4708_v51  ;;  %v1845_v11 = vpop.f32.mrf.mxu1 }
 0x3a7   :  { %3123 = vtanh.f32 %v1953_v10  ;;  %v1956_v41 = vmul.f32 0.7978846, %v1940_v3  ;;  %v1938_v8 = vadd.f32 %v1922_v46, %v4728_v23  ;;  %v1846_v40 = vadd.f32 %v4708_v51, %v1845_v11 }
 0x3a8   :  { %v1927_v47 = vmul.f32 0.044715, %v1911_v25  ;;  %v1909_v21 = vmul.f32 %v1893_v55, %v4742_v53  ;;  %v1896_v1 = vmul.f32 %v1854_v17, %v1854_v17 }
 0x3a9   :  { %3125 = vtanh.f32 %v1956_v41  ;;  %v1954_v57 = vmul.f32 0.7978846, %v1938_v8  ;;  %v1894_v38 = vmul.f32 %v1846_v40, %v1846_v40 }
 0x3aa   :  { %v1943_v56 = vadd.f32 %v1927_v47, %v4735_v39  ;;  %v1925_v13 = vmul.f32 0.044715, %v1909_v21  ;;  %v1912_v54 = vmul.f32 %v1896_v1, %v1854_v17 }
 0x3ab   :  { %3127 = vtanh.f32 %v1954_v57  ;;  %v1910_v45 = vmul.f32 %v1894_v38, %v1846_v40 }
 0x3ac   :  { %v1959_v42 = vmul.f32 0.7978846, %v1943_v56  ;;  %v1941_v52 = vadd.f32 %v1925_v13, %v4742_v53  ;;  %v1928_v4 = vmul.f32 0.044715, %v1912_v54 }
 0x3ad   :  { %v1926_v6 = vmul.f32 0.044715, %v1910_v45 }
 0x3ae   :  { %3129 = vtanh.f32 %v1959_v42  ;;  %v1957_v28 = vmul.f32 0.7978846, %v1941_v52  ;;  %v1944_v59 = vadd.f32 %v1928_v4, %v1854_v17 }
 0x3af   :  { %v1942_v0 = vadd.f32 %v1926_v6, %v1846_v40 }
 0x3b0   :  { %3131 = vtanh.f32 %v1957_v28  ;;  %v1960_v19 = vmul.f32 0.7978846, %v1944_v59 }
 0x3b1   :  { %v1958_v44 = vmul.f32 0.7978846, %v1942_v0 }
 0x3b2   :  { %3133 = vtanh.f32 %v1960_v19  ;;  %v3122_v58 = vpop.eup %3121 }
 0x3b3   :  { %3135 = vtanh.f32 %v1958_v44  ;;  %v1987_v27 = vadd.f32 1.0, %v3122_v58 }
 0x3b4   :  { %v3124_v49 = vpop.eup %3123 }
 0x3b5   :  { %v1985_v34 = vadd.f32 1.0, %v3124_v49  ;;  %v2003_v22 = vmul.f32 0.5, %v1987_v27 }
 0x3b6   :  { %v3126_v43 = vpop.eup %3125 }
 0x3b7   :  { %v1988_v12 = vadd.f32 1.0, %v3126_v43  ;;  %v2001_v18 = vmul.f32 0.5, %v1985_v34  ;;  %v2019_v32 = vmul.f32 %v2003_v22, %v4711_v20 }
 0x3b8   :  { %v3128_v62 = vpop.eup %3127 }
 0x3b9   :  { %v2004_v24 = vmul.f32 0.5, %v1988_v12  ;;  %v1986_v5 = vadd.f32 1.0, %v3128_v62  ;;  %v2017_v37 = vmul.f32 %v2001_v18, %v4716_v31 }
 0x3bb   :  { %v3130_v9 = vpop.eup %3129  ;;  %v2002_v2 = vmul.f32 0.5, %v1986_v5  ;;  %v2020_v61 = vmul.f32 %v2004_v24, %v4722_v16 }
 0x3bc   :  { %v1991_v29 = vadd.f32 1.0, %v3130_v9 }
 0x3bd   :  { %v3132_v33 = vpop.eup %3131  ;;  %v2018_v63 = vmul.f32 %v2002_v2, %v4728_v23  ;;  %v2034_v48 = vpack.c.bf16 %v2020_v61, %v2019_v32 }
 0x3be   :  { %v1989_v30 = vadd.f32 1.0, %v3132_v33  ;;  %v2007_v7 = vmul.f32 0.5, %v1991_v29 }
 0x3bf   :  { %v3134_v50 = vpop.eup %3133  ;;  %v2033_v26 = vpack.c.bf16 %v2018_v63, %v2017_v37 }
 0x3c0   :  { %v3136_v14 = vpop.eup %3135  ;;  %v1992_v36 = vadd.f32 1.0, %v3134_v50  ;;  %v2005_v60 = vmul.f32 0.5, %v1989_v30  ;;  %v2023_v46 = vmul.f32 %v2007_v7, %v4735_v39 }
 0x3c1   :  { %2881 = vmatprep.mubr.bf16.mxu0 %v2033_v26  ;;  %v1990_v35 = vadd.f32 1.0, %v3136_v14 }
 0x3c2   :  { %2882 = vmatmul.mubr.bf16.vlgmr.msra.gmra.mxu0 %v2034_v48  ;;  %v2008_v16 = vmul.f32 0.5, %v1992_v36  ;;  %v2021_v23 = vmul.f32 %v2005_v60, %v4742_v53 }
 0x3c3   :  { %v2006_v15 = vmul.f32 0.5, %v1990_v35 }
 0x3c4   :  { %v2024_v10 = vmul.f32 %v2008_v16, %v1854_v17 }
 0x3c5   :  { %v2859_v31 = vpop.f32.mrf.mxu1  ;;  %v2022_v3 = vmul.f32 %v2006_v15, %v1846_v40 }
 0x3c6   :  { %v1867_v20 = vadd.f32 %v2859_v31, %v4708_v51  ;;  %v2036_v8 = vpack.c.bf16 %v2024_v10, %v2023_v46 }
 0x3c7   :  { %v1858_v25 = vpop.f32.mrf.mxu1  ;;  %v2035_v55 = vpack.c.bf16 %v2022_v3, %v2021_v23 }
 0x3c8   :  { %v1899_v11 = vmul.f32 %v1867_v20, %v1867_v20  ;;  %v1859_v41 = vadd.f32 %v4708_v51, %v1858_v25 }
 0x3c9   :  { %2885 = vmatprep.mubr.bf16.mxu0 %v2035_v55  ;;  %v2860_v47 = vpop.f32.mrf.mxu1 }
 0x3ca   :  { %v1915_v21 = vmul.f32 %v1899_v11, %v1867_v20  ;;  %v1897_v1 = vmul.f32 %v1859_v41, %v1859_v41  ;;  %v1870_v17 = vadd.f32 %v2860_v47, %v4708_v51  ;;  %2886 = vmatmul.mubr.bf16.gmra.mxu0 %v2036_v8 }
 0x3cb   :  { %v1861_v57 = vpop.f32.mrf.mxu1 }
 0x3cc   :  { %v1931_v53 = vmul.f32 0.044715, %v1915_v21  ;;  %v1913_v40 = vmul.f32 %v1897_v1, %v1859_v41  ;;  %v1900_v38 = vmul.f32 %v1870_v17, %v1870_v17  ;;  %v1862_v56 = vadd.f32 %v4708_v51, %v1861_v57 }
 0x3ce   :  { %v1947_v39 = vadd.f32 %v1931_v53, %v1867_v20  ;;  %v1929_v13 = vmul.f32 0.044715, %v1913_v40  ;;  %v1916_v54 = vmul.f32 %v1900_v38, %v1870_v17  ;;  %v1898_v45 = vmul.f32 %v1862_v56, %v1862_v56 }
 0x3d0   :  { %v1963_v42 = vmul.f32 0.7978846, %v1947_v39  ;;  %v1945_v52 = vadd.f32 %v1929_v13, %v1859_v41  ;;  %v1932_v4 = vmul.f32 0.044715, %v1916_v54  ;;  %v1914_v6 = vmul.f32 %v1898_v45, %v1862_v56 }
 0x3d2   :  { %v1961_v28 = vmul.f32 0.7978846, %v1945_v52  ;;  %v1948_v59 = vadd.f32 %v1932_v4, %v1870_v17  ;;  %v1930_v0 = vmul.f32 0.044715, %v1914_v6  ;;  %3137 = vtanh.f32 %v1963_v42 }
 0x3d4   :  { %3139 = vtanh.f32 %v1961_v28  ;;  %v1964_v19 = vmul.f32 0.7978846, %v1948_v59  ;;  %v1946_v44 = vadd.f32 %v1930_v0, %v1862_v56 }
 0x3d6   :  { %3141 = vtanh.f32 %v1964_v19  ;;  %v1962_v58 = vmul.f32 0.7978846, %v1946_v44 }
 0x3d8   :  { %3143 = vtanh.f32 %v1962_v58 }
 0x3df   :  { %v3138_v49 = vpop.eup %3137 }
 0x3e0   :  { %v1995_v12 = vadd.f32 1.0, %v3138_v49  ;;  %v5205_v49 = vmov 0  }
 0x3e1   :  { %v3140_v34 = vpop.eup %3139 }
 0x3e2   :  { %v1993_v43 = vadd.f32 1.0, %v3140_v34  ;;  %v2011_v9 = vmul.f32 0.5, %v1995_v12  ;;  %v4769_v34 = vld [vmem:[#allocation2] sm:$0xff] }
 0x3e3   :  { %v3142_v27 = vpop.eup %3141  ;;  %2929 = vmatprep.mubr.msk.f32.mxu1 %vm3210_vm0, %v4769_v34 }
 0x3e4   :  { %v1996_v62 = vadd.f32 1.0, %v3142_v27  ;;  %v2009_v18 = vmul.f32 0.5, %v1993_v43  ;;  %v2027_v63 = vmul.f32 %v2011_v9, %v1867_v20 }
 0x3e5   :  { %v3144_v24 = vpop.eup %3143 }
 0x3e6   :  { %v1994_v5 = vadd.f32 1.0, %v3144_v24  ;;  %v2012_v22 = vmul.f32 0.5, %v1996_v62  ;;  %v2025_v33 = vmul.f32 %v2009_v18, %v1859_v41 }
 0x3e8   :  { %v2010_v2 = vmul.f32 0.5, %v1994_v5  ;;  %v2028_v61 = vmul.f32 %v2012_v22, %v1870_v17 }
 0x3ea   :  { %v2026_v37 = vmul.f32 %v2010_v2, %v1862_v56  ;;  %v2038_v30 = vpack.c.bf16 %v2028_v61, %v2027_v63 }
 0x3ec   :  { %v2037_v32 = vpack.c.bf16 %v2026_v37, %v2025_v33 }
 0x3ee   :  { %2889 = vmatprep.mubr.bf16.mxu0 %v2037_v32  ;;  %v4783_v32 = vld [vmem:[%s4960_s12] ss:$0 sm:$0xff] }
 0x3ef   :  { %2890 = vmatmul.mubr.bf16.gmra.mxu0 %v2038_v30 }
 0x3f2   :  { %v2863_v29 = vpop.f32.mrf.mxu1 }
 0x3f3   :  { %v1883_v50 = vadd.f32 %v2863_v29, %v4708_v51 }
 0x3f4   :  { %v1874_v26 = vpop.f32.mrf.mxu1 }
 0x3f5   :  { %v1903_v14 = vmul.f32 %v1883_v50, %v1883_v50  ;;  %v1875_v48 = vadd.f32 %v4708_v51, %v1874_v26 }
 0x3f6   :  { %v2864_v36 = vpop.f32.mrf.mxu1 }
 0x3f7   :  { %v1919_v35 = vmul.f32 %v1903_v14, %v1883_v50  ;;  %v1901_v60 = vmul.f32 %v1875_v48, %v1875_v48  ;;  %v1886_v7 = vadd.f32 %v2864_v36, %v4708_v51  ;;  %v3163_v14 = vld [vmem:[#allocation2 + $0x88] sm:$0xff] }
 0x3f8   :  { %v1877_v16 = vpop.f32.mrf.mxu1 }
 0x3f9   :  { %v1935_v15 = vmul.f32 0.044715, %v1919_v35  ;;  %v1917_v10 = vmul.f32 %v1901_v60, %v1875_v48  ;;  %v1904_v31 = vmul.f32 %v1886_v7, %v1886_v7  ;;  %v1878_v23 = vadd.f32 %v4708_v51, %v1877_v16  ;;  %v3164_v35 = vld [vmem:[#allocation2 + $0x80] sm:$0xff] }
 0x3fb   :  { %v1951_v3 = vadd.f32 %v1935_v15, %v1883_v50  ;;  %v1933_v20 = vmul.f32 0.044715, %v1917_v10  ;;  %v1920_v46 = vmul.f32 %v1904_v31, %v1886_v7  ;;  %v1902_v25 = vmul.f32 %v1878_v23, %v1878_v23  ;;  %v3165_v15 = vld [vmem:[#allocation2 + $0x78] sm:$0xff] }
 0x3fd   :  { %v1967_v55 = vmul.f32 0.7978846, %v1951_v3  ;;  %v1949_v11 = vadd.f32 %v1933_v20, %v1875_v48  ;;  %v1936_v41 = vmul.f32 0.044715, %v1920_v46  ;;  %v1918_v8 = vmul.f32 %v1902_v25, %v1878_v23  ;;  %v3167_v20 = vld [vmem:[#allocation2 + $0x68] sm:$0xff] }
 0x3ff   :  { %v1965_v47 = vmul.f32 0.7978846, %v1949_v11  ;;  %v1952_v21 = vadd.f32 %v1936_v41, %v1886_v7  ;;  %v1934_v1 = vmul.f32 0.044715, %v1918_v8  ;;  %3145 = vtanh.f32 %v1967_v55  ;;  %v3168_v55 = vld [vmem:[#allocation2 + $0x60] sm:$0xff] }
 0x401   :  { %3147 = vtanh.f32 %v1965_v47  ;;  %v1968_v17 = vmul.f32 0.7978846, %v1952_v21  ;;  %v1950_v57 = vadd.f32 %v1934_v1, %v1878_v23  ;;  %v3169_v47 = vld [vmem:[#allocation2 + $0x58] sm:$0xff] }
 0x403   :  { %3149 = vtanh.f32 %v1968_v17  ;;  %v1966_v53 = vmul.f32 0.7978846, %v1950_v57  ;;  %v3170_v17 = vld [vmem:[#allocation2 + $0x50] sm:$0xff] }
 0x405   :  { %3151 = vtanh.f32 %v1966_v53  ;;  %v3171_v53 = vld [vmem:[#allocation2 + $0x48] sm:$0xff] }
 0x40c   :  { %v3146_v40 = vpop.eup %3145 }
 0x40d   :  { %v1999_v39 = vadd.f32 1.0, %v3146_v40 }
 0x40e   :  { %v3148_v51 = vpop.eup %3147 }
 0x40f   :  { %v1997_v38 = vadd.f32 1.0, %v3148_v51  ;;  %v2015_v4 = vmul.f32 0.5, %v1999_v39 }
 0x410   :  { %v3150_v56 = vpop.eup %3149 }
 0x411   :  { %v2000_v13 = vadd.f32 1.0, %v3150_v56  ;;  %v2013_v42 = vmul.f32 0.5, %v1997_v38  ;;  %v2031_v19 = vmul.f32 %v2015_v4, %v1883_v50  ;;  %v3172_v38 = vld [vmem:[#allocation2 + $0x40] sm:$0xff] }
 0x412   :  { %v3152_v54 = vpop.eup %3151 }
 0x413   :  { %v1998_v45 = vadd.f32 1.0, %v3152_v54  ;;  %v2016_v52 = vmul.f32 0.5, %v2000_v13  ;;  %v2029_v59 = vmul.f32 %v2013_v42, %v1875_v48  ;;  %v3173_v54 = vld [vmem:[#allocation2 + $0x38] sm:$0xff] }
 0x415   :  { %v2014_v6 = vmul.f32 0.5, %v1998_v45  ;;  %v2032_v28 = vmul.f32 %v2016_v52, %v1886_v7  ;;  %v3174_v52 = vld [vmem:[#allocation2 + $0x30] sm:$0xff] }
 0x417   :  { %v2030_v0 = vmul.f32 %v2014_v6, %v1878_v23  ;;  %v2040_v58 = vpack.c.bf16 %v2032_v28, %v2031_v19  ;;  %v3166_v23 = vld [vmem:[#allocation2 + $0x70] sm:$0xff]  ;;  %v3175_v6 = vld [vmem:[#allocation2 + $0x28] sm:$0xff] }
 0x419   :  { %v2039_v44 = vpack.c.bf16 %v2030_v0, %v2029_v59  ;;  %v3176_v0 = vld [vmem:[#allocation2 + $0x20] sm:$0xff] }
 0x41b   :  { %2893 = vmatprep.mubr.bf16.mxu0 %v2039_v44 }
 0x41c   :  { %2894 = vmatmul.mubr.bf16.gmra.mxu0 %v2040_v58  ;;  %v3177_v58 = vld [vmem:[#allocation2 + $0x18] sm:$0xff] }
 0x41d   :  { %2576 = vmatprep.mubr.bf16.mxu0 %v5205_v49 }
 0x482   :  { %v4772_v43 = vpop.f32.mrf.mxu0 }
 0x483   :  { %v2155_v42 = vadd.f32 %v4772_v43, %v4783_v32 }
 0x484   :  { %v4774_v27 = vpop.f32.mrf.mxu0 }
 0x485   :  { %v2211_v19 = vadd.f32 %v3176_v0, %v2155_v42  ;;  %v2147_v44 = vadd.f32 %v4783_v32, %v4774_v27 }
 0x486   :  { %v4776_v12 = vpop.f32.mrf.mxu0 }
 0x487   :  { %v2158_v13 = vadd.f32 %v4776_v12, %v4783_v32  ;;  %v3178_v12 = vld [vmem:[#allocation2 + $0x10] sm:$0xff] }
 0x488   :  { %v4778_v62 = vpop.f32.mrf.mxu0 }
 0x489   :  { %v2212_v28 = vadd.f32 %v3175_v6, %v2158_v13  ;;  %v2150_v59 = vadd.f32 %v4783_v32, %v4778_v62  ;;  %v2225_v62 = vld [vmem:[%s4950_s2] sm:$0x3]  ;;  %v3211_v6 = vmov 1983009808  }
 0x48a   :  { %v2887_v24 = vpop.f32.mrf.mxu0  ;;  %v2702_v13 = vld [vmem:[%s4961_s13] ss:$0 sm:$0xff]  ;;  %s3212_s13 = smov [#allocation3]  }
 0x48b   :  { %v2171_v1 = vadd.f32 %v2887_v24, %v4783_v32  ;;  %v2210_v43 = vadd.f32 %v3177_v58, %v2150_v59  ;;  %v2209_v24 = vadd.f32 %v3178_v12, %v2147_v44  ;;  %v2362_v59 = vld [vmem:[%s4964_s16] sm:$0xf] }
 0x48c   :  { %v2162_v5 = vpop.f32.mrf.mxu0 }
 0x48d   :  { %v2215_v56 = vadd.f32 %v3172_v38, %v2171_v1  ;;  %v2163_v39 = vadd.f32 %v4783_v32, %v2162_v5  ;;  %v3083_v1 = vld [vmem:[%s4963_s15] ss:$16 sps:$4 sm:$0xff]  }
 0x48e   :  { %v2888_v18 = vpop.f32.mrf.mxu0 }
 0x48f   :  { %v2174_v8 = vadd.f32 %v2888_v18, %v4783_v32  ;;  %v2213_v4 = vadd.f32 %v3174_v52, %v2163_v39 }
 0x490   :  { %v2165_v22 = vpop.f32.mrf.mxu0 }
 0x491   :  { %v2216_v40 = vadd.f32 %v3171_v53, %v2174_v8  ;;  %v2166_v51 = vadd.f32 %v4783_v32, %v2165_v22  ;;  %v3041_v22 = vld [vmem:[%s4963_s15 + $0xe0] ss:$16 sps:$4 sm:$0xff]   ;;  %v3080_v8 = vld [vmem:[%s4963_s15 + $0x28] ss:$16 sps:$4 sm:$0xff]  }
 0x493   :  { %v2214_v45 = vadd.f32 %v3173_v54, %v2166_v51 }
 0x4af   :  { %v2891_v9 = vpop.f32.mrf.mxu0 }
 0x4b0   :  { %v2187_v31 = vadd.f32 %v2891_v9, %v4783_v32  ;;  %v3043_v9 = vld [vmem:[%s4963_s15 + $0xe4] ss:$16 sps:$4 sm:$0xff]  }
 0x4b1   :  { %v2178_v2 = vpop.f32.mrf.mxu0  ;;  %2544 = vmatprep.subr.bf16.mxu0 %v3043_v9 }
 0x4b2   :  { %v2219_v11 = vadd.f32 %v3168_v55, %v2187_v31  ;;  %v2179_v41 = vadd.f32 %v4783_v32, %v2178_v2  ;;  %2545 = vmatpush1.bf16.msra.mxu0 %v3041_v22  ;;  %v3065_v31 = vld [vmem:[%s4963_s15 + $0x60] ss:$16 sps:$4 sm:$0xff]   ;;  %v3079_v55 = vld [vmem:[%s4963_s15 + $0x24] ss:$16 sps:$4 sm:$0xff]  }
 0x4b3   :  { %v2892_v61 = vpop.f32.mrf.mxu0 }
 0x4b4   :  { %v2190_v16 = vadd.f32 %v2892_v61, %v4783_v32  ;;  %v2217_v57 = vadd.f32 %v3170_v17, %v2179_v41  ;;  %v3077_v41 = vld [vmem:[%s4963_s15 + $0x20] ss:$16 sps:$4 sm:$0xff]   ;;  %v3086_v17 = vld [vmem:[%s4963_s15 + $0x8] ss:$16 sps:$4 sm:$0xff]  }
 0x4b5   :  { %v2181_v33 = vpop.f32.mrf.mxu0 }
 0x4b6   :  { %v2220_v46 = vadd.f32 %v3167_v20, %v2190_v16  ;;  %v2182_v25 = vadd.f32 %v4783_v32, %v2181_v33  ;;  %v3062_v16 = vld [vmem:[%s4963_s15 + $0x88] ss:$16 sps:$4 sm:$0xff]   ;;  %v3076_v20 = vld [vmem:[%s4963_s15 + $0x4c] ss:$16 sps:$4 sm:$0xff]  }
 0x4b8   :  { %v2218_v21 = vadd.f32 %v3169_v47, %v2182_v25  ;;  %v3074_v25 = vld [vmem:[%s4963_s15 + $0x48] ss:$16 sps:$4 sm:$0xff]   ;;  %v3085_v47 = vld [vmem:[%s4963_s15 + $0x4] ss:$16 sps:$4 sm:$0xff]  }
 0x4dc   :  { %v2895_v37 = vpop.f32.mrf.mxu0 }
 0x4dd   :  { %v2203_v29 = vadd.f32 %v2895_v37, %v4783_v32 }
 0x4de   :  { %v2194_v63 = vpop.f32.mrf.mxu0 }
 0x4df   :  { %v2223_v60 = vadd.f32 %v3164_v35, %v2203_v29  ;;  %v2195_v7 = vadd.f32 %v4783_v32, %v2194_v63  ;;  %v3050_v29 = vld [vmem:[%s4963_s15 + $0xc8] ss:$16 sps:$4 sm:$0xff]   ;;  %v3061_v35 = vld [vmem:[%s4963_s15 + $0x84] ss:$16 sps:$4 sm:$0xff]  }
 0x4e0   :  { %v2896_v30 = vpop.f32.mrf.mxu0 }
 0x4e1   :  { %v2206_v50 = vadd.f32 %v2896_v30, %v4783_v32  ;;  %v2221_v3 = vadd.f32 %v3166_v23, %v2195_v7  ;;  %v3049_v30 = vld [vmem:[%s4963_s15 + $0xc4] ss:$16 sps:$4 sm:$0xff]   ;;  %v3059_v7 = vld [vmem:[%s4963_s15 + $0x80] ss:$16 sps:$4 sm:$0xff]   ;;  %v3068_v23 = vld [vmem:[%s4963_s15 + $0x68] ss:$16 sps:$4 sm:$0xff]  }
 0x4e2   :  { %v2197_v26 = vpop.f32.mrf.mxu0  ;;  %2546 = vmatprep.subr.bf16.mxu0 %v3049_v30 }
 0x4e3   :  { %v2224_v48 = vadd.f32 %v3163_v14, %v2206_v50  ;;  %v2198_v36 = vadd.f32 %v4783_v32, %v2197_v26  ;;  %v3047_v32 = vld [vmem:[%s4963_s15 + $0xc0] ss:$16 sps:$4 sm:$0xff]   ;;  %v3052_v50 = vld [vmem:[%s4963_s15 + $0xcc] ss:$16 sps:$4 sm:$0xff]   ;;  %v3055_v26 = vld [vmem:[%s4963_s15 + $0xa4] ss:$16 sps:$4 sm:$0xff]  }
 0x4e4   :  { %v3058_v14 = vld [vmem:[%s4963_s15 + $0xac] ss:$16 sps:$4 sm:$0xff]   ;;  %2547 = vmatpush1.bf16.msra.mxu0 %v3047_v32 }
 0x4e5   :  { %2898 = vmatpush3.msra.mxu1 %v2224_v48  ;;  %v2222_v10 = vadd.f32 %v3165_v15, %v2198_v36  ;;  %v3053_v48 = vld [vmem:[%s4963_s15 + $0xa0] ss:$16 sps:$4 sm:$0xff]   ;;  %2548 = vmatprep.subr.bf16.mxu0 %v3055_v26  ;;  %v3056_v36 = vld [vmem:[%s4963_s15 + $0xa8] ss:$16 sps:$4 sm:$0xff]   ;;  %v3067_v15 = vld [vmem:[%s4963_s15 + $0x64] ss:$16 sps:$4 sm:$0xff]  }
 0x4e6   :  { %2899 = vmatprep.subr.mxu1 %v4769_v34 }
 0x4e7   :  { %2900 = vmatpush3.msra.mxu1 %v2223_v60  ;;  %v3064_v60 = vld [vmem:[%s4963_s15 + $0x8c] ss:$16 sps:$4 sm:$0xff]  }
 0x4e8   :  { %2901 = vmatprep.subr.mxu1 %v4769_v34  ;;  %2549 = vmatpush1.bf16.msra.mxu0 %v3053_v48 }
 0x4e9   :  { %2902 = vmatpush3.msra.mxu1 %v2222_v10  ;;  %2550 = vmatprep.subr.bf16.mxu0 %v3061_v35  ;;  %v3070_v10 = vld [vmem:[%s4963_s15 + $0x6c] ss:$16 sps:$4 sm:$0xff]  }
 0x4ea   :  { %2903 = vmatprep.subr.mxu1 %v4769_v34 }
 0x4eb   :  { %2904 = vmatpush3.msra.mxu1 %v2221_v3  ;;  %v3073_v3 = vld [vmem:[%s4963_s15 + $0x44] ss:$16 sps:$4 sm:$0xff]  }
 0x4ec   :  { %2905 = vmatprep.subr.mxu1 %v4769_v34  ;;  %2551 = vmatpush1.bf16.msra.mxu0 %v3059_v7 }
 0x4ed   :  { %2906 = vmatpush3.msra.mxu1 %v2220_v46  ;;  %2552 = vmatprep.subr.bf16.mxu0 %v3067_v15  ;;  %v3071_v46 = vld [vmem:[%s4963_s15 + $0x40] ss:$16 sps:$4 sm:$0xff]  }
 0x4ee   :  { %2907 = vmatprep.subr.mxu1 %v4769_v34 }
 0x4ef   :  { %2908 = vmatpush3.msra.mxu1 %v2219_v11  ;;  %v3082_v11 = vld [vmem:[%s4963_s15 + $0x2c] ss:$16 sps:$4 sm:$0xff]  }
 0x4f0   :  { %2909 = vmatprep.subr.mxu1 %v4769_v34  ;;  %2553 = vmatpush1.bf16.msra.mxu0 %v3065_v31 }
 0x4f1   :  { %2910 = vmatpush3.msra.mxu1 %v2218_v21  ;;  %2554 = vmatprep.subr.bf16.mxu0 %v3073_v3  ;;  %v3088_v21 = vld [vmem:[%s4963_s15 + $0xc] ss:$16 sps:$4 sm:$0xff]  }
 0x4f2   :  { %2911 = vmatprep.subr.mxu1 %v4769_v34 }
 0x4f3   :  { %2912 = vmatpush3.msra.mxu1 %v2217_v57 }
 0x4f4   :  { %2913 = vmatprep.subr.mxu1 %v4769_v34  ;;  %2555 = vmatpush1.bf16.msra.mxu0 %v3071_v46 }
 0x4f5   :  { %2914 = vmatpush3.msra.mxu1 %v2216_v40  ;;  %2556 = vmatprep.subr.bf16.mxu0 %v3079_v55 }
 0x4f6   :  { %2915 = vmatprep.subr.mxu1 %v4769_v34 }
 0x4f7   :  { %2916 = vmatpush3.msra.mxu1 %v2215_v56 }
 0x4f8   :  { %2917 = vmatprep.subr.mxu1 %v4769_v34  ;;  %2557 = vmatpush1.bf16.msra.mxu0 %v3077_v41 }
 0x4f9   :  { %2918 = vmatpush3.msra.mxu1 %v2214_v45  ;;  %2558 = vmatprep.subr.bf16.mxu0 %v3085_v47  ;;  %v2703_v45 = vld [vmem:[%s4962_s14] ss:$0 sm:$0xff]  ;;  %s2655_s14 = sshll.u32 %s3212_s13, 4  ;;  %s2656_s14 = int_to_ptr.vmem [resolvable:$true] %s2655_s14 }
 0x4fa   :  { %2919 = vmatprep.subr.mxu1 %v4769_v34  ;;  %s3179_s16 = scalar_lea.vmem %s2656_s14, 128  ;;  %p3184_p1 = scmp.lt.s32.totalorder %s2656_s14, %s2656_s14 }
 0x4fb   :  { %2920 = vmatpush3.msra.mxu1 %v2213_v4  ;;  %p3180_p0 = scmp.ne.s32.totalorder %s2656_s14, %s3179_s16  ;;  %p3185_p2 = scmp.lt.s32.totalorder %s3179_s16, %s3179_s16 }
 0x4fc   :  { %2921 = vmatprep.subr.mxu1 %v4769_v34  ;;  %2559 = vmatpush1.bf16.msra.mxu0 %v3083_v1 }
 0x4fd   :  { %2922 = vmatpush3.msra.mxu1 %v2212_v28  ;;  %v2633_v28 = vunpack.c.l.s4 %v3211_v6  ;;  %p3186_p3 = por %p3185_p2, %p3184_p1 }
 0x4fe   :  { %2923 = vmatprep.subr.mxu1 %v4769_v34 }
 0x4ff   :  { %2924 = vmatpush3.msra.mxu1 %v2211_v19  ;;  %v2634_v0 = vunpack.c.0.s8 %v2633_v28  ;;  %v5206_v19 = vld [vmem:[#allocation31_spill] sm:$0xff]  ;;  %p3187_p4 = pnand %p3186_p3, %p3180_p0 }
 0x500   :  { %2925 = vmatprep.subr.mxu1 %v4769_v34  ;;  %v5207_v44 = vsub.s32 0, %v5206_v19 }
 0x501   :  { %2926 = vmatpush3.msra.mxu1 %v2210_v43  ;;  %v5208_v43 = vsub.s32 2, %v5206_v19 }
 0x502   :  { %2927 = vmatprep.subr.mxu1 %v4769_v34  ;;  %v3044_v34 = vld [vmem:[%s4963_s15 + $0xe8] ss:$16 sps:$4 sm:$0xff]   ;;  %v2367_v58 = vrot.slane %v2362_v59, %v5207_v44 }
 0x503   :  { %2928 = vmatpush3.msra.mxu1 %v2209_v24  ;;  %v2375_v12 = vrot.slane %v2362_v59, %v5208_v43  ;;  %v5209_v24 = vsub.s32 1, %v5206_v19 }
 0x504   :  { %2930 = vmatmul.mubr.f32.vlgmr.msra.gmra.mxu1 %v2225_v62 }
 0x505   :  { %2617 = vmatprep.mubr.bf16.mxu1 %v5205_v49  ;;  %v3046_v49 = vld [vmem:[%s4963_s15 + $0xec] ss:$16 sps:$4 sm:$0xff]   ;;  %v2371_v62 = vrot.slane %v2362_v59, %v5209_v24 }
 0x506   :  { %2585 = vmatprep.subr.bf16.mxu1 %v3046_v49  ;;  %v2637_v49 = vsub.s32 %v2634_v0, %v5206_v19 }
 0x507   :  { %2586 = vmatpush1.bf16.msra.mxu1 %v3044_v34 }
 0x508   :  { %2587 = vmatprep.subr.bf16.mxu1 %v3052_v50 }
 0x50b   :  { %2588 = vmatpush1.bf16.msra.mxu1 %v3050_v29 }
 0x50c   :  { %2589 = vmatprep.subr.bf16.mxu1 %v3058_v14 }
 0x50f   :  { %2590 = vmatpush1.bf16.msra.mxu1 %v3056_v36 }
 0x510   :  { %2591 = vmatprep.subr.bf16.mxu1 %v3064_v60 }
 0x513   :  { %2592 = vmatpush1.bf16.msra.mxu1 %v3062_v16 }
 0x514   :  { %2593 = vmatprep.subr.bf16.mxu1 %v3070_v10 }
 0x517   :  { %2594 = vmatpush1.bf16.msra.mxu1 %v3068_v23 }
 0x518   :  { %2595 = vmatprep.subr.bf16.mxu1 %v3076_v20 }
 0x51b   :  { %2596 = vmatpush1.bf16.msra.mxu1 %v3074_v25 }
 0x51c   :  { %2597 = vmatprep.subr.bf16.mxu1 %v3082_v11 }
 0x51f   :  { %2598 = vmatpush1.bf16.msra.mxu1 %v3080_v8 }
 0x520   :  { %2599 = vmatprep.subr.bf16.mxu1 %v3088_v21 }
 0x523   :  { %2600 = vmatpush1.bf16.msra.mxu1 %v3086_v17 }
 0x5c4   :  { %v2292_v27 = vpop.f32.mrf.mxu1 }
 0x5c5   :  { %v2297_v5 = vsel %vm2296_vm1, %v2292_v27, 0.0 }
 0x5c6   :  { %2298 = vadd.xlane.f32.xlu0 %v2297_v5  ;;  %v2931_v18 = vpop.f32.mrf.mxu1 }
 0x64f   :  { %v2299_v2 = vpop.xlane.xlu0 %2298 }
 0x650   :  { %v2300_v61 = vmul.f32 0.03125, %v2299_v2 }
 0x652   :  { %v4837_v33 = vsub.f32 %v2292_v27, %v2300_v61  ;;  %v2307_v57 = vmul.f32 %v2300_v61, %v2300_v61  ;;  %v5210_v27 = vsub.s32 3, %v5206_v19 }
 0x654   :  { %v2302_v37 = vmul.f32 %v4837_v33, %v4837_v33  ;;  %v2308_v40 = vmul.f32 3.0, %v2307_v57  ;;  %v2379_v5 = vrot.slane %v2362_v59, %v5210_v27 }
 0x656   :  { %v2303_v63 = vsel %vm2296_vm1, %v2302_v37, 0.0 }
 0x657   :  { %2304 = vadd.xlane.f32.xlu1 %v2303_v63 }
 0x6e0   :  { %v2305_v53 = vpop.xlane.xlu1 %2304 }
 0x6e1   :  { %v2306_v51 = vmul.f32 0.03125, %v2305_v53 }
 0x6e3   :  { %v2309_v38 = vsub.f32 %v2306_v51, %v2308_v40 }
 0x6e5   :  { %v2310_v56 = vadd.f32 1e-06, %v2309_v38 }
 0x6e7   :  { %3153 = vrsqrt.f32 %v2310_v56 }
 0x6f4   :  { %v3154_v39 = vpop.eup %3153 }
 0x6f5   :  { %v2312_v54 = vmul.f32 %v3154_v39, %v4837_v33 }
 0x6f7   :  { %v2320_v42 = vmul.f32 %v2702_v13, %v2312_v54 }
 0x6f9   :  { %v2328_v52 = vadd.f32 %v2703_v45, %v2320_v42 }
 0x6fb   :  { %v2329_v4 = vpack.c.bf16 %v2328_v52, %v2328_v52 }
 0x6fd   :  { %2577 = vmatmul.mubr.bf16.vlgmr.msra.gmra.mxu0 %v2329_v4  ;;  %2618 = vmatmul.mubr.bf16.vlgmr.msra.gmra.mxu1 %v2329_v4 }
 0x7bd   :  { %v2578_v18 = vpop.f32.mrf.mxu0  ;;  %v2619_v22 = vpop.f32.mrf.mxu1 }
 0x7be   :  { %v2579_v2 = vadd.f32 %v2578_v18, %v2367_v58  ;;  %v2620_v61 = vadd.f32 %v2619_v22, %v2375_v12 }
 0x7bf   :  { %v2580_v9 = vpop.f32.mrf.mxu0  ;;  %v2621_v34 = vpop.f32.mrf.mxu1 }
 0x7c0   :  { %v2581_v33 = vadd.f32 %v2580_v9, %v2371_v62  ;;  %v2622_v37 = vadd.f32 %v2621_v34, %v2379_v5 }
 0x7c1   :  { %v2582_v63 = vpop.f32.mrf.mxu0  ;;  %v2623_v32 = vpop.f32.mrf.mxu1 }
 0x7c2   :  { %v2630_v30 = vcombine.low %v2579_v2, %v2581_v33  ;;  %v2631_v29 = vcombine.low %v2620_v61, %v2622_v37 }
 0x7c3   :  { %v2583_v50 = vpop.f32.mrf.mxu0  ;;  %v2624_v26 = vpop.f32.mrf.mxu1 }
 0x7c4   :  { %v2638_v14 = vrot.slane %v2630_v30, %v2637_v49  ;;  %v2645_v48 = vrot.slane %v2631_v29, %v2637_v49 }
 0x7c6   :  { %v2646_v36 = vcombine.low %v2638_v14, %v2645_v48 }
 0x7c8   :  { %2648 = vst [vmem:[#allocation3] sm:$0xff] %v2646_v36 }
 0x7c9   :  { %3190 = shalt.err (!%p3187_p4)
}
 0x7ca   :  { %2658 = dma.vmem_to_hbm [thread:$0]  %s2656_s14, 128, %s4965_s17, [#allocation4]  }
 0x7cb   :  { %3199 = dma.done.wait [#allocation4], 128  }
 0x7cc   :  { %3200 = vsyncadd [#allocation4], 4294967168 }
 0x7cd   :  { %2662 = vsyncpa [#allocation4], 1 }

</bundles_post_ra>
